<compile_context>
chip_gen: v7x
topology: tpu7x:2x2x1
jax: 0.10.0
libtpu: 0.0.40
codegen_flags: <defaults>
</compile_context>

<pallas_src>
import jax
import jax.numpy as jnp
from jax import lax
from jax.experimental import pallas as pl
from jax.experimental.pallas import tpu as pltpu

C_IN, C_OUT = 4, 2
K_H, K_W = 7, 9
PAD_H, PAD_W = 3, 3
OPAD_H, OPAD_W = 1, 1

# Zero padding around the raw input for the equivalent correlation.
PAD_TOP = K_H - 1 - PAD_H             # 3
PAD_LEFT = K_W - 1 - PAD_W            # 5

SEG = 32                              # per-input-channel lane segment (4 * 32 = 128)
DATA_LANES = C_IN * SEG               # 128
PACK_LANES = DATA_LANES + 128         # 256: extra zero lane-group so [:, kx:kx+128] is in range


def convt_tanh_kernel(xp_ref, w_ref, b_ref, o_ref):
    """xp_ref: (1, ROWS, PACK_LANES) f32 VMEM — zero-padded input with channels
               packed along lanes: xp[r, c*SEG + j] = xpad[c, r, j]
       w_ref : (K_H*K_W, C_OUT, 8, 128) f32 VMEM — flipped weights pre-broadcast
               across 8 sublanes and each channel's SEG-lane segment
       b_ref : (C_OUT,) f32 SMEM
       o_ref : (1, C_OUT, Ho, Wo) f32 VMEM
    """
    ho, wo = o_ref.shape[2], o_ref.shape[3]
    ah = max(8, -(-ho // 8) * 8)            # accumulator height (sublane-rounded)

    # Single load of the packed slab; stays register-resident (~4 vregs).
    xp = xp_ref[0]                          # (ROWS, PACK_LANES)

    acc0 = jnp.zeros((ah, 128), jnp.float32)
    acc1 = jnp.zeros((ah, 128), jnp.float32)

    for ky in range(K_H):
        rows = xp[ky:ky + ah, :]            # static sublane slice, hoisted per ky
        for kx in range(K_W):
            # One static lane slice aligns all 4 channel windows at lane c*SEG.
            patch = rows[:, kx:kx + 128]    # (ah, 128)
            idx = ky * K_W + kx
            # Vector x vector: weight planes come from VMEM (idle vld slots),
            # the shared patch feeds both output-channel accumulators.
            acc0 = acc0 + patch * w_ref[idx, 0]
            acc1 = acc1 + patch * w_ref[idx, 1]

    def seg_sum(acc, b):
        # Collapse the 4 channel segments (aligned 32-lane slices -> cheap).
        s = (acc[:, 0 * SEG:1 * SEG] + acc[:, 1 * SEG:2 * SEG]
             + acc[:, 2 * SEG:3 * SEG] + acc[:, 3 * SEG:4 * SEG])
        return s[:ho, :wo] + b

    # Fused epilogue: one tanh, one store of both output channels.
    out = jnp.stack([seg_sum(acc0, b_ref[0]), seg_sum(acc1, b_ref[1])])
    o_ref[0] = jnp.tanh(out).astype(o_ref.dtype)


def prepare_weights(w_pt):
    """(C_IN, C_OUT, K_H, K_W) ConvTranspose2d weight -> (K_H*K_W, C_OUT, 8, 128)
    lane-broadcast correlation planes. Done ONCE per model, not per call."""
    w_flip = w_pt[:, :, ::-1, ::-1]                         # spatial flip
    w_t = jnp.transpose(w_flip, (2, 3, 1, 0))               # (K_H, K_W, C_OUT, C_IN)
    w_t = w_t.reshape(K_H * K_W, C_OUT, C_IN, 1, 1)
    planes = jnp.broadcast_to(w_t, (K_H * K_W, C_OUT, C_IN, 8, SEG))
    planes = jnp.transpose(planes, (0, 1, 3, 2, 4))         # (.., 8, C_IN, SEG)
    return planes.reshape(K_H * K_W, C_OUT, 8, DATA_LANES).astype(jnp.float32)


@jax.jit
def conv_transpose_tanh(x_nchw, w_planes, bias):
    """x_nchw: (N, C_IN, H, W) f32, w_planes: prepare_weights output,
       bias: (C_OUT,) f32.  Returns (N, C_OUT, Ho, Wo)."""
    n, cin, h, w = x_nchw.shape
    assert cin == C_IN and x_nchw.dtype == jnp.float32
    ho = h + (K_H - 1) - 2 * PAD_H + OPAD_H                 # = h + 1
    wo = w + (K_W - 1) - 2 * PAD_W + OPAD_W                 # = w + 3
    assert wo + (K_W - 1) <= SEG, "spatial width too large for 32-lane segments"
    ah = max(8, -(-ho // 8) * 8)
    rows = -(-((K_H - 1) + ah) // 8) * 8                    # padded rows, sublane-rounded

    # Layout plumbing only (no compute): zero-pad and pack the C_IN channels
    # along the lane axis so the kernel sees one lane-dense slab per image.
    xp = jnp.pad(x_nchw,
                 ((0, 0), (0, 0),
                  (PAD_TOP, rows - PAD_TOP - h),
                  (PAD_LEFT, SEG - PAD_LEFT - w)))          # (n, C_IN, rows, SEG)
    xp = jnp.transpose(xp, (0, 2, 1, 3)).reshape(n, rows, DATA_LANES)
    xp = jnp.pad(xp, ((0, 0), (0, 0), (0, PACK_LANES - DATA_LANES)))  # (n, rows, 256)

    return pl.pallas_call(
        convt_tanh_kernel,
        out_shape=jax.ShapeDtypeStruct((n, C_OUT, ho, wo), x_nchw.dtype),
        grid=(n,),
        in_specs=[
            pl.BlockSpec((1, rows, PACK_LANES), lambda b: (b, 0, 0)),
            pl.BlockSpec((K_H * K_W, C_OUT, 8, 128), lambda b: (0, 0, 0, 0)),
            pl.BlockSpec(memory_space=pltpu.MemorySpace.SMEM),
        ],
        out_specs=pl.BlockSpec((1, C_OUT, ho, wo), lambda b: (b, 0, 0, 0)),
        compiler_params=pltpu.CompilerParams(
            dimension_semantics=("parallel",)),
    )(xp, w_planes, bias)


if __name__ == "__main__":
    key = jax.random.PRNGKey(0)
    k_x, k_w, k_b = jax.random.split(key, 3)

    # Input shape implied by the module: (1, 4, 6, 3) NCHW.
    x1 = jax.random.normal(k_x, (1, C_IN, 6, 3), dtype=jnp.float32)

    # Deterministic parameter init (PyTorch-style uniform bound).
    fan = C_OUT * K_H * K_W
    bound = 1.0 / (fan ** 0.5)
    w_pt = jax.random.uniform(k_w, (C_IN, C_OUT, K_H, K_W), jnp.float32,
                              -bound, bound)
    bias = jax.random.uniform(k_b, (C_OUT,), jnp.float32, -bound, bound)

    # Precompute the broadcast weight planes once per model (not per call).
    w_planes = jax.block_until_ready(prepare_weights(w_pt))

    out = jax.block_until_ready(conv_transpose_tanh(x1, w_planes, bias))

    # Cross-check against an XLA reference of the same transposed conv + tanh.
    w_oihw = jnp.transpose(w_pt[:, :, ::-1, ::-1], (1, 0, 2, 3))
    ref = lax.conv_general_dilated(
        x1, w_oihw, window_strides=(1, 1),
        padding=((K_H - 1 - PAD_H, K_H - 1 - PAD_H + OPAD_H),
                 (K_W - 1 - PAD_W, K_W - 1 - PAD_W + OPAD_W)),
        dimension_numbers=("NCHW", "OIHW", "NCHW"))
    ref = jnp.tanh(ref + bias[None, :, None, None])

    assert out.shape == (1, C_OUT, 7, 6), out.shape
    assert jnp.allclose(out, ref, atol=1e-5, rtol=1e-5), float(
        jnp.max(jnp.abs(out - ref)))
    print("KERNEL_OK")
</pallas_src>

<mosaic_0001>
module attributes {stable_mosaic.version = 11 : i64} {
  func.func @convt_tanh_kernel(%arg0: i32, %arg1: memref<1x16x256xf32, #tpu.memory_space<vmem>>, %arg2: memref<63x2x8x128xf32, #tpu.memory_space<vmem>>, %arg3: memref<2xf32, #tpu.memory_space<smem>>, %arg4: memref<1x2x7x6xf32, #tpu.memory_space<vmem>>) attributes {dimension_semantics = [#tpu.dimension_semantics<parallel>], iteration_bounds = array<i64: 1>, scalar_prefetch = 0 : i64, scratch_operands = 0 : i64, tpu.core_type = #tpu.core_type<tc>, window_params = [{transform_indices = @transform_0, window_bounds = array<i64: 1, 16, 256>}, {pipeline_mode = #tpu.pipeline_mode<synchronous>, transform_indices = @transform_1, window_bounds = array<i64: 63, 2, 8, 128>}, {transform_indices = @transform_2, window_bounds = array<i64: 2>}, {transform_indices = @transform_3, window_bounds = array<i64: 1, 2, 7, 6>}]} {
    %c0 = arith.constant 0 : index
    %c0_0 = arith.constant 0 : index
    %c0_1 = arith.constant 0 : index
    %0 = vector.load %arg1[%c0, %c0_0, %c0_1] : memref<1x16x256xf32, #tpu.memory_space<vmem>>, vector<1x16x256xf32>
    %1 = vector.shape_cast %0 : vector<1x16x256xf32> to vector<16x256xf32>
    %cst = arith.constant 0.000000e+00 : f32
    %2 = vector.broadcast %cst : f32 to vector<8x128xf32>
    %cst_2 = arith.constant 0.000000e+00 : f32
    %3 = vector.broadcast %cst_2 : f32 to vector<8x128xf32>
    %4 = vector.extract_strided_slice %1 {offsets = [0, 0], sizes = [8, 256], strides = [1, 1]} : vector<16x256xf32> to vector<8x256xf32>
    %5 = vector.extract_strided_slice %4 {offsets = [0, 0], sizes = [8, 128], strides = [1, 1]} : vector<8x256xf32> to vector<8x128xf32>
    %c0_3 = arith.constant 0 : index
    %c0_4 = arith.constant 0 : index
    %c0_5 = arith.constant 0 : index
    %c0_6 = arith.constant 0 : index
    %6 = vector.load %arg2[%c0_3, %c0_4, %c0_5, %c0_6] : memref<63x2x8x128xf32, #tpu.memory_space<vmem>>, vector<1x1x8x128xf32>
    %7 = vector.shape_cast %6 : vector<1x1x8x128xf32> to vector<8x128xf32>
    %8 = arith.mulf %5, %7 : vector<8x128xf32>
    %9 = arith.addf %2, %8 : vector<8x128xf32>
    %c0_7 = arith.constant 0 : index
    %c1 = arith.constant 1 : index
    %c0_8 = arith.constant 0 : index
    %c0_9 = arith.constant 0 : index
    %10 = vector.load %arg2[%c0_7, %c1, %c0_8, %c0_9] : memref<63x2x8x128xf32, #tpu.memory_space<vmem>>, vector<1x1x8x128xf32>
    %11 = vector.shape_cast %10 : vector<1x1x8x128xf32> to vector<8x128xf32>
    %12 = arith.mulf %5, %11 : vector<8x128xf32>
    %13 = arith.addf %3, %12 : vector<8x128xf32>
    %14 = vector.extract_strided_slice %4 {offsets = [0, 1], sizes = [8, 128], strides = [1, 1]} : vector<8x256xf32> to vector<8x128xf32>
    %c1_10 = arith.constant 1 : index
    %c0_11 = arith.constant 0 : index
    %c0_12 = arith.constant 0 : index
    %c0_13 = arith.constant 0 : index
    %15 = vector.load %arg2[%c1_10, %c0_11, %c0_12, %c0_13] : memref<63x2x8x128xf32, #tpu.memory_space<vmem>>, vector<1x1x8x128xf32>
    %16 = vector.shape_cast %15 : vector<1x1x8x128xf32> to vector<8x128xf32>
    %17 = arith.mulf %14, %16 : vector<8x128xf32>
    %18 = arith.addf %9, %17 : vector<8x128xf32>
    %c1_14 = arith.constant 1 : index
    %c1_15 = arith.constant 1 : index
    %c0_16 = arith.constant 0 : index
    %c0_17 = arith.constant 0 : index
    %19 = vector.load %arg2[%c1_14, %c1_15, %c0_16, %c0_17] : memref<63x2x8x128xf32, #tpu.memory_space<vmem>>, vector<1x1x8x128xf32>
    %20 = vector.shape_cast %19 : vector<1x1x8x128xf32> to vector<8x128xf32>
    %21 = arith.mulf %14, %20 : vector<8x128xf32>
    %22 = arith.addf %13, %21 : vector<8x128xf32>
    %23 = vector.extract_strided_slice %4 {offsets = [0, 2], sizes = [8, 128], strides = [1, 1]} : vector<8x256xf32> to vector<8x128xf32>
    %c2 = arith.constant 2 : index
    %c0_18 = arith.constant 0 : index
    %c0_19 = arith.constant 0 : index
    %c0_20 = arith.constant 0 : index
    %24 = vector.load %arg2[%c2, %c0_18, %c0_19, %c0_20] : memref<63x2x8x128xf32, #tpu.memory_space<vmem>>, vector<1x1x8x128xf32>
    %25 = vector.shape_cast %24 : vector<1x1x8x128xf32> to vector<8x128xf32>
    %26 = arith.mulf %23, %25 : vector<8x128xf32>
    %27 = arith.addf %18, %26 : vector<8x128xf32>
    %c2_21 = arith.constant 2 : index
    %c1_22 = arith.constant 1 : index
    %c0_23 = arith.constant 0 : index
    %c0_24 = arith.constant 0 : index
    %28 = vector.load %arg2[%c2_21, %c1_22, %c0_23, %c0_24] : memref<63x2x8x128xf32, #tpu.memory_space<vmem>>, vector<1x1x8x128xf32>
    %29 = vector.shape_cast %28 : vector<1x1x8x128xf32> to vector<8x128xf32>
    %30 = arith.mulf %23, %29 : vector<8x128xf32>
    %31 = arith.addf %22, %30 : vector<8x128xf32>
    %32 = vector.extract_strided_slice %4 {offsets = [0, 3], sizes = [8, 128], strides = [1, 1]} : vector<8x256xf32> to vector<8x128xf32>
    %c3 = arith.constant 3 : index
    %c0_25 = arith.constant 0 : index
    %c0_26 = arith.constant 0 : index
    %c0_27 = arith.constant 0 : index
    %33 = vector.load %arg2[%c3, %c0_25, %c0_26, %c0_27] : memref<63x2x8x128xf32, #tpu.memory_space<vmem>>, vector<1x1x8x128xf32>
    %34 = vector.shape_cast %33 : vector<1x1x8x128xf32> to vector<8x128xf32>
    %35 = arith.mulf %32, %34 : vector<8x128xf32>
    %36 = arith.addf %27, %35 : vector<8x128xf32>
    %c3_28 = arith.constant 3 : index
    %c1_29 = arith.constant 1 : index
    %c0_30 = arith.constant 0 : index
    %c0_31 = arith.constant 0 : index
    %37 = vector.load %arg2[%c3_28, %c1_29, %c0_30, %c0_31] : memref<63x2x8x128xf32, #tpu.memory_space<vmem>>, vector<1x1x8x128xf32>
    %38 = vector.shape_cast %37 : vector<1x1x8x128xf32> to vector<8x128xf32>
    %39 = arith.mulf %32, %38 : vector<8x128xf32>
    %40 = arith.addf %31, %39 : vector<8x128xf32>
    %41 = vector.extract_strided_slice %4 {offsets = [0, 4], sizes = [8, 128], strides = [1, 1]} : vector<8x256xf32> to vector<8x128xf32>
    %c4 = arith.constant 4 : index
    %c0_32 = arith.constant 0 : index
    %c0_33 = arith.constant 0 : index
    %c0_34 = arith.constant 0 : index
    %42 = vector.load %arg2[%c4, %c0_32, %c0_33, %c0_34] : memref<63x2x8x128xf32, #tpu.memory_space<vmem>>, vector<1x1x8x128xf32>
    %43 = vector.shape_cast %42 : vector<1x1x8x128xf32> to vector<8x128xf32>
    %44 = arith.mulf %41, %43 : vector<8x128xf32>
    %45 = arith.addf %36, %44 : vector<8x128xf32>
    %c4_35 = arith.constant 4 : index
    %c1_36 = arith.constant 1 : index
    %c0_37 = arith.constant 0 : index
    %c0_38 = arith.constant 0 : index
    %46 = vector.load %arg2[%c4_35, %c1_36, %c0_37, %c0_38] : memref<63x2x8x128xf32, #tpu.memory_space<vmem>>, vector<1x1x8x128xf32>
    %47 = vector.shape_cast %46 : vector<1x1x8x128xf32> to vector<8x128xf32>
    %48 = arith.mulf %41, %47 : vector<8x128xf32>
    %49 = arith.addf %40, %48 : vector<8x128xf32>
    %50 = vector.extract_strided_slice %4 {offsets = [0, 5], sizes = [8, 128], strides = [1, 1]} : vector<8x256xf32> to vector<8x128xf32>
    %c5 = arith.constant 5 : index
    %c0_39 = arith.constant 0 : index
    %c0_40 = arith.constant 0 : index
    %c0_41 = arith.constant 0 : index
    %51 = vector.load %arg2[%c5, %c0_39, %c0_40, %c0_41] : memref<63x2x8x128xf32, #tpu.memory_space<vmem>>, vector<1x1x8x128xf32>
    %52 = vector.shape_cast %51 : vector<1x1x8x128xf32> to vector<8x128xf32>
    %53 = arith.mulf %50, %52 : vector<8x128xf32>
    %54 = arith.addf %45, %53 : vector<8x128xf32>
    %c5_42 = arith.constant 5 : index
    %c1_43 = arith.constant 1 : index
    %c0_44 = arith.constant 0 : index
    %c0_45 = arith.constant 0 : index
    %55 = vector.load %arg2[%c5_42, %c1_43, %c0_44, %c0_45] : memref<63x2x8x128xf32, #tpu.memory_space<vmem>>, vector<1x1x8x128xf32>
    %56 = vector.shape_cast %55 : vector<1x1x8x128xf32> to vector<8x128xf32>
    %57 = arith.mulf %50, %56 : vector<8x128xf32>
    %58 = arith.addf %49, %57 : vector<8x128xf32>
    %59 = vector.extract_strided_slice %4 {offsets = [0, 6], sizes = [8, 128], strides = [1, 1]} : vector<8x256xf32> to vector<8x128xf32>
    %c6 = arith.constant 6 : index
    %c0_46 = arith.constant 0 : index
    %c0_47 = arith.constant 0 : index
    %c0_48 = arith.constant 0 : index
    %60 = vector.load %arg2[%c6, %c0_46, %c0_47, %c0_48] : memref<63x2x8x128xf32, #tpu.memory_space<vmem>>, vector<1x1x8x128xf32>
    %61 = vector.shape_cast %60 : vector<1x1x8x128xf32> to vector<8x128xf32>
    %62 = arith.mulf %59, %61 : vector<8x128xf32>
    %63 = arith.addf %54, %62 : vector<8x128xf32>
    %c6_49 = arith.constant 6 : index
    %c1_50 = arith.constant 1 : index
    %c0_51 = arith.constant 0 : index
    %c0_52 = arith.constant 0 : index
    %64 = vector.load %arg2[%c6_49, %c1_50, %c0_51, %c0_52] : memref<63x2x8x128xf32, #tpu.memory_space<vmem>>, vector<1x1x8x128xf32>
    %65 = vector.shape_cast %64 : vector<1x1x8x128xf32> to vector<8x128xf32>
    %66 = arith.mulf %59, %65 : vector<8x128xf32>
    %67 = arith.addf %58, %66 : vector<8x128xf32>
    %68 = vector.extract_strided_slice %4 {offsets = [0, 7], sizes = [8, 128], strides = [1, 1]} : vector<8x256xf32> to vector<8x128xf32>
    %c7 = arith.constant 7 : index
    %c0_53 = arith.constant 0 : index
    %c0_54 = arith.constant 0 : index
    %c0_55 = arith.constant 0 : index
    %69 = vector.load %arg2[%c7, %c0_53, %c0_54, %c0_55] : memref<63x2x8x128xf32, #tpu.memory_space<vmem>>, vector<1x1x8x128xf32>
    %70 = vector.shape_cast %69 : vector<1x1x8x128xf32> to vector<8x128xf32>
    %71 = arith.mulf %68, %70 : vector<8x128xf32>
    %72 = arith.addf %63, %71 : vector<8x128xf32>
    %c7_56 = arith.constant 7 : index
    %c1_57 = arith.constant 1 : index
    %c0_58 = arith.constant 0 : index
    %c0_59 = arith.constant 0 : index
    %73 = vector.load %arg2[%c7_56, %c1_57, %c0_58, %c0_59] : memref<63x2x8x128xf32, #tpu.memory_space<vmem>>, vector<1x1x8x128xf32>
    %74 = vector.shape_cast %73 : vector<1x1x8x128xf32> to vector<8x128xf32>
    %75 = arith.mulf %68, %74 : vector<8x128xf32>
    %76 = arith.addf %67, %75 : vector<8x128xf32>
    %77 = vector.extract_strided_slice %4 {offsets = [0, 8], sizes = [8, 128], strides = [1, 1]} : vector<8x256xf32> to vector<8x128xf32>
    %c8 = arith.constant 8 : index
    %c0_60 = arith.constant 0 : index
    %c0_61 = arith.constant 0 : index
    %c0_62 = arith.constant 0 : index
    %78 = vector.load %arg2[%c8, %c0_60, %c0_61, %c0_62] : memref<63x2x8x128xf32, #tpu.memory_space<vmem>>, vector<1x1x8x128xf32>
    %79 = vector.shape_cast %78 : vector<1x1x8x128xf32> to vector<8x128xf32>
    %80 = arith.mulf %77, %79 : vector<8x128xf32>
    %81 = arith.addf %72, %80 : vector<8x128xf32>
    %c8_63 = arith.constant 8 : index
    %c1_64 = arith.constant 1 : index
    %c0_65 = arith.constant 0 : index
    %c0_66 = arith.constant 0 : index
    %82 = vector.load %arg2[%c8_63, %c1_64, %c0_65, %c0_66] : memref<63x2x8x128xf32, #tpu.memory_space<vmem>>, vector<1x1x8x128xf32>
    %83 = vector.shape_cast %82 : vector<1x1x8x128xf32> to vector<8x128xf32>
    %84 = arith.mulf %77, %83 : vector<8x128xf32>
    %85 = arith.addf %76, %84 : vector<8x128xf32>
    %86 = vector.extract_strided_slice %1 {offsets = [1, 0], sizes = [8, 256], strides = [1, 1]} : vector<16x256xf32> to vector<8x256xf32>
    %87 = vector.extract_strided_slice %86 {offsets = [0, 0], sizes = [8, 128], strides = [1, 1]} : vector<8x256xf32> to vector<8x128xf32>
    %c9 = arith.constant 9 : index
    %c0_67 = arith.constant 0 : index
    %c0_68 = arith.constant 0 : index
    %c0_69 = arith.constant 0 : index
    %88 = vector.load %arg2[%c9, %c0_67, %c0_68, %c0_69] : memref<63x2x8x128xf32, #tpu.memory_space<vmem>>, vector<1x1x8x128xf32>
    %89 = vector.shape_cast %88 : vector<1x1x8x128xf32> to vector<8x128xf32>
    %90 = arith.mulf %87, %89 : vector<8x128xf32>
    %91 = arith.addf %81, %90 : vector<8x128xf32>
    %c9_70 = arith.constant 9 : index
    %c1_71 = arith.constant 1 : index
    %c0_72 = arith.constant 0 : index
    %c0_73 = arith.constant 0 : index
    %92 = vector.load %arg2[%c9_70, %c1_71, %c0_72, %c0_73] : memref<63x2x8x128xf32, #tpu.memory_space<vmem>>, vector<1x1x8x128xf32>
    %93 = vector.shape_cast %92 : vector<1x1x8x128xf32> to vector<8x128xf32>
    %94 = arith.mulf %87, %93 : vector<8x128xf32>
    %95 = arith.addf %85, %94 : vector<8x128xf32>
    %96 = vector.extract_strided_slice %86 {offsets = [0, 1], sizes = [8, 128], strides = [1, 1]} : vector<8x256xf32> to vector<8x128xf32>
    %c10 = arith.constant 10 : index
    %c0_74 = arith.constant 0 : index
    %c0_75 = arith.constant 0 : index
    %c0_76 = arith.constant 0 : index
    %97 = vector.load %arg2[%c10, %c0_74, %c0_75, %c0_76] : memref<63x2x8x128xf32, #tpu.memory_space<vmem>>, vector<1x1x8x128xf32>
    %98 = vector.shape_cast %97 : vector<1x1x8x128xf32> to vector<8x128xf32>
    %99 = arith.mulf %96, %98 : vector<8x128xf32>
    %100 = arith.addf %91, %99 : vector<8x128xf32>
    %c10_77 = arith.constant 10 : index
    %c1_78 = arith.constant 1 : index
    %c0_79 = arith.constant 0 : index
    %c0_80 = arith.constant 0 : index
    %101 = vector.load %arg2[%c10_77, %c1_78, %c0_79, %c0_80] : memref<63x2x8x128xf32, #tpu.memory_space<vmem>>, vector<1x1x8x128xf32>
    %102 = vector.shape_cast %101 : vector<1x1x8x128xf32> to vector<8x128xf32>
    %103 = arith.mulf %96, %102 : vector<8x128xf32>
    %104 = arith.addf %95, %103 : vector<8x128xf32>
    %105 = vector.extract_strided_slice %86 {offsets = [0, 2], sizes = [8, 128], strides = [1, 1]} : vector<8x256xf32> to vector<8x128xf32>
    %c11 = arith.constant 11 : index
    %c0_81 = arith.constant 0 : index
    %c0_82 = arith.constant 0 : index
    %c0_83 = arith.constant 0 : index
    %106 = vector.load %arg2[%c11, %c0_81, %c0_82, %c0_83] : memref<63x2x8x128xf32, #tpu.memory_space<vmem>>, vector<1x1x8x128xf32>
    %107 = vector.shape_cast %106 : vector<1x1x8x128xf32> to vector<8x128xf32>
    %108 = arith.mulf %105, %107 : vector<8x128xf32>
    %109 = arith.addf %100, %108 : vector<8x128xf32>
    %c11_84 = arith.constant 11 : index
    %c1_85 = arith.constant 1 : index
    %c0_86 = arith.constant 0 : index
    %c0_87 = arith.constant 0 : index
    %110 = vector.load %arg2[%c11_84, %c1_85, %c0_86, %c0_87] : memref<63x2x8x128xf32, #tpu.memory_space<vmem>>, vector<1x1x8x128xf32>
    %111 = vector.shape_cast %110 : vector<1x1x8x128xf32> to vector<8x128xf32>
    %112 = arith.mulf %105, %111 : vector<8x128xf32>
    %113 = arith.addf %104, %112 : vector<8x128xf32>
    %114 = vector.extract_strided_slice %86 {offsets = [0, 3], sizes = [8, 128], strides = [1, 1]} : vector<8x256xf32> to vector<8x128xf32>
    %c12 = arith.constant 12 : index
    %c0_88 = arith.constant 0 : index
    %c0_89 = arith.constant 0 : index
    %c0_90 = arith.constant 0 : index
    %115 = vector.load %arg2[%c12, %c0_88, %c0_89, %c0_90] : memref<63x2x8x128xf32, #tpu.memory_space<vmem>>, vector<1x1x8x128xf32>
    %116 = vector.shape_cast %115 : vector<1x1x8x128xf32> to vector<8x128xf32>
    %117 = arith.mulf %114, %116 : vector<8x128xf32>
    %118 = arith.addf %109, %117 : vector<8x128xf32>
    %c12_91 = arith.constant 12 : index
    %c1_92 = arith.constant 1 : index
    %c0_93 = arith.constant 0 : index
    %c0_94 = arith.constant 0 : index
    %119 = vector.load %arg2[%c12_91, %c1_92, %c0_93, %c0_94] : memref<63x2x8x128xf32, #tpu.memory_space<vmem>>, vector<1x1x8x128xf32>
    %120 = vector.shape_cast %119 : vector<1x1x8x128xf32> to vector<8x128xf32>
    %121 = arith.mulf %114, %120 : vector<8x128xf32>
    %122 = arith.addf %113, %121 : vector<8x128xf32>
    %123 = vector.extract_strided_slice %86 {offsets = [0, 4], sizes = [8, 128], strides = [1, 1]} : vector<8x256xf32> to vector<8x128xf32>
    %c13 = arith.constant 13 : index
    %c0_95 = arith.constant 0 : index
    %c0_96 = arith.constant 0 : index
    %c0_97 = arith.constant 0 : index
    %124 = vector.load %arg2[%c13, %c0_95, %c0_96, %c0_97] : memref<63x2x8x128xf32, #tpu.memory_space<vmem>>, vector<1x1x8x128xf32>
    %125 = vector.shape_cast %124 : vector<1x1x8x128xf32> to vector<8x128xf32>
    %126 = arith.mulf %123, %125 : vector<8x128xf32>
    %127 = arith.addf %118, %126 : vector<8x128xf32>
    %c13_98 = arith.constant 13 : index
    %c1_99 = arith.constant 1 : index
    %c0_100 = arith.constant 0 : index
    %c0_101 = arith.constant 0 : index
    %128 = vector.load %arg2[%c13_98, %c1_99, %c0_100, %c0_101] : memref<63x2x8x128xf32, #tpu.memory_space<vmem>>, vector<1x1x8x128xf32>
    %129 = vector.shape_cast %128 : vector<1x1x8x128xf32> to vector<8x128xf32>
    %130 = arith.mulf %123, %129 : vector<8x128xf32>
    %131 = arith.addf %122, %130 : vector<8x128xf32>
    %132 = vector.extract_strided_slice %86 {offsets = [0, 5], sizes = [8, 128], strides = [1, 1]} : vector<8x256xf32> to vector<8x128xf32>
    %c14 = arith.constant 14 : index
    %c0_102 = arith.constant 0 : index
    %c0_103 = arith.constant 0 : index
    %c0_104 = arith.constant 0 : index
    %133 = vector.load %arg2[%c14, %c0_102, %c0_103, %c0_104] : memref<63x2x8x128xf32, #tpu.memory_space<vmem>>, vector<1x1x8x128xf32>
    %134 = vector.shape_cast %133 : vector<1x1x8x128xf32> to vector<8x128xf32>
    %135 = arith.mulf %132, %134 : vector<8x128xf32>
    %136 = arith.addf %127, %135 : vector<8x128xf32>
    %c14_105 = arith.constant 14 : index
    %c1_106 = arith.constant 1 : index
    %c0_107 = arith.constant 0 : index
    %c0_108 = arith.constant 0 : index
    %137 = vector.load %arg2[%c14_105, %c1_106, %c0_107, %c0_108] : memref<63x2x8x128xf32, #tpu.memory_space<vmem>>, vector<1x1x8x128xf32>
    %138 = vector.shape_cast %137 : vector<1x1x8x128xf32> to vector<8x128xf32>
    %139 = arith.mulf %132, %138 : vector<8x128xf32>
    %140 = arith.addf %131, %139 : vector<8x128xf32>
    %141 = vector.extract_strided_slice %86 {offsets = [0, 6], sizes = [8, 128], strides = [1, 1]} : vector<8x256xf32> to vector<8x128xf32>
    %c15 = arith.constant 15 : index
    %c0_109 = arith.constant 0 : index
    %c0_110 = arith.constant 0 : index
    %c0_111 = arith.constant 0 : index
    %142 = vector.load %arg2[%c15, %c0_109, %c0_110, %c0_111] : memref<63x2x8x128xf32, #tpu.memory_space<vmem>>, vector<1x1x8x128xf32>
    %143 = vector.shape_cast %142 : vector<1x1x8x128xf32> to vector<8x128xf32>
    %144 = arith.mulf %141, %143 : vector<8x128xf32>
    %145 = arith.addf %136, %144 : vector<8x128xf32>
    %c15_112 = arith.constant 15 : index
    %c1_113 = arith.constant 1 : index
    %c0_114 = arith.constant 0 : index
    %c0_115 = arith.constant 0 : index
    %146 = vector.load %arg2[%c15_112, %c1_113, %c0_114, %c0_115] : memref<63x2x8x128xf32, #tpu.memory_space<vmem>>, vector<1x1x8x128xf32>
    %147 = vector.shape_cast %146 : vector<1x1x8x128xf32> to vector<8x128xf32>
    %148 = arith.mulf %141, %147 : vector<8x128xf32>
    %149 = arith.addf %140, %148 : vector<8x128xf32>
    %150 = vector.extract_strided_slice %86 {offsets = [0, 7], sizes = [8, 128], strides = [1, 1]} : vector<8x256xf32> to vector<8x128xf32>
    %c16 = arith.constant 16 : index
    %c0_116 = arith.constant 0 : index
    %c0_117 = arith.constant 0 : index
    %c0_118 = arith.constant 0 : index
    %151 = vector.load %arg2[%c16, %c0_116, %c0_117, %c0_118] : memref<63x2x8x128xf32, #tpu.memory_space<vmem>>, vector<1x1x8x128xf32>
    %152 = vector.shape_cast %151 : vector<1x1x8x128xf32> to vector<8x128xf32>
    %153 = arith.mulf %150, %152 : vector<8x128xf32>
    %154 = arith.addf %145, %153 : vector<8x128xf32>
    %c16_119 = arith.constant 16 : index
    %c1_120 = arith.constant 1 : index
    %c0_121 = arith.constant 0 : index
    %c0_122 = arith.constant 0 : index
    %155 = vector.load %arg2[%c16_119, %c1_120, %c0_121, %c0_122] : memref<63x2x8x128xf32, #tpu.memory_space<vmem>>, vector<1x1x8x128xf32>
    %156 = vector.shape_cast %155 : vector<1x1x8x128xf32> to vector<8x128xf32>
    %157 = arith.mulf %150, %156 : vector<8x128xf32>
    %158 = arith.addf %149, %157 : vector<8x128xf32>
    %159 = vector.extract_strided_slice %86 {offsets = [0, 8], sizes = [8, 128], strides = [1, 1]} : vector<8x256xf32> to vector<8x128xf32>
    %c17 = arith.constant 17 : index
    %c0_123 = arith.constant 0 : index
    %c0_124 = arith.constant 0 : index
    %c0_125 = arith.constant 0 : index
    %160 = vector.load %arg2[%c17, %c0_123, %c0_124, %c0_125] : memref<63x2x8x128xf32, #tpu.memory_space<vmem>>, vector<1x1x8x128xf32>
    %161 = vector.shape_cast %160 : vector<1x1x8x128xf32> to vector<8x128xf32>
    %162 = arith.mulf %159, %161 : vector<8x128xf32>
    %163 = arith.addf %154, %162 : vector<8x128xf32>
    %c17_126 = arith.constant 17 : index
    %c1_127 = arith.constant 1 : index
    %c0_128 = arith.constant 0 : index
    %c0_129 = arith.constant 0 : index
    %164 = vector.load %arg2[%c17_126, %c1_127, %c0_128, %c0_129] : memref<63x2x8x128xf32, #tpu.memory_space<vmem>>, vector<1x1x8x128xf32>
    %165 = vector.shape_cast %164 : vector<1x1x8x128xf32> to vector<8x128xf32>
    %166 = arith.mulf %159, %165 : vector<8x128xf32>
    %167 = arith.addf %158, %166 : vector<8x128xf32>
    %168 = vector.extract_strided_slice %1 {offsets = [2, 0], sizes = [8, 256], strides = [1, 1]} : vector<16x256xf32> to vector<8x256xf32>
    %169 = vector.extract_strided_slice %168 {offsets = [0, 0], sizes = [8, 128], strides = [1, 1]} : vector<8x256xf32> to vector<8x128xf32>
    %c18 = arith.constant 18 : index
    %c0_130 = arith.constant 0 : index
    %c0_131 = arith.constant 0 : index
    %c0_132 = arith.constant 0 : index
    %170 = vector.load %arg2[%c18, %c0_130, %c0_131, %c0_132] : memref<63x2x8x128xf32, #tpu.memory_space<vmem>>, vector<1x1x8x128xf32>
    %171 = vector.shape_cast %170 : vector<1x1x8x128xf32> to vector<8x128xf32>
    %172 = arith.mulf %169, %171 : vector<8x128xf32>
    %173 = arith.addf %163, %172 : vector<8x128xf32>
    %c18_133 = arith.constant 18 : index
    %c1_134 = arith.constant 1 : index
    %c0_135 = arith.constant 0 : index
    %c0_136 = arith.constant 0 : index
    %174 = vector.load %arg2[%c18_133, %c1_134, %c0_135, %c0_136] : memref<63x2x8x128xf32, #tpu.memory_space<vmem>>, vector<1x1x8x128xf32>
    %175 = vector.shape_cast %174 : vector<1x1x8x128xf32> to vector<8x128xf32>
    %176 = arith.mulf %169, %175 : vector<8x128xf32>
    %177 = arith.addf %167, %176 : vector<8x128xf32>
    %178 = vector.extract_strided_slice %168 {offsets = [0, 1], sizes = [8, 128], strides = [1, 1]} : vector<8x256xf32> to vector<8x128xf32>
    %c19 = arith.constant 19 : index
    %c0_137 = arith.constant 0 : index
    %c0_138 = arith.constant 0 : index
    %c0_139 = arith.constant 0 : index
    %179 = vector.load %arg2[%c19, %c0_137, %c0_138, %c0_139] : memref<63x2x8x128xf32, #tpu.memory_space<vmem>>, vector<1x1x8x128xf32>
    %180 = vector.shape_cast %179 : vector<1x1x8x128xf32> to vector<8x128xf32>
    %181 = arith.mulf %178, %180 : vector<8x128xf32>
    %182 = arith.addf %173, %181 : vector<8x128xf32>
    %c19_140 = arith.constant 19 : index
    %c1_141 = arith.constant 1 : index
    %c0_142 = arith.constant 0 : index
    %c0_143 = arith.constant 0 : index
    %183 = vector.load %arg2[%c19_140, %c1_141, %c0_142, %c0_143] : memref<63x2x8x128xf32, #tpu.memory_space<vmem>>, vector<1x1x8x128xf32>
    %184 = vector.shape_cast %183 : vector<1x1x8x128xf32> to vector<8x128xf32>
    %185 = arith.mulf %178, %184 : vector<8x128xf32>
    %186 = arith.addf %177, %185 : vector<8x128xf32>
    %187 = vector.extract_strided_slice %168 {offsets = [0, 2], sizes = [8, 128], strides = [1, 1]} : vector<8x256xf32> to vector<8x128xf32>
    %c20 = arith.constant 20 : index
    %c0_144 = arith.constant 0 : index
    %c0_145 = arith.constant 0 : index
    %c0_146 = arith.constant 0 : index
    %188 = vector.load %arg2[%c20, %c0_144, %c0_145, %c0_146] : memref<63x2x8x128xf32, #tpu.memory_space<vmem>>, vector<1x1x8x128xf32>
    %189 = vector.shape_cast %188 : vector<1x1x8x128xf32> to vector<8x128xf32>
    %190 = arith.mulf %187, %189 : vector<8x128xf32>
    %191 = arith.addf %182, %190 : vector<8x128xf32>
    %c20_147 = arith.constant 20 : index
    %c1_148 = arith.constant 1 : index
    %c0_149 = arith.constant 0 : index
    %c0_150 = arith.constant 0 : index
    %192 = vector.load %arg2[%c20_147, %c1_148, %c0_149, %c0_150] : memref<63x2x8x128xf32, #tpu.memory_space<vmem>>, vector<1x1x8x128xf32>
    %193 = vector.shape_cast %192 : vector<1x1x8x128xf32> to vector<8x128xf32>
    %194 = arith.mulf %187, %193 : vector<8x128xf32>
    %195 = arith.addf %186, %194 : vector<8x128xf32>
    %196 = vector.extract_strided_slice %168 {offsets = [0, 3], sizes = [8, 128], strides = [1, 1]} : vector<8x256xf32> to vector<8x128xf32>
    %c21 = arith.constant 21 : index
    %c0_151 = arith.constant 0 : index
    %c0_152 = arith.constant 0 : index
    %c0_153 = arith.constant 0 : index
    %197 = vector.load %arg2[%c21, %c0_151, %c0_152, %c0_153] : memref<63x2x8x128xf32, #tpu.memory_space<vmem>>, vector<1x1x8x128xf32>
    %198 = vector.shape_cast %197 : vector<1x1x8x128xf32> to vector<8x128xf32>
    %199 = arith.mulf %196, %198 : vector<8x128xf32>
    %200 = arith.addf %191, %199 : vector<8x128xf32>
    %c21_154 = arith.constant 21 : index
    %c1_155 = arith.constant 1 : index
    %c0_156 = arith.constant 0 : index
    %c0_157 = arith.constant 0 : index
    %201 = vector.load %arg2[%c21_154, %c1_155, %c0_156, %c0_157] : memref<63x2x8x128xf32, #tpu.memory_space<vmem>>, vector<1x1x8x128xf32>
    %202 = vector.shape_cast %201 : vector<1x1x8x128xf32> to vector<8x128xf32>
    %203 = arith.mulf %196, %202 : vector<8x128xf32>
    %204 = arith.addf %195, %203 : vector<8x128xf32>
    %205 = vector.extract_strided_slice %168 {offsets = [0, 4], sizes = [8, 128], strides = [1, 1]} : vector<8x256xf32> to vector<8x128xf32>
    %c22 = arith.constant 22 : index
    %c0_158 = arith.constant 0 : index
    %c0_159 = arith.constant 0 : index
    %c0_160 = arith.constant 0 : index
    %206 = vector.load %arg2[%c22, %c0_158, %c0_159, %c0_160] : memref<63x2x8x128xf32, #tpu.memory_space<vmem>>, vector<1x1x8x128xf32>
    %207 = vector.shape_cast %206 : vector<1x1x8x128xf32> to vector<8x128xf32>
    %208 = arith.mulf %205, %207 : vector<8x128xf32>
    %209 = arith.addf %200, %208 : vector<8x128xf32>
    %c22_161 = arith.constant 22 : index
    %c1_162 = arith.constant 1 : index
    %c0_163 = arith.constant 0 : index
    %c0_164 = arith.constant 0 : index
    %210 = vector.load %arg2[%c22_161, %c1_162, %c0_163, %c0_164] : memref<63x2x8x128xf32, #tpu.memory_space<vmem>>, vector<1x1x8x128xf32>
    %211 = vector.shape_cast %210 : vector<1x1x8x128xf32> to vector<8x128xf32>
    %212 = arith.mulf %205, %211 : vector<8x128xf32>
    %213 = arith.addf %204, %212 : vector<8x128xf32>
    %214 = vector.extract_strided_slice %168 {offsets = [0, 5], sizes = [8, 128], strides = [1, 1]} : vector<8x256xf32> to vector<8x128xf32>
    %c23 = arith.constant 23 : index
    %c0_165 = arith.constant 0 : index
    %c0_166 = arith.constant 0 : index
    %c0_167 = arith.constant 0 : index
    %215 = vector.load %arg2[%c23, %c0_165, %c0_166, %c0_167] : memref<63x2x8x128xf32, #tpu.memory_space<vmem>>, vector<1x1x8x128xf32>
    %216 = vector.shape_cast %215 : vector<1x1x8x128xf32> to vector<8x128xf32>
    %217 = arith.mulf %214, %216 : vector<8x128xf32>
    %218 = arith.addf %209, %217 : vector<8x128xf32>
    %c23_168 = arith.constant 23 : index
    %c1_169 = arith.constant 1 : index
    %c0_170 = arith.constant 0 : index
    %c0_171 = arith.constant 0 : index
    %219 = vector.load %arg2[%c23_168, %c1_169, %c0_170, %c0_171] : memref<63x2x8x128xf32, #tpu.memory_space<vmem>>, vector<1x1x8x128xf32>
    %220 = vector.shape_cast %219 : vector<1x1x8x128xf32> to vector<8x128xf32>
    %221 = arith.mulf %214, %220 : vector<8x128xf32>
    %222 = arith.addf %213, %221 : vector<8x128xf32>
    %223 = vector.extract_strided_slice %168 {offsets = [0, 6], sizes = [8, 128], strides = [1, 1]} : vector<8x256xf32> to vector<8x128xf32>
    %c24 = arith.constant 24 : index
    %c0_172 = arith.constant 0 : index
    %c0_173 = arith.constant 0 : index
    %c0_174 = arith.constant 0 : index
    %224 = vector.load %arg2[%c24, %c0_172, %c0_173, %c0_174] : memref<63x2x8x128xf32, #tpu.memory_space<vmem>>, vector<1x1x8x128xf32>
    %225 = vector.shape_cast %224 : vector<1x1x8x128xf32> to vector<8x128xf32>
    %226 = arith.mulf %223, %225 : vector<8x128xf32>
    %227 = arith.addf %218, %226 : vector<8x128xf32>
    %c24_175 = arith.constant 24 : index
    %c1_176 = arith.constant 1 : index
    %c0_177 = arith.constant 0 : index
    %c0_178 = arith.constant 0 : index
    %228 = vector.load %arg2[%c24_175, %c1_176, %c0_177, %c0_178] : memref<63x2x8x128xf32, #tpu.memory_space<vmem>>, vector<1x1x8x128xf32>
    %229 = vector.shape_cast %228 : vector<1x1x8x128xf32> to vector<8x128xf32>
    %230 = arith.mulf %223, %229 : vector<8x128xf32>
    %231 = arith.addf %222, %230 : vector<8x128xf32>
    %232 = vector.extract_strided_slice %168 {offsets = [0, 7], sizes = [8, 128], strides = [1, 1]} : vector<8x256xf32> to vector<8x128xf32>
    %c25 = arith.constant 25 : index
    %c0_179 = arith.constant 0 : index
    %c0_180 = arith.constant 0 : index
    %c0_181 = arith.constant 0 : index
    %233 = vector.load %arg2[%c25, %c0_179, %c0_180, %c0_181] : memref<63x2x8x128xf32, #tpu.memory_space<vmem>>, vector<1x1x8x128xf32>
    %234 = vector.shape_cast %233 : vector<1x1x8x128xf32> to vector<8x128xf32>
    %235 = arith.mulf %232, %234 : vector<8x128xf32>
    %236 = arith.addf %227, %235 : vector<8x128xf32>
    %c25_182 = arith.constant 25 : index
    %c1_183 = arith.constant 1 : index
    %c0_184 = arith.constant 0 : index
    %c0_185 = arith.constant 0 : index
    %237 = vector.load %arg2[%c25_182, %c1_183, %c0_184, %c0_185] : memref<63x2x8x128xf32, #tpu.memory_space<vmem>>, vector<1x1x8x128xf32>
    %238 = vector.shape_cast %237 : vector<1x1x8x128xf32> to vector<8x128xf32>
    %239 = arith.mulf %232, %238 : vector<8x128xf32>
    %240 = arith.addf %231, %239 : vector<8x128xf32>
    %241 = vector.extract_strided_slice %168 {offsets = [0, 8], sizes = [8, 128], strides = [1, 1]} : vector<8x256xf32> to vector<8x128xf32>
    %c26 = arith.constant 26 : index
    %c0_186 = arith.constant 0 : index
    %c0_187 = arith.constant 0 : index
    %c0_188 = arith.constant 0 : index
    %242 = vector.load %arg2[%c26, %c0_186, %c0_187, %c0_188] : memref<63x2x8x128xf32, #tpu.memory_space<vmem>>, vector<1x1x8x128xf32>
    %243 = vector.shape_cast %242 : vector<1x1x8x128xf32> to vector<8x128xf32>
    %244 = arith.mulf %241, %243 : vector<8x128xf32>
    %245 = arith.addf %236, %244 : vector<8x128xf32>
    %c26_189 = arith.constant 26 : index
    %c1_190 = arith.constant 1 : index
    %c0_191 = arith.constant 0 : index
    %c0_192 = arith.constant 0 : index
    %246 = vector.load %arg2[%c26_189, %c1_190, %c0_191, %c0_192] : memref<63x2x8x128xf32, #tpu.memory_space<vmem>>, vector<1x1x8x128xf32>
    %247 = vector.shape_cast %246 : vector<1x1x8x128xf32> to vector<8x128xf32>
    %248 = arith.mulf %241, %247 : vector<8x128xf32>
    %249 = arith.addf %240, %248 : vector<8x128xf32>
    %250 = vector.extract_strided_slice %1 {offsets = [3, 0], sizes = [8, 256], strides = [1, 1]} : vector<16x256xf32> to vector<8x256xf32>
    %251 = vector.extract_strided_slice %250 {offsets = [0, 0], sizes = [8, 128], strides = [1, 1]} : vector<8x256xf32> to vector<8x128xf32>
    %c27 = arith.constant 27 : index
    %c0_193 = arith.constant 0 : index
    %c0_194 = arith.constant 0 : index
    %c0_195 = arith.constant 0 : index
    %252 = vector.load %arg2[%c27, %c0_193, %c0_194, %c0_195] : memref<63x2x8x128xf32, #tpu.memory_space<vmem>>, vector<1x1x8x128xf32>
    %253 = vector.shape_cast %252 : vector<1x1x8x128xf32> to vector<8x128xf32>
    %254 = arith.mulf %251, %253 : vector<8x128xf32>
    %255 = arith.addf %245, %254 : vector<8x128xf32>
    %c27_196 = arith.constant 27 : index
    %c1_197 = arith.constant 1 : index
    %c0_198 = arith.constant 0 : index
    %c0_199 = arith.constant 0 : index
    %256 = vector.load %arg2[%c27_196, %c1_197, %c0_198, %c0_199] : memref<63x2x8x128xf32, #tpu.memory_space<vmem>>, vector<1x1x8x128xf32>
    %257 = vector.shape_cast %256 : vector<1x1x8x128xf32> to vector<8x128xf32>
    %258 = arith.mulf %251, %257 : vector<8x128xf32>
    %259 = arith.addf %249, %258 : vector<8x128xf32>
    %260 = vector.extract_strided_slice %250 {offsets = [0, 1], sizes = [8, 128], strides = [1, 1]} : vector<8x256xf32> to vector<8x128xf32>
    %c28 = arith.constant 28 : index
    %c0_200 = arith.constant 0 : index
    %c0_201 = arith.constant 0 : index
    %c0_202 = arith.constant 0 : index
    %261 = vector.load %arg2[%c28, %c0_200, %c0_201, %c0_202] : memref<63x2x8x128xf32, #tpu.memory_space<vmem>>, vector<1x1x8x128xf32>
    %262 = vector.shape_cast %261 : vector<1x1x8x128xf32> to vector<8x128xf32>
    %263 = arith.mulf %260, %262 : vector<8x128xf32>
    %264 = arith.addf %255, %263 : vector<8x128xf32>
    %c28_203 = arith.constant 28 : index
    %c1_204 = arith.constant 1 : index
    %c0_205 = arith.constant 0 : index
    %c0_206 = arith.constant 0 : index
    %265 = vector.load %arg2[%c28_203, %c1_204, %c0_205, %c0_206] : memref<63x2x8x128xf32, #tpu.memory_space<vmem>>, vector<1x1x8x128xf32>
    %266 = vector.shape_cast %265 : vector<1x1x8x128xf32> to vector<8x128xf32>
    %267 = arith.mulf %260, %266 : vector<8x128xf32>
    %268 = arith.addf %259, %267 : vector<8x128xf32>
    %269 = vector.extract_strided_slice %250 {offsets = [0, 2], sizes = [8, 128], strides = [1, 1]} : vector<8x256xf32> to vector<8x128xf32>
    %c29 = arith.constant 29 : index
    %c0_207 = arith.constant 0 : index
    %c0_208 = arith.constant 0 : index
    %c0_209 = arith.constant 0 : index
    %270 = vector.load %arg2[%c29, %c0_207, %c0_208, %c0_209] : memref<63x2x8x128xf32, #tpu.memory_space<vmem>>, vector<1x1x8x128xf32>
    %271 = vector.shape_cast %270 : vector<1x1x8x128xf32> to vector<8x128xf32>
    %272 = arith.mulf %269, %271 : vector<8x128xf32>
    %273 = arith.addf %264, %272 : vector<8x128xf32>
    %c29_210 = arith.constant 29 : index
    %c1_211 = arith.constant 1 : index
    %c0_212 = arith.constant 0 : index
    %c0_213 = arith.constant 0 : index
    %274 = vector.load %arg2[%c29_210, %c1_211, %c0_212, %c0_213] : memref<63x2x8x128xf32, #tpu.memory_space<vmem>>, vector<1x1x8x128xf32>
    %275 = vector.shape_cast %274 : vector<1x1x8x128xf32> to vector<8x128xf32>
    %276 = arith.mulf %269, %275 : vector<8x128xf32>
    %277 = arith.addf %268, %276 : vector<8x128xf32>
    %278 = vector.extract_strided_slice %250 {offsets = [0, 3], sizes = [8, 128], strides = [1, 1]} : vector<8x256xf32> to vector<8x128xf32>
    %c30 = arith.constant 30 : index
    %c0_214 = arith.constant 0 : index
    %c0_215 = arith.constant 0 : index
    %c0_216 = arith.constant 0 : index
    %279 = vector.load %arg2[%c30, %c0_214, %c0_215, %c0_216] : memref<63x2x8x128xf32, #tpu.memory_space<vmem>>, vector<1x1x8x128xf32>
    %280 = vector.shape_cast %279 : vector<1x1x8x128xf32> to vector<8x128xf32>
    %281 = arith.mulf %278, %280 : vector<8x128xf32>
    %282 = arith.addf %273, %281 : vector<8x128xf32>
    %c30_217 = arith.constant 30 : index
    %c1_218 = arith.constant 1 : index
    %c0_219 = arith.constant 0 : index
    %c0_220 = arith.constant 0 : index
    %283 = vector.load %arg2[%c30_217, %c1_218, %c0_219, %c0_220] : memref<63x2x8x128xf32, #tpu.memory_space<vmem>>, vector<1x1x8x128xf32>
    %284 = vector.shape_cast %283 : vector<1x1x8x128xf32> to vector<8x128xf32>
    %285 = arith.mulf %278, %284 : vector<8x128xf32>
    %286 = arith.addf %277, %285 : vector<8x128xf32>
    %287 = vector.extract_strided_slice %250 {offsets = [0, 4], sizes = [8, 128], strides = [1, 1]} : vector<8x256xf32> to vector<8x128xf32>
    %c31 = arith.constant 31 : index
    %c0_221 = arith.constant 0 : index
    %c0_222 = arith.constant 0 : index
    %c0_223 = arith.constant 0 : index
    %288 = vector.load %arg2[%c31, %c0_221, %c0_222, %c0_223] : memref<63x2x8x128xf32, #tpu.memory_space<vmem>>, vector<1x1x8x128xf32>
    %289 = vector.shape_cast %288 : vector<1x1x8x128xf32> to vector<8x128xf32>
    %290 = arith.mulf %287, %289 : vector<8x128xf32>
    %291 = arith.addf %282, %290 : vector<8x128xf32>
    %c31_224 = arith.constant 31 : index
    %c1_225 = arith.constant 1 : index
    %c0_226 = arith.constant 0 : index
    %c0_227 = arith.constant 0 : index
    %292 = vector.load %arg2[%c31_224, %c1_225, %c0_226, %c0_227] : memref<63x2x8x128xf32, #tpu.memory_space<vmem>>, vector<1x1x8x128xf32>
    %293 = vector.shape_cast %292 : vector<1x1x8x128xf32> to vector<8x128xf32>
    %294 = arith.mulf %287, %293 : vector<8x128xf32>
    %295 = arith.addf %286, %294 : vector<8x128xf32>
    %296 = vector.extract_strided_slice %250 {offsets = [0, 5], sizes = [8, 128], strides = [1, 1]} : vector<8x256xf32> to vector<8x128xf32>
    %c32 = arith.constant 32 : index
    %c0_228 = arith.constant 0 : index
    %c0_229 = arith.constant 0 : index
    %c0_230 = arith.constant 0 : index
    %297 = vector.load %arg2[%c32, %c0_228, %c0_229, %c0_230] : memref<63x2x8x128xf32, #tpu.memory_space<vmem>>, vector<1x1x8x128xf32>
    %298 = vector.shape_cast %297 : vector<1x1x8x128xf32> to vector<8x128xf32>
    %299 = arith.mulf %296, %298 : vector<8x128xf32>
    %300 = arith.addf %291, %299 : vector<8x128xf32>
    %c32_231 = arith.constant 32 : index
    %c1_232 = arith.constant 1 : index
    %c0_233 = arith.constant 0 : index
    %c0_234 = arith.constant 0 : index
    %301 = vector.load %arg2[%c32_231, %c1_232, %c0_233, %c0_234] : memref<63x2x8x128xf32, #tpu.memory_space<vmem>>, vector<1x1x8x128xf32>
    %302 = vector.shape_cast %301 : vector<1x1x8x128xf32> to vector<8x128xf32>
    %303 = arith.mulf %296, %302 : vector<8x128xf32>
    %304 = arith.addf %295, %303 : vector<8x128xf32>
    %305 = vector.extract_strided_slice %250 {offsets = [0, 6], sizes = [8, 128], strides = [1, 1]} : vector<8x256xf32> to vector<8x128xf32>
    %c33 = arith.constant 33 : index
    %c0_235 = arith.constant 0 : index
    %c0_236 = arith.constant 0 : index
    %c0_237 = arith.constant 0 : index
    %306 = vector.load %arg2[%c33, %c0_235, %c0_236, %c0_237] : memref<63x2x8x128xf32, #tpu.memory_space<vmem>>, vector<1x1x8x128xf32>
    %307 = vector.shape_cast %306 : vector<1x1x8x128xf32> to vector<8x128xf32>
    %308 = arith.mulf %305, %307 : vector<8x128xf32>
    %309 = arith.addf %300, %308 : vector<8x128xf32>
    %c33_238 = arith.constant 33 : index
    %c1_239 = arith.constant 1 : index
    %c0_240 = arith.constant 0 : index
    %c0_241 = arith.constant 0 : index
    %310 = vector.load %arg2[%c33_238, %c1_239, %c0_240, %c0_241] : memref<63x2x8x128xf32, #tpu.memory_space<vmem>>, vector<1x1x8x128xf32>
    %311 = vector.shape_cast %310 : vector<1x1x8x128xf32> to vector<8x128xf32>
    %312 = arith.mulf %305, %311 : vector<8x128xf32>
    %313 = arith.addf %304, %312 : vector<8x128xf32>
    %314 = vector.extract_strided_slice %250 {offsets = [0, 7], sizes = [8, 128], strides = [1, 1]} : vector<8x256xf32> to vector<8x128xf32>
    %c34 = arith.constant 34 : index
    %c0_242 = arith.constant 0 : index
    %c0_243 = arith.constant 0 : index
    %c0_244 = arith.constant 0 : index
    %315 = vector.load %arg2[%c34, %c0_242, %c0_243, %c0_244] : memref<63x2x8x128xf32, #tpu.memory_space<vmem>>, vector<1x1x8x128xf32>
    %316 = vector.shape_cast %315 : vector<1x1x8x128xf32> to vector<8x128xf32>
    %317 = arith.mulf %314, %316 : vector<8x128xf32>
    %318 = arith.addf %309, %317 : vector<8x128xf32>
    %c34_245 = arith.constant 34 : index
    %c1_246 = arith.constant 1 : index
    %c0_247 = arith.constant 0 : index
    %c0_248 = arith.constant 0 : index
    %319 = vector.load %arg2[%c34_245, %c1_246, %c0_247, %c0_248] : memref<63x2x8x128xf32, #tpu.memory_space<vmem>>, vector<1x1x8x128xf32>
    %320 = vector.shape_cast %319 : vector<1x1x8x128xf32> to vector<8x128xf32>
    %321 = arith.mulf %314, %320 : vector<8x128xf32>
    %322 = arith.addf %313, %321 : vector<8x128xf32>
    %323 = vector.extract_strided_slice %250 {offsets = [0, 8], sizes = [8, 128], strides = [1, 1]} : vector<8x256xf32> to vector<8x128xf32>
    %c35 = arith.constant 35 : index
    %c0_249 = arith.constant 0 : index
    %c0_250 = arith.constant 0 : index
    %c0_251 = arith.constant 0 : index
    %324 = vector.load %arg2[%c35, %c0_249, %c0_250, %c0_251] : memref<63x2x8x128xf32, #tpu.memory_space<vmem>>, vector<1x1x8x128xf32>
    %325 = vector.shape_cast %324 : vector<1x1x8x128xf32> to vector<8x128xf32>
    %326 = arith.mulf %323, %325 : vector<8x128xf32>
    %327 = arith.addf %318, %326 : vector<8x128xf32>
    %c35_252 = arith.constant 35 : index
    %c1_253 = arith.constant 1 : index
    %c0_254 = arith.constant 0 : index
    %c0_255 = arith.constant 0 : index
    %328 = vector.load %arg2[%c35_252, %c1_253, %c0_254, %c0_255] : memref<63x2x8x128xf32, #tpu.memory_space<vmem>>, vector<1x1x8x128xf32>
    %329 = vector.shape_cast %328 : vector<1x1x8x128xf32> to vector<8x128xf32>
    %330 = arith.mulf %323, %329 : vector<8x128xf32>
    %331 = arith.addf %322, %330 : vector<8x128xf32>
    %332 = vector.extract_strided_slice %1 {offsets = [4, 0], sizes = [8, 256], strides = [1, 1]} : vector<16x256xf32> to vector<8x256xf32>
    %333 = vector.extract_strided_slice %332 {offsets = [0, 0], sizes = [8, 128], strides = [1, 1]} : vector<8x256xf32> to vector<8x128xf32>
    %c36 = arith.constant 36 : index
    %c0_256 = arith.constant 0 : index
    %c0_257 = arith.constant 0 : index
    %c0_258 = arith.constant 0 : index
    %334 = vector.load %arg2[%c36, %c0_256, %c0_257, %c0_258] : memref<63x2x8x128xf32, #tpu.memory_space<vmem>>, vector<1x1x8x128xf32>
    %335 = vector.shape_cast %334 : vector<1x1x8x128xf32> to vector<8x128xf32>
    %336 = arith.mulf %333, %335 : vector<8x128xf32>
    %337 = arith.addf %327, %336 : vector<8x128xf32>
    %c36_259 = arith.constant 36 : index
    %c1_260 = arith.constant 1 : index
    %c0_261 = arith.constant 0 : index
    %c0_262 = arith.constant 0 : index
    %338 = vector.load %arg2[%c36_259, %c1_260, %c0_261, %c0_262] : memref<63x2x8x128xf32, #tpu.memory_space<vmem>>, vector<1x1x8x128xf32>
    %339 = vector.shape_cast %338 : vector<1x1x8x128xf32> to vector<8x128xf32>
    %340 = arith.mulf %333, %339 : vector<8x128xf32>
    %341 = arith.addf %331, %340 : vector<8x128xf32>
    %342 = vector.extract_strided_slice %332 {offsets = [0, 1], sizes = [8, 128], strides = [1, 1]} : vector<8x256xf32> to vector<8x128xf32>
    %c37 = arith.constant 37 : index
    %c0_263 = arith.constant 0 : index
    %c0_264 = arith.constant 0 : index
    %c0_265 = arith.constant 0 : index
    %343 = vector.load %arg2[%c37, %c0_263, %c0_264, %c0_265] : memref<63x2x8x128xf32, #tpu.memory_space<vmem>>, vector<1x1x8x128xf32>
    %344 = vector.shape_cast %343 : vector<1x1x8x128xf32> to vector<8x128xf32>
    %345 = arith.mulf %342, %344 : vector<8x128xf32>
    %346 = arith.addf %337, %345 : vector<8x128xf32>
    %c37_266 = arith.constant 37 : index
    %c1_267 = arith.constant 1 : index
    %c0_268 = arith.constant 0 : index
    %c0_269 = arith.constant 0 : index
    %347 = vector.load %arg2[%c37_266, %c1_267, %c0_268, %c0_269] : memref<63x2x8x128xf32, #tpu.memory_space<vmem>>, vector<1x1x8x128xf32>
    %348 = vector.shape_cast %347 : vector<1x1x8x128xf32> to vector<8x128xf32>
    %349 = arith.mulf %342, %348 : vector<8x128xf32>
    %350 = arith.addf %341, %349 : vector<8x128xf32>
    %351 = vector.extract_strided_slice %332 {offsets = [0, 2], sizes = [8, 128], strides = [1, 1]} : vector<8x256xf32> to vector<8x128xf32>
    %c38 = arith.constant 38 : index
    %c0_270 = arith.constant 0 : index
    %c0_271 = arith.constant 0 : index
    %c0_272 = arith.constant 0 : index
    %352 = vector.load %arg2[%c38, %c0_270, %c0_271, %c0_272] : memref<63x2x8x128xf32, #tpu.memory_space<vmem>>, vector<1x1x8x128xf32>
    %353 = vector.shape_cast %352 : vector<1x1x8x128xf32> to vector<8x128xf32>
    %354 = arith.mulf %351, %353 : vector<8x128xf32>
    %355 = arith.addf %346, %354 : vector<8x128xf32>
    %c38_273 = arith.constant 38 : index
    %c1_274 = arith.constant 1 : index
    %c0_275 = arith.constant 0 : index
    %c0_276 = arith.constant 0 : index
    %356 = vector.load %arg2[%c38_273, %c1_274, %c0_275, %c0_276] : memref<63x2x8x128xf32, #tpu.memory_space<vmem>>, vector<1x1x8x128xf32>
    %357 = vector.shape_cast %356 : vector<1x1x8x128xf32> to vector<8x128xf32>
    %358 = arith.mulf %351, %357 : vector<8x128xf32>
    %359 = arith.addf %350, %358 : vector<8x128xf32>
    %360 = vector.extract_strided_slice %332 {offsets = [0, 3], sizes = [8, 128], strides = [1, 1]} : vector<8x256xf32> to vector<8x128xf32>
    %c39 = arith.constant 39 : index
    %c0_277 = arith.constant 0 : index
    %c0_278 = arith.constant 0 : index
    %c0_279 = arith.constant 0 : index
    %361 = vector.load %arg2[%c39, %c0_277, %c0_278, %c0_279] : memref<63x2x8x128xf32, #tpu.memory_space<vmem>>, vector<1x1x8x128xf32>
    %362 = vector.shape_cast %361 : vector<1x1x8x128xf32> to vector<8x128xf32>
    %363 = arith.mulf %360, %362 : vector<8x128xf32>
    %364 = arith.addf %355, %363 : vector<8x128xf32>
    %c39_280 = arith.constant 39 : index
    %c1_281 = arith.constant 1 : index
    %c0_282 = arith.constant 0 : index
    %c0_283 = arith.constant 0 : index
    %365 = vector.load %arg2[%c39_280, %c1_281, %c0_282, %c0_283] : memref<63x2x8x128xf32, #tpu.memory_space<vmem>>, vector<1x1x8x128xf32>
    %366 = vector.shape_cast %365 : vector<1x1x8x128xf32> to vector<8x128xf32>
    %367 = arith.mulf %360, %366 : vector<8x128xf32>
    %368 = arith.addf %359, %367 : vector<8x128xf32>
    %369 = vector.extract_strided_slice %332 {offsets = [0, 4], sizes = [8, 128], strides = [1, 1]} : vector<8x256xf32> to vector<8x128xf32>
    %c40 = arith.constant 40 : index
    %c0_284 = arith.constant 0 : index
    %c0_285 = arith.constant 0 : index
    %c0_286 = arith.constant 0 : index
    %370 = vector.load %arg2[%c40, %c0_284, %c0_285, %c0_286] : memref<63x2x8x128xf32, #tpu.memory_space<vmem>>, vector<1x1x8x128xf32>
    %371 = vector.shape_cast %370 : vector<1x1x8x128xf32> to vector<8x128xf32>
    %372 = arith.mulf %369, %371 : vector<8x128xf32>
    %373 = arith.addf %364, %372 : vector<8x128xf32>
    %c40_287 = arith.constant 40 : index
    %c1_288 = arith.constant 1 : index
    %c0_289 = arith.constant 0 : index
    %c0_290 = arith.constant 0 : index
    %374 = vector.load %arg2[%c40_287, %c1_288, %c0_289, %c0_290] : memref<63x2x8x128xf32, #tpu.memory_space<vmem>>, vector<1x1x8x128xf32>
    %375 = vector.shape_cast %374 : vector<1x1x8x128xf32> to vector<8x128xf32>
    %376 = arith.mulf %369, %375 : vector<8x128xf32>
    %377 = arith.addf %368, %376 : vector<8x128xf32>
    %378 = vector.extract_strided_slice %332 {offsets = [0, 5], sizes = [8, 128], strides = [1, 1]} : vector<8x256xf32> to vector<8x128xf32>
    %c41 = arith.constant 41 : index
    %c0_291 = arith.constant 0 : index
    %c0_292 = arith.constant 0 : index
    %c0_293 = arith.constant 0 : index
    %379 = vector.load %arg2[%c41, %c0_291, %c0_292, %c0_293] : memref<63x2x8x128xf32, #tpu.memory_space<vmem>>, vector<1x1x8x128xf32>
    %380 = vector.shape_cast %379 : vector<1x1x8x128xf32> to vector<8x128xf32>
    %381 = arith.mulf %378, %380 : vector<8x128xf32>
    %382 = arith.addf %373, %381 : vector<8x128xf32>
    %c41_294 = arith.constant 41 : index
    %c1_295 = arith.constant 1 : index
    %c0_296 = arith.constant 0 : index
    %c0_297 = arith.constant 0 : index
    %383 = vector.load %arg2[%c41_294, %c1_295, %c0_296, %c0_297] : memref<63x2x8x128xf32, #tpu.memory_space<vmem>>, vector<1x1x8x128xf32>
    %384 = vector.shape_cast %383 : vector<1x1x8x128xf32> to vector<8x128xf32>
    %385 = arith.mulf %378, %384 : vector<8x128xf32>
    %386 = arith.addf %377, %385 : vector<8x128xf32>
    %387 = vector.extract_strided_slice %332 {offsets = [0, 6], sizes = [8, 128], strides = [1, 1]} : vector<8x256xf32> to vector<8x128xf32>
    %c42 = arith.constant 42 : index
    %c0_298 = arith.constant 0 : index
    %c0_299 = arith.constant 0 : index
    %c0_300 = arith.constant 0 : index
    %388 = vector.load %arg2[%c42, %c0_298, %c0_299, %c0_300] : memref<63x2x8x128xf32, #tpu.memory_space<vmem>>, vector<1x1x8x128xf32>
    %389 = vector.shape_cast %388 : vector<1x1x8x128xf32> to vector<8x128xf32>
    %390 = arith.mulf %387, %389 : vector<8x128xf32>
    %391 = arith.addf %382, %390 : vector<8x128xf32>
    %c42_301 = arith.constant 42 : index
    %c1_302 = arith.constant 1 : index
    %c0_303 = arith.constant 0 : index
    %c0_304 = arith.constant 0 : index
    %392 = vector.load %arg2[%c42_301, %c1_302, %c0_303, %c0_304] : memref<63x2x8x128xf32, #tpu.memory_space<vmem>>, vector<1x1x8x128xf32>
    %393 = vector.shape_cast %392 : vector<1x1x8x128xf32> to vector<8x128xf32>
    %394 = arith.mulf %387, %393 : vector<8x128xf32>
    %395 = arith.addf %386, %394 : vector<8x128xf32>
    %396 = vector.extract_strided_slice %332 {offsets = [0, 7], sizes = [8, 128], strides = [1, 1]} : vector<8x256xf32> to vector<8x128xf32>
    %c43 = arith.constant 43 : index
    %c0_305 = arith.constant 0 : index
    %c0_306 = arith.constant 0 : index
    %c0_307 = arith.constant 0 : index
    %397 = vector.load %arg2[%c43, %c0_305, %c0_306, %c0_307] : memref<63x2x8x128xf32, #tpu.memory_space<vmem>>, vector<1x1x8x128xf32>
    %398 = vector.shape_cast %397 : vector<1x1x8x128xf32> to vector<8x128xf32>
    %399 = arith.mulf %396, %398 : vector<8x128xf32>
    %400 = arith.addf %391, %399 : vector<8x128xf32>
    %c43_308 = arith.constant 43 : index
    %c1_309 = arith.constant 1 : index
    %c0_310 = arith.constant 0 : index
    %c0_311 = arith.constant 0 : index
    %401 = vector.load %arg2[%c43_308, %c1_309, %c0_310, %c0_311] : memref<63x2x8x128xf32, #tpu.memory_space<vmem>>, vector<1x1x8x128xf32>
    %402 = vector.shape_cast %401 : vector<1x1x8x128xf32> to vector<8x128xf32>
    %403 = arith.mulf %396, %402 : vector<8x128xf32>
    %404 = arith.addf %395, %403 : vector<8x128xf32>
    %405 = vector.extract_strided_slice %332 {offsets = [0, 8], sizes = [8, 128], strides = [1, 1]} : vector<8x256xf32> to vector<8x128xf32>
    %c44 = arith.constant 44 : index
    %c0_312 = arith.constant 0 : index
    %c0_313 = arith.constant 0 : index
    %c0_314 = arith.constant 0 : index
    %406 = vector.load %arg2[%c44, %c0_312, %c0_313, %c0_314] : memref<63x2x8x128xf32, #tpu.memory_space<vmem>>, vector<1x1x8x128xf32>
    %407 = vector.shape_cast %406 : vector<1x1x8x128xf32> to vector<8x128xf32>
    %408 = arith.mulf %405, %407 : vector<8x128xf32>
    %409 = arith.addf %400, %408 : vector<8x128xf32>
    %c44_315 = arith.constant 44 : index
    %c1_316 = arith.constant 1 : index
    %c0_317 = arith.constant 0 : index
    %c0_318 = arith.constant 0 : index
    %410 = vector.load %arg2[%c44_315, %c1_316, %c0_317, %c0_318] : memref<63x2x8x128xf32, #tpu.memory_space<vmem>>, vector<1x1x8x128xf32>
    %411 = vector.shape_cast %410 : vector<1x1x8x128xf32> to vector<8x128xf32>
    %412 = arith.mulf %405, %411 : vector<8x128xf32>
    %413 = arith.addf %404, %412 : vector<8x128xf32>
    %414 = vector.extract_strided_slice %1 {offsets = [5, 0], sizes = [8, 256], strides = [1, 1]} : vector<16x256xf32> to vector<8x256xf32>
    %415 = vector.extract_strided_slice %414 {offsets = [0, 0], sizes = [8, 128], strides = [1, 1]} : vector<8x256xf32> to vector<8x128xf32>
    %c45 = arith.constant 45 : index
    %c0_319 = arith.constant 0 : index
    %c0_320 = arith.constant 0 : index
    %c0_321 = arith.constant 0 : index
    %416 = vector.load %arg2[%c45, %c0_319, %c0_320, %c0_321] : memref<63x2x8x128xf32, #tpu.memory_space<vmem>>, vector<1x1x8x128xf32>
    %417 = vector.shape_cast %416 : vector<1x1x8x128xf32> to vector<8x128xf32>
    %418 = arith.mulf %415, %417 : vector<8x128xf32>
    %419 = arith.addf %409, %418 : vector<8x128xf32>
    %c45_322 = arith.constant 45 : index
    %c1_323 = arith.constant 1 : index
    %c0_324 = arith.constant 0 : index
    %c0_325 = arith.constant 0 : index
    %420 = vector.load %arg2[%c45_322, %c1_323, %c0_324, %c0_325] : memref<63x2x8x128xf32, #tpu.memory_space<vmem>>, vector<1x1x8x128xf32>
    %421 = vector.shape_cast %420 : vector<1x1x8x128xf32> to vector<8x128xf32>
    %422 = arith.mulf %415, %421 : vector<8x128xf32>
    %423 = arith.addf %413, %422 : vector<8x128xf32>
    %424 = vector.extract_strided_slice %414 {offsets = [0, 1], sizes = [8, 128], strides = [1, 1]} : vector<8x256xf32> to vector<8x128xf32>
    %c46 = arith.constant 46 : index
    %c0_326 = arith.constant 0 : index
    %c0_327 = arith.constant 0 : index
    %c0_328 = arith.constant 0 : index
    %425 = vector.load %arg2[%c46, %c0_326, %c0_327, %c0_328] : memref<63x2x8x128xf32, #tpu.memory_space<vmem>>, vector<1x1x8x128xf32>
    %426 = vector.shape_cast %425 : vector<1x1x8x128xf32> to vector<8x128xf32>
    %427 = arith.mulf %424, %426 : vector<8x128xf32>
    %428 = arith.addf %419, %427 : vector<8x128xf32>
    %c46_329 = arith.constant 46 : index
    %c1_330 = arith.constant 1 : index
    %c0_331 = arith.constant 0 : index
    %c0_332 = arith.constant 0 : index
    %429 = vector.load %arg2[%c46_329, %c1_330, %c0_331, %c0_332] : memref<63x2x8x128xf32, #tpu.memory_space<vmem>>, vector<1x1x8x128xf32>
    %430 = vector.shape_cast %429 : vector<1x1x8x128xf32> to vector<8x128xf32>
    %431 = arith.mulf %424, %430 : vector<8x128xf32>
    %432 = arith.addf %423, %431 : vector<8x128xf32>
    %433 = vector.extract_strided_slice %414 {offsets = [0, 2], sizes = [8, 128], strides = [1, 1]} : vector<8x256xf32> to vector<8x128xf32>
    %c47 = arith.constant 47 : index
    %c0_333 = arith.constant 0 : index
    %c0_334 = arith.constant 0 : index
    %c0_335 = arith.constant 0 : index
    %434 = vector.load %arg2[%c47, %c0_333, %c0_334, %c0_335] : memref<63x2x8x128xf32, #tpu.memory_space<vmem>>, vector<1x1x8x128xf32>
    %435 = vector.shape_cast %434 : vector<1x1x8x128xf32> to vector<8x128xf32>
    %436 = arith.mulf %433, %435 : vector<8x128xf32>
    %437 = arith.addf %428, %436 : vector<8x128xf32>
    %c47_336 = arith.constant 47 : index
    %c1_337 = arith.constant 1 : index
    %c0_338 = arith.constant 0 : index
    %c0_339 = arith.constant 0 : index
    %438 = vector.load %arg2[%c47_336, %c1_337, %c0_338, %c0_339] : memref<63x2x8x128xf32, #tpu.memory_space<vmem>>, vector<1x1x8x128xf32>
    %439 = vector.shape_cast %438 : vector<1x1x8x128xf32> to vector<8x128xf32>
    %440 = arith.mulf %433, %439 : vector<8x128xf32>
    %441 = arith.addf %432, %440 : vector<8x128xf32>
    %442 = vector.extract_strided_slice %414 {offsets = [0, 3], sizes = [8, 128], strides = [1, 1]} : vector<8x256xf32> to vector<8x128xf32>
    %c48 = arith.constant 48 : index
    %c0_340 = arith.constant 0 : index
    %c0_341 = arith.constant 0 : index
    %c0_342 = arith.constant 0 : index
    %443 = vector.load %arg2[%c48, %c0_340, %c0_341, %c0_342] : memref<63x2x8x128xf32, #tpu.memory_space<vmem>>, vector<1x1x8x128xf32>
    %444 = vector.shape_cast %443 : vector<1x1x8x128xf32> to vector<8x128xf32>
    %445 = arith.mulf %442, %444 : vector<8x128xf32>
    %446 = arith.addf %437, %445 : vector<8x128xf32>
    %c48_343 = arith.constant 48 : index
    %c1_344 = arith.constant 1 : index
    %c0_345 = arith.constant 0 : index
    %c0_346 = arith.constant 0 : index
    %447 = vector.load %arg2[%c48_343, %c1_344, %c0_345, %c0_346] : memref<63x2x8x128xf32, #tpu.memory_space<vmem>>, vector<1x1x8x128xf32>
    %448 = vector.shape_cast %447 : vector<1x1x8x128xf32> to vector<8x128xf32>
    %449 = arith.mulf %442, %448 : vector<8x128xf32>
    %450 = arith.addf %441, %449 : vector<8x128xf32>
    %451 = vector.extract_strided_slice %414 {offsets = [0, 4], sizes = [8, 128], strides = [1, 1]} : vector<8x256xf32> to vector<8x128xf32>
    %c49 = arith.constant 49 : index
    %c0_347 = arith.constant 0 : index
    %c0_348 = arith.constant 0 : index
    %c0_349 = arith.constant 0 : index
    %452 = vector.load %arg2[%c49, %c0_347, %c0_348, %c0_349] : memref<63x2x8x128xf32, #tpu.memory_space<vmem>>, vector<1x1x8x128xf32>
    %453 = vector.shape_cast %452 : vector<1x1x8x128xf32> to vector<8x128xf32>
    %454 = arith.mulf %451, %453 : vector<8x128xf32>
    %455 = arith.addf %446, %454 : vector<8x128xf32>
    %c49_350 = arith.constant 49 : index
    %c1_351 = arith.constant 1 : index
    %c0_352 = arith.constant 0 : index
    %c0_353 = arith.constant 0 : index
    %456 = vector.load %arg2[%c49_350, %c1_351, %c0_352, %c0_353] : memref<63x2x8x128xf32, #tpu.memory_space<vmem>>, vector<1x1x8x128xf32>
    %457 = vector.shape_cast %456 : vector<1x1x8x128xf32> to vector<8x128xf32>
    %458 = arith.mulf %451, %457 : vector<8x128xf32>
    %459 = arith.addf %450, %458 : vector<8x128xf32>
    %460 = vector.extract_strided_slice %414 {offsets = [0, 5], sizes = [8, 128], strides = [1, 1]} : vector<8x256xf32> to vector<8x128xf32>
    %c50 = arith.constant 50 : index
    %c0_354 = arith.constant 0 : index
    %c0_355 = arith.constant 0 : index
    %c0_356 = arith.constant 0 : index
    %461 = vector.load %arg2[%c50, %c0_354, %c0_355, %c0_356] : memref<63x2x8x128xf32, #tpu.memory_space<vmem>>, vector<1x1x8x128xf32>
    %462 = vector.shape_cast %461 : vector<1x1x8x128xf32> to vector<8x128xf32>
    %463 = arith.mulf %460, %462 : vector<8x128xf32>
    %464 = arith.addf %455, %463 : vector<8x128xf32>
    %c50_357 = arith.constant 50 : index
    %c1_358 = arith.constant 1 : index
    %c0_359 = arith.constant 0 : index
    %c0_360 = arith.constant 0 : index
    %465 = vector.load %arg2[%c50_357, %c1_358, %c0_359, %c0_360] : memref<63x2x8x128xf32, #tpu.memory_space<vmem>>, vector<1x1x8x128xf32>
    %466 = vector.shape_cast %465 : vector<1x1x8x128xf32> to vector<8x128xf32>
    %467 = arith.mulf %460, %466 : vector<8x128xf32>
    %468 = arith.addf %459, %467 : vector<8x128xf32>
    %469 = vector.extract_strided_slice %414 {offsets = [0, 6], sizes = [8, 128], strides = [1, 1]} : vector<8x256xf32> to vector<8x128xf32>
    %c51 = arith.constant 51 : index
    %c0_361 = arith.constant 0 : index
    %c0_362 = arith.constant 0 : index
    %c0_363 = arith.constant 0 : index
    %470 = vector.load %arg2[%c51, %c0_361, %c0_362, %c0_363] : memref<63x2x8x128xf32, #tpu.memory_space<vmem>>, vector<1x1x8x128xf32>
    %471 = vector.shape_cast %470 : vector<1x1x8x128xf32> to vector<8x128xf32>
    %472 = arith.mulf %469, %471 : vector<8x128xf32>
    %473 = arith.addf %464, %472 : vector<8x128xf32>
    %c51_364 = arith.constant 51 : index
    %c1_365 = arith.constant 1 : index
    %c0_366 = arith.constant 0 : index
    %c0_367 = arith.constant 0 : index
    %474 = vector.load %arg2[%c51_364, %c1_365, %c0_366, %c0_367] : memref<63x2x8x128xf32, #tpu.memory_space<vmem>>, vector<1x1x8x128xf32>
    %475 = vector.shape_cast %474 : vector<1x1x8x128xf32> to vector<8x128xf32>
    %476 = arith.mulf %469, %475 : vector<8x128xf32>
    %477 = arith.addf %468, %476 : vector<8x128xf32>
    %478 = vector.extract_strided_slice %414 {offsets = [0, 7], sizes = [8, 128], strides = [1, 1]} : vector<8x256xf32> to vector<8x128xf32>
    %c52 = arith.constant 52 : index
    %c0_368 = arith.constant 0 : index
    %c0_369 = arith.constant 0 : index
    %c0_370 = arith.constant 0 : index
    %479 = vector.load %arg2[%c52, %c0_368, %c0_369, %c0_370] : memref<63x2x8x128xf32, #tpu.memory_space<vmem>>, vector<1x1x8x128xf32>
    %480 = vector.shape_cast %479 : vector<1x1x8x128xf32> to vector<8x128xf32>
    %481 = arith.mulf %478, %480 : vector<8x128xf32>
    %482 = arith.addf %473, %481 : vector<8x128xf32>
    %c52_371 = arith.constant 52 : index
    %c1_372 = arith.constant 1 : index
    %c0_373 = arith.constant 0 : index
    %c0_374 = arith.constant 0 : index
    %483 = vector.load %arg2[%c52_371, %c1_372, %c0_373, %c0_374] : memref<63x2x8x128xf32, #tpu.memory_space<vmem>>, vector<1x1x8x128xf32>
    %484 = vector.shape_cast %483 : vector<1x1x8x128xf32> to vector<8x128xf32>
    %485 = arith.mulf %478, %484 : vector<8x128xf32>
    %486 = arith.addf %477, %485 : vector<8x128xf32>
    %487 = vector.extract_strided_slice %414 {offsets = [0, 8], sizes = [8, 128], strides = [1, 1]} : vector<8x256xf32> to vector<8x128xf32>
    %c53 = arith.constant 53 : index
    %c0_375 = arith.constant 0 : index
    %c0_376 = arith.constant 0 : index
    %c0_377 = arith.constant 0 : index
    %488 = vector.load %arg2[%c53, %c0_375, %c0_376, %c0_377] : memref<63x2x8x128xf32, #tpu.memory_space<vmem>>, vector<1x1x8x128xf32>
    %489 = vector.shape_cast %488 : vector<1x1x8x128xf32> to vector<8x128xf32>
    %490 = arith.mulf %487, %489 : vector<8x128xf32>
    %491 = arith.addf %482, %490 : vector<8x128xf32>
    %c53_378 = arith.constant 53 : index
    %c1_379 = arith.constant 1 : index
    %c0_380 = arith.constant 0 : index
    %c0_381 = arith.constant 0 : index
    %492 = vector.load %arg2[%c53_378, %c1_379, %c0_380, %c0_381] : memref<63x2x8x128xf32, #tpu.memory_space<vmem>>, vector<1x1x8x128xf32>
    %493 = vector.shape_cast %492 : vector<1x1x8x128xf32> to vector<8x128xf32>
    %494 = arith.mulf %487, %493 : vector<8x128xf32>
    %495 = arith.addf %486, %494 : vector<8x128xf32>
    %496 = vector.extract_strided_slice %1 {offsets = [6, 0], sizes = [8, 256], strides = [1, 1]} : vector<16x256xf32> to vector<8x256xf32>
    %497 = vector.extract_strided_slice %496 {offsets = [0, 0], sizes = [8, 128], strides = [1, 1]} : vector<8x256xf32> to vector<8x128xf32>
    %c54 = arith.constant 54 : index
    %c0_382 = arith.constant 0 : index
    %c0_383 = arith.constant 0 : index
    %c0_384 = arith.constant 0 : index
    %498 = vector.load %arg2[%c54, %c0_382, %c0_383, %c0_384] : memref<63x2x8x128xf32, #tpu.memory_space<vmem>>, vector<1x1x8x128xf32>
    %499 = vector.shape_cast %498 : vector<1x1x8x128xf32> to vector<8x128xf32>
    %500 = arith.mulf %497, %499 : vector<8x128xf32>
    %501 = arith.addf %491, %500 : vector<8x128xf32>
    %c54_385 = arith.constant 54 : index
    %c1_386 = arith.constant 1 : index
    %c0_387 = arith.constant 0 : index
    %c0_388 = arith.constant 0 : index
    %502 = vector.load %arg2[%c54_385, %c1_386, %c0_387, %c0_388] : memref<63x2x8x128xf32, #tpu.memory_space<vmem>>, vector<1x1x8x128xf32>
    %503 = vector.shape_cast %502 : vector<1x1x8x128xf32> to vector<8x128xf32>
    %504 = arith.mulf %497, %503 : vector<8x128xf32>
    %505 = arith.addf %495, %504 : vector<8x128xf32>
    %506 = vector.extract_strided_slice %496 {offsets = [0, 1], sizes = [8, 128], strides = [1, 1]} : vector<8x256xf32> to vector<8x128xf32>
    %c55 = arith.constant 55 : index
    %c0_389 = arith.constant 0 : index
    %c0_390 = arith.constant 0 : index
    %c0_391 = arith.constant 0 : index
    %507 = vector.load %arg2[%c55, %c0_389, %c0_390, %c0_391] : memref<63x2x8x128xf32, #tpu.memory_space<vmem>>, vector<1x1x8x128xf32>
    %508 = vector.shape_cast %507 : vector<1x1x8x128xf32> to vector<8x128xf32>
    %509 = arith.mulf %506, %508 : vector<8x128xf32>
    %510 = arith.addf %501, %509 : vector<8x128xf32>
    %c55_392 = arith.constant 55 : index
    %c1_393 = arith.constant 1 : index
    %c0_394 = arith.constant 0 : index
    %c0_395 = arith.constant 0 : index
    %511 = vector.load %arg2[%c55_392, %c1_393, %c0_394, %c0_395] : memref<63x2x8x128xf32, #tpu.memory_space<vmem>>, vector<1x1x8x128xf32>
    %512 = vector.shape_cast %511 : vector<1x1x8x128xf32> to vector<8x128xf32>
    %513 = arith.mulf %506, %512 : vector<8x128xf32>
    %514 = arith.addf %505, %513 : vector<8x128xf32>
    %515 = vector.extract_strided_slice %496 {offsets = [0, 2], sizes = [8, 128], strides = [1, 1]} : vector<8x256xf32> to vector<8x128xf32>
    %c56 = arith.constant 56 : index
    %c0_396 = arith.constant 0 : index
    %c0_397 = arith.constant 0 : index
    %c0_398 = arith.constant 0 : index
    %516 = vector.load %arg2[%c56, %c0_396, %c0_397, %c0_398] : memref<63x2x8x128xf32, #tpu.memory_space<vmem>>, vector<1x1x8x128xf32>
    %517 = vector.shape_cast %516 : vector<1x1x8x128xf32> to vector<8x128xf32>
    %518 = arith.mulf %515, %517 : vector<8x128xf32>
    %519 = arith.addf %510, %518 : vector<8x128xf32>
    %c56_399 = arith.constant 56 : index
    %c1_400 = arith.constant 1 : index
    %c0_401 = arith.constant 0 : index
    %c0_402 = arith.constant 0 : index
    %520 = vector.load %arg2[%c56_399, %c1_400, %c0_401, %c0_402] : memref<63x2x8x128xf32, #tpu.memory_space<vmem>>, vector<1x1x8x128xf32>
    %521 = vector.shape_cast %520 : vector<1x1x8x128xf32> to vector<8x128xf32>
    %522 = arith.mulf %515, %521 : vector<8x128xf32>
    %523 = arith.addf %514, %522 : vector<8x128xf32>
    %524 = vector.extract_strided_slice %496 {offsets = [0, 3], sizes = [8, 128], strides = [1, 1]} : vector<8x256xf32> to vector<8x128xf32>
    %c57 = arith.constant 57 : index
    %c0_403 = arith.constant 0 : index
    %c0_404 = arith.constant 0 : index
    %c0_405 = arith.constant 0 : index
    %525 = vector.load %arg2[%c57, %c0_403, %c0_404, %c0_405] : memref<63x2x8x128xf32, #tpu.memory_space<vmem>>, vector<1x1x8x128xf32>
    %526 = vector.shape_cast %525 : vector<1x1x8x128xf32> to vector<8x128xf32>
    %527 = arith.mulf %524, %526 : vector<8x128xf32>
    %528 = arith.addf %519, %527 : vector<8x128xf32>
    %c57_406 = arith.constant 57 : index
    %c1_407 = arith.constant 1 : index
    %c0_408 = arith.constant 0 : index
    %c0_409 = arith.constant 0 : index
    %529 = vector.load %arg2[%c57_406, %c1_407, %c0_408, %c0_409] : memref<63x2x8x128xf32, #tpu.memory_space<vmem>>, vector<1x1x8x128xf32>
    %530 = vector.shape_cast %529 : vector<1x1x8x128xf32> to vector<8x128xf32>
    %531 = arith.mulf %524, %530 : vector<8x128xf32>
    %532 = arith.addf %523, %531 : vector<8x128xf32>
    %533 = vector.extract_strided_slice %496 {offsets = [0, 4], sizes = [8, 128], strides = [1, 1]} : vector<8x256xf32> to vector<8x128xf32>
    %c58 = arith.constant 58 : index
    %c0_410 = arith.constant 0 : index
    %c0_411 = arith.constant 0 : index
    %c0_412 = arith.constant 0 : index
    %534 = vector.load %arg2[%c58, %c0_410, %c0_411, %c0_412] : memref<63x2x8x128xf32, #tpu.memory_space<vmem>>, vector<1x1x8x128xf32>
    %535 = vector.shape_cast %534 : vector<1x1x8x128xf32> to vector<8x128xf32>
    %536 = arith.mulf %533, %535 : vector<8x128xf32>
    %537 = arith.addf %528, %536 : vector<8x128xf32>
    %c58_413 = arith.constant 58 : index
    %c1_414 = arith.constant 1 : index
    %c0_415 = arith.constant 0 : index
    %c0_416 = arith.constant 0 : index
    %538 = vector.load %arg2[%c58_413, %c1_414, %c0_415, %c0_416] : memref<63x2x8x128xf32, #tpu.memory_space<vmem>>, vector<1x1x8x128xf32>
    %539 = vector.shape_cast %538 : vector<1x1x8x128xf32> to vector<8x128xf32>
    %540 = arith.mulf %533, %539 : vector<8x128xf32>
    %541 = arith.addf %532, %540 : vector<8x128xf32>
    %542 = vector.extract_strided_slice %496 {offsets = [0, 5], sizes = [8, 128], strides = [1, 1]} : vector<8x256xf32> to vector<8x128xf32>
    %c59 = arith.constant 59 : index
    %c0_417 = arith.constant 0 : index
    %c0_418 = arith.constant 0 : index
    %c0_419 = arith.constant 0 : index
    %543 = vector.load %arg2[%c59, %c0_417, %c0_418, %c0_419] : memref<63x2x8x128xf32, #tpu.memory_space<vmem>>, vector<1x1x8x128xf32>
    %544 = vector.shape_cast %543 : vector<1x1x8x128xf32> to vector<8x128xf32>
    %545 = arith.mulf %542, %544 : vector<8x128xf32>
    %546 = arith.addf %537, %545 : vector<8x128xf32>
    %c59_420 = arith.constant 59 : index
    %c1_421 = arith.constant 1 : index
    %c0_422 = arith.constant 0 : index
    %c0_423 = arith.constant 0 : index
    %547 = vector.load %arg2[%c59_420, %c1_421, %c0_422, %c0_423] : memref<63x2x8x128xf32, #tpu.memory_space<vmem>>, vector<1x1x8x128xf32>
    %548 = vector.shape_cast %547 : vector<1x1x8x128xf32> to vector<8x128xf32>
    %549 = arith.mulf %542, %548 : vector<8x128xf32>
    %550 = arith.addf %541, %549 : vector<8x128xf32>
    %551 = vector.extract_strided_slice %496 {offsets = [0, 6], sizes = [8, 128], strides = [1, 1]} : vector<8x256xf32> to vector<8x128xf32>
    %c60 = arith.constant 60 : index
    %c0_424 = arith.constant 0 : index
    %c0_425 = arith.constant 0 : index
    %c0_426 = arith.constant 0 : index
    %552 = vector.load %arg2[%c60, %c0_424, %c0_425, %c0_426] : memref<63x2x8x128xf32, #tpu.memory_space<vmem>>, vector<1x1x8x128xf32>
    %553 = vector.shape_cast %552 : vector<1x1x8x128xf32> to vector<8x128xf32>
    %554 = arith.mulf %551, %553 : vector<8x128xf32>
    %555 = arith.addf %546, %554 : vector<8x128xf32>
    %c60_427 = arith.constant 60 : index
    %c1_428 = arith.constant 1 : index
    %c0_429 = arith.constant 0 : index
    %c0_430 = arith.constant 0 : index
    %556 = vector.load %arg2[%c60_427, %c1_428, %c0_429, %c0_430] : memref<63x2x8x128xf32, #tpu.memory_space<vmem>>, vector<1x1x8x128xf32>
    %557 = vector.shape_cast %556 : vector<1x1x8x128xf32> to vector<8x128xf32>
    %558 = arith.mulf %551, %557 : vector<8x128xf32>
    %559 = arith.addf %550, %558 : vector<8x128xf32>
    %560 = vector.extract_strided_slice %496 {offsets = [0, 7], sizes = [8, 128], strides = [1, 1]} : vector<8x256xf32> to vector<8x128xf32>
    %c61 = arith.constant 61 : index
    %c0_431 = arith.constant 0 : index
    %c0_432 = arith.constant 0 : index
    %c0_433 = arith.constant 0 : index
    %561 = vector.load %arg2[%c61, %c0_431, %c0_432, %c0_433] : memref<63x2x8x128xf32, #tpu.memory_space<vmem>>, vector<1x1x8x128xf32>
    %562 = vector.shape_cast %561 : vector<1x1x8x128xf32> to vector<8x128xf32>
    %563 = arith.mulf %560, %562 : vector<8x128xf32>
    %564 = arith.addf %555, %563 : vector<8x128xf32>
    %c61_434 = arith.constant 61 : index
    %c1_435 = arith.constant 1 : index
    %c0_436 = arith.constant 0 : index
    %c0_437 = arith.constant 0 : index
    %565 = vector.load %arg2[%c61_434, %c1_435, %c0_436, %c0_437] : memref<63x2x8x128xf32, #tpu.memory_space<vmem>>, vector<1x1x8x128xf32>
    %566 = vector.shape_cast %565 : vector<1x1x8x128xf32> to vector<8x128xf32>
    %567 = arith.mulf %560, %566 : vector<8x128xf32>
    %568 = arith.addf %559, %567 : vector<8x128xf32>
    %569 = vector.extract_strided_slice %496 {offsets = [0, 8], sizes = [8, 128], strides = [1, 1]} : vector<8x256xf32> to vector<8x128xf32>
    %c62 = arith.constant 62 : index
    %c0_438 = arith.constant 0 : index
    %c0_439 = arith.constant 0 : index
    %c0_440 = arith.constant 0 : index
    %570 = vector.load %arg2[%c62, %c0_438, %c0_439, %c0_440] : memref<63x2x8x128xf32, #tpu.memory_space<vmem>>, vector<1x1x8x128xf32>
    %571 = vector.shape_cast %570 : vector<1x1x8x128xf32> to vector<8x128xf32>
    %572 = arith.mulf %569, %571 : vector<8x128xf32>
    %573 = arith.addf %564, %572 : vector<8x128xf32>
    %c62_441 = arith.constant 62 : index
    %c1_442 = arith.constant 1 : index
    %c0_443 = arith.constant 0 : index
    %c0_444 = arith.constant 0 : index
    %574 = vector.load %arg2[%c62_441, %c1_442, %c0_443, %c0_444] : memref<63x2x8x128xf32, #tpu.memory_space<vmem>>, vector<1x1x8x128xf32>
    %575 = vector.shape_cast %574 : vector<1x1x8x128xf32> to vector<8x128xf32>
    %576 = arith.mulf %569, %575 : vector<8x128xf32>
    %577 = arith.addf %568, %576 : vector<8x128xf32>
    %c0_445 = arith.constant 0 : index
    %578 = memref.load %arg3[%c0_445] : memref<2xf32, #tpu.memory_space<smem>>
    %579 = vector.extract_strided_slice %573 {offsets = [0, 0], sizes = [8, 32], strides = [1, 1]} : vector<8x128xf32> to vector<8x32xf32>
    %580 = vector.extract_strided_slice %573 {offsets = [0, 32], sizes = [8, 32], strides = [1, 1]} : vector<8x128xf32> to vector<8x32xf32>
    %581 = arith.addf %579, %580 : vector<8x32xf32>
    %582 = vector.extract_strided_slice %573 {offsets = [0, 64], sizes = [8, 32], strides = [1, 1]} : vector<8x128xf32> to vector<8x32xf32>
    %583 = arith.addf %581, %582 : vector<8x32xf32>
    %584 = vector.extract_strided_slice %573 {offsets = [0, 96], sizes = [8, 32], strides = [1, 1]} : vector<8x128xf32> to vector<8x32xf32>
    %585 = arith.addf %583, %584 : vector<8x32xf32>
    %586 = vector.extract_strided_slice %585 {offsets = [0, 0], sizes = [7, 6], strides = [1, 1]} : vector<8x32xf32> to vector<7x6xf32>
    %587 = vector.broadcast %578 : f32 to vector<7x6xf32>
    %588 = arith.addf %586, %587 : vector<7x6xf32>
    %c1_446 = arith.constant 1 : index
    %589 = memref.load %arg3[%c1_446] : memref<2xf32, #tpu.memory_space<smem>>
    %590 = vector.extract_strided_slice %577 {offsets = [0, 0], sizes = [8, 32], strides = [1, 1]} : vector<8x128xf32> to vector<8x32xf32>
    %591 = vector.extract_strided_slice %577 {offsets = [0, 32], sizes = [8, 32], strides = [1, 1]} : vector<8x128xf32> to vector<8x32xf32>
    %592 = arith.addf %590, %591 : vector<8x32xf32>
    %593 = vector.extract_strided_slice %577 {offsets = [0, 64], sizes = [8, 32], strides = [1, 1]} : vector<8x128xf32> to vector<8x32xf32>
    %594 = arith.addf %592, %593 : vector<8x32xf32>
    %595 = vector.extract_strided_slice %577 {offsets = [0, 96], sizes = [8, 32], strides = [1, 1]} : vector<8x128xf32> to vector<8x32xf32>
    %596 = arith.addf %594, %595 : vector<8x32xf32>
    %597 = vector.extract_strided_slice %596 {offsets = [0, 0], sizes = [7, 6], strides = [1, 1]} : vector<8x32xf32> to vector<7x6xf32>
    %598 = vector.broadcast %589 : f32 to vector<7x6xf32>
    %599 = arith.addf %597, %598 : vector<7x6xf32>
    %600 = vector.shape_cast %588 : vector<7x6xf32> to vector<1x7x6xf32>
    %601 = vector.shape_cast %599 : vector<7x6xf32> to vector<1x7x6xf32>
    %602 = tpu.concatenate %600, %601 in 0 : vector<1x7x6xf32>, vector<1x7x6xf32> -> vector<2x7x6xf32>
    %603 = math.tanh %602 : vector<2x7x6xf32>
    %c0_447 = arith.constant 0 : index
    %c0_448 = arith.constant 0 : index
    %c0_449 = arith.constant 0 : index
    %c0_450 = arith.constant 0 : index
    %604 = vector.load %arg4[%c0_447, %c0_448, %c0_449, %c0_450] : memref<1x2x7x6xf32, #tpu.memory_space<vmem>>, vector<1x2x7x6xf32>
    %605 = vector.shape_cast %604 : vector<1x2x7x6xf32> to vector<2x7x6xf32>
    %606 = vector.shape_cast %603 : vector<2x7x6xf32> to vector<1x2x7x6xf32>
    tpu.vector_store %arg4[%c0_447, %c0_448, %c0_449, %c0_450], %606 {strides = array<i32>} : memref<1x2x7x6xf32, #tpu.memory_space<vmem>>, vector<1x2x7x6xf32>,
    return
  }
  func.func @transform_0(%arg0: i32) -> (i32, i32, i32) {
    %c0_i32 = arith.constant 0 : i32
    %c0_i32_0 = arith.constant 0 : i32
    %c0_i32_1 = arith.constant 0 : i32
    return %arg0, %c0_i32, %c0_i32_0 : i32, i32, i32
  }
  func.func @transform_1(%arg0: i32) -> (i32, i32, i32, i32) {
    %c0_i32 = arith.constant 0 : i32
    %c0_i32_0 = arith.constant 0 : i32
    %c0_i32_1 = arith.constant 0 : i32
    %c0_i32_2 = arith.constant 0 : i32
    %c0_i32_3 = arith.constant 0 : i32
    return %c0_i32, %c0_i32_0, %c0_i32_1, %c0_i32_2 : i32, i32, i32, i32
  }
  func.func @transform_2(%arg0: i32) -> i32 {
    %c0_i32 = arith.constant 0 : i32
    %c0_i32_0 = arith.constant 0 : i32
    return %c0_i32 : i32
  }
  func.func @transform_3(%arg0: i32) -> (i32, i32, i32, i32) {
    %c0_i32 = arith.constant 0 : i32
    %c0_i32_0 = arith.constant 0 : i32
    %c0_i32_1 = arith.constant 0 : i32
    %c0_i32_2 = arith.constant 0 : i32
    return %arg0, %c0_i32, %c0_i32_0, %c0_i32_1 : i32, i32, i32, i32
  }
}

</mosaic_0001>

<bundles_post_ra>
// kernel: conv_transpose_tanh.1
= control target key start
LH: loop header
LB: loop body
LE: loop exit
PB: predicated region body
PF: predicated region fallthrough
CT: control target
= control target key end

     0   :  { %8 = vsyncpa [#allocation3], 0  ;;  %s5097_s0 = inlined_call_operand.vmem [shape: f32[1,16,256], index: 0, kind: input, shape index: {}]   ;;  %s5098_s1 = inlined_call_operand.hbm [shape: f32[63,2,8,128], index: 1, kind: input, shape index: {}]   ;;  %s5099_s2 = inlined_call_operand.vmem [shape: f32[2], index: 2, kind: input, shape index: {}]   ;;  %s5100_s3 = inlined_call_operand.vmem [shape: f32[1,2,7,6], index: 3, kind: output, shape index: {}]  }
   0x1   :  { %9 = vsyncpa [#allocation4], 0  ;;  %s3315_s12 = smov [#allocation2]   ;;  %s30_s16 = sshll.u32 %s5099_s2, 4  ;;  %s31_s16 = int_to_ptr.vmem [resolvable:$true] %s30_s16 }
   0x2   :  { %s17_s13 = sshll.u32 %s3315_s12, 4  ;;  %s3277_s19 = scalar_lea.hbm %s5098_s1, 16128  ;;  %s18_s13 = int_to_ptr.vmem [resolvable:$true] %s17_s13 }
   0x3   :  { %p3278_p0 = scmp.ne.s32.totalorder %s5098_s1, %s3277_s19  ;;  %p3281_p1 = scmp.lt.u32.totalorder %s3277_s19, %s5098_s1 }
   0x5   :  { %p3283_p2 = pnand %p3281_p1, %p3278_p0 }
   0x7   :  { %3286 = shalt.err (!%p3283_p2)
}
   0x8   :  { %s3287_s24 = scalar_lea.vmem %s18_s13, 16128  ;;  %p3292_p4 = scmp.lt.s32.totalorder %s18_s13, %s18_s13 }
   0x9   :  { %p3288_p3 = scmp.ne.s32.totalorder %s18_s13, %s3287_s24  ;;  %p3293_p5 = scmp.lt.s32.totalorder %s3287_s24, %s3287_s24 }
   0xb   :  { %p3294_p6 = por %p3293_p5, %p3292_p4 }
   0xd   :  { %p3295_p7 = pnand %p3294_p6, %p3288_p3 }
   0xf   :  { %3298 = shalt.err (!%p3295_p7)
}
  0x10   :  { %s3316_s2 = smov 128   ;;  %s3317_s25 = smov 8  }
  0x11   :  { %23 = dma.hbm_to_vmem [thread:$0]  %s5098_s1, 16128, %s18_s13, [#allocation3], %s3316_s2, %s3316_s2, %s3317_s25  }
  0x12   :  { %s3299_s28 = scalar_lea.vmem %s31_s16, 16  ;;  %p3304_p9 = scmp.lt.s32.totalorder %s31_s16, %s31_s16 }
  0x13   :  { %p3300_p8 = scmp.ne.s32.totalorder %s31_s16, %s3299_s28  ;;  %p3305_p10 = scmp.lt.s32.totalorder %s3299_s28, %s3299_s28 }
  0x15   :  { %p3306_p11 = por %p3305_p10, %p3304_p9 }
  0x17   :  { %p3307_p12 = pnand %p3306_p11, %p3300_p8 }
  0x19   :  { %3310 = shalt.err (!%p3307_p12)
}
  0x1a   :  { %s3318_s29 = smov [#allocation5]  }
  0x1b   :  { %33 = dma.vmem_to_smem %s31_s16, 16, %s3318_s29, [#allocation4]  }
  0x1c   :  { %3311 = dma.done.wait [#allocation3], 16128  }
  0x1d   :  { %3312 = vsyncadd [#allocation3], 4294951168 }
  0x1e   :  { %3313 = dma.done.wait [#allocation4], 16  }
  0x1f   :  { %3314 = vsyncadd [#allocation4], 4294967280 }
  0x20   :  { %40 = sfence }
  0x21   :  { %v53_v0 = vld [vmem:[#allocation2 + $0x10] sm:$0xff]  ;;  %v71_v1 = vld [vmem:[#allocation2 + $0x18] sm:$0xff]  ;;  %s3319_s30 = smov 1   ;;  %v88_v2 = vld [vmem:[#allocation2 + $0x20] sm:$0xff]  ;;  %s3320_s1 = smov 2   ;;  %vm341_vm0 = vcmask 1046528  }
  0x22   :  { %55 = vrot.lane.b32.xlu0 %v53_v0, %s3319_s30  ;;  %73 = vrot.lane.b32.xlu1 %v71_v1, %s3319_s30  ;;  %v106_v3 = vld [vmem:[#allocation2 + $0x28] sm:$0xff]  ;;  %v123_v4 = vld [vmem:[#allocation2 + $0x30] sm:$0xff]  ;;  %v141_v5 = vld [vmem:[#allocation2 + $0x38] sm:$0xff]  ;;  %s3321_s4 = smov 3   ;;  %s3322_s5 = smov 4   ;;  %vm818_vm1 = vcmask 1045504  }
  0x23   :  { %v158_v6 = vld [vmem:[#allocation2 + $0x40] sm:$0xff]  ;;  %v176_v7 = vld [vmem:[#allocation2 + $0x48] sm:$0xff]  ;;  %v193_v8 = vld [vmem:[#allocation2 + $0x50] sm:$0xff]  ;;  %s3323_s6 = smov 5   ;;  %s3324_s7 = smov 6   ;;  %vm1295_vm2 = vcmask 1044480  }
  0x24   :  { %v211_v9 = vld [vmem:[#allocation2 + $0x58] sm:$0xff]  ;;  %v228_v10 = vld [vmem:[#allocation2 + $0x60] sm:$0xff]  ;;  %v246_v11 = vld [vmem:[#allocation2 + $0x68] sm:$0xff]  ;;  %s3325_s8 = smov 7   ;;  %s3326_s13 = smov 127   ;;  %vm1772_vm3 = vcmask 1043456  }
  0x25   :  { %v263_v12 = vld [vmem:[#allocation2 + $0x70] sm:$0xff]  ;;  %v281_v13 = vld [vmem:[#allocation2 + $0x78] sm:$0xff]  ;;  %v298_v14 = vld [vmem:[#allocation2 + $0x80] sm:$0xff]  ;;  %s3327_s14 = smov 126   ;;  %s3328_s15 = smov 125   ;;  %vm66_vm4 = vcmask 1039360  }
  0x26   :  { %90 = vrot.lane.b32.xlu0 %v88_v2, %s3320_s1  ;;  %108 = vrot.lane.b32.xlu1 %v106_v3, %s3320_s1  ;;  %v316_v15 = vld [vmem:[#allocation2 + $0x88] sm:$0xff]  ;;  %v362_v16 = vld [vmem:[#allocation2 + $0xa0] sm:$0xff]  ;;  %v418_v20 = vld [vmem:[#allocation2 + $0xb0] sm:$0xff]  ;;  %s3329_s16 = smov 124   ;;  %s3330_s17 = smov 123   ;;  %vm101_vm5 = vcmask 1031168  }
  0x27   :  { %v390_v17 = vld [vmem:[#allocation2 + $0xa8] sm:$0xff]  ;;  %v364_v18 = vrot.slane %v362_v16, 7  ;;  %v446_v21 = vld [vmem:[#allocation2 + $0xb8] sm:$0xff]  ;;  %v420_v22 = vrot.slane %v418_v20, 7  ;;  %v474_v24 = vld [vmem:[#allocation2 + $0xc0] sm:$0xff]  ;;  %s3331_s18 = smov 122  }
  0x28   :  { %v392_v19 = vrot.slane %v390_v17, 7  ;;  %v448_v23 = vrot.slane %v446_v21, 7  ;;  %v476_v25 = vrot.slane %v474_v24, 7  ;;  %v3397_v26 = vld [vmem:[%s5097_s0] sm:$0xff]  ;;  %v3402_v27 = vld [vmem:[%s5097_s0 + $0x8] sm:$0xff]  ;;  %s3332_s19 = smov 121  }
  0x29   :  { %s3333_s24 = smov 120   ;;  %vm136_vm6 = vcmask 1022976   ;;  %vm171_vm7 = vcmask 1014784   ;;  %vm206_vm8 = vcmask 1006592   ;;  %vm241_vm9 = vcmask 998400  }
  0x2a   :  { %125 = vrot.lane.b32.xlu0 %v123_v4, %s3321_s4  ;;  %143 = vrot.lane.b32.xlu1 %v141_v5, %s3321_s4  ;;  %vm276_vm10 = vcmask 990208   ;;  %vm311_vm11 = vcmask 982016   ;;  %vm2249_vm12 = vcmask 1042432   ;;  %vm2726_vm13 = vcmask 1041408  }
  0x2b   :  { %vm3228_vm14 = vcmask 47104  }
  0x2e   :  { %160 = vrot.lane.b32.xlu0 %v158_v6, %s3322_s5  ;;  %178 = vrot.lane.b32.xlu1 %v176_v7, %s3322_s5 }
  0x32   :  { %195 = vrot.lane.b32.xlu0 %v193_v8, %s3323_s6  ;;  %213 = vrot.lane.b32.xlu1 %v211_v9, %s3323_s6  ;;  %v3461_v9 = vld [vmem:[%s5097_s0 + $0x10] sm:$0xff] }
  0x36   :  { %230 = vrot.lane.b32.xlu0 %v228_v10, %s3324_s7  ;;  %248 = vrot.lane.b32.xlu1 %v246_v11, %s3324_s7  ;;  %v3466_v10 = vld [vmem:[%s5097_s0 + $0x18] sm:$0xff] }
  0x3a   :  { %265 = vrot.lane.b32.xlu0 %v263_v12, %s3325_s8  ;;  %283 = vrot.lane.b32.xlu1 %v281_v13, %s3325_s8 }
  0x3e   :  { %300 = vrot.lane.b32.xlu0 %v298_v14, %s3317_s25  ;;  %318 = vrot.lane.b32.xlu1 %v316_v15, %s3317_s25 }
  0x42   :  { %365 = vrot.lane.b32.xlu0 %v364_v18, %s3319_s30  ;;  %393 = vrot.lane.b32.xlu1 %v392_v19, %s3319_s30 }
  0x46   :  { %421 = vrot.lane.b32.xlu0 %v420_v22, %s3320_s1  ;;  %449 = vrot.lane.b32.xlu1 %v448_v23, %s3320_s1 }
  0x4a   :  { %477 = vrot.lane.b32.xlu0 %v476_v25, %s3321_s4 }
  0x94   :  { %v56_v28 = vpop.permute.xlu0 %55  ;;  %v74_v29 = vpop.permute.xlu1 %73 }
  0x95   :  { %v58_v30 = vmul.f32 %v56_v28, %v3397_v26  ;;  %v59_v31 = vmul.f32 %v56_v28, %v3402_v27  ;;  %v76_v32 = vmul.f32 %v74_v29, %v3397_v26  ;;  %v77_v33 = vmul.f32 %v74_v29, %v3402_v27 }
  0x97   :  { %64 = vrot.lane.b32.xlu1 %v59_v31, %s3326_s13  ;;  %62 = vrot.lane.b32.xlu0 %v58_v30, %s3326_s13 }
  0x98   :  { %v91_v34 = vpop.permute.xlu0 %90  ;;  %v109_v37 = vpop.permute.xlu1 %108 }
  0x99   :  { %v93_v35 = vmul.f32 %v91_v34, %v3397_v26  ;;  %v94_v36 = vmul.f32 %v91_v34, %v3402_v27  ;;  %v111_v38 = vmul.f32 %v109_v37, %v3397_v26  ;;  %v112_v39 = vmul.f32 %v109_v37, %v3402_v27 }
  0x9b   :  { %82 = vrot.lane.b32.xlu1 %v77_v33, %s3326_s13  ;;  %80 = vrot.lane.b32.xlu0 %v76_v32, %s3326_s13 }
  0x9c   :  { %v126_v40 = vpop.permute.xlu0 %125  ;;  %v144_v43 = vpop.permute.xlu1 %143 }
  0x9d   :  { %v128_v41 = vmul.f32 %v126_v40, %v3397_v26  ;;  %v129_v42 = vmul.f32 %v126_v40, %v3402_v27  ;;  %v146_v44 = vmul.f32 %v144_v43, %v3397_v26  ;;  %v147_v45 = vmul.f32 %v144_v43, %v3402_v27 }
  0x9f   :  { %97 = vrot.lane.b32.xlu1 %v93_v35, %s3327_s14  ;;  %99 = vrot.lane.b32.xlu0 %v94_v36, %s3327_s14 }
  0xa0   :  { %v161_v46 = vpop.permute.xlu0 %160  ;;  %v179_v49 = vpop.permute.xlu1 %178 }
  0xa1   :  { %v163_v47 = vmul.f32 %v161_v46, %v3397_v26  ;;  %v164_v48 = vmul.f32 %v161_v46, %v3402_v27  ;;  %v181_v50 = vmul.f32 %v179_v49, %v3397_v26  ;;  %v182_v51 = vmul.f32 %v179_v49, %v3402_v27 }
  0xa3   :  { %117 = vrot.lane.b32.xlu1 %v112_v39, %s3327_s14  ;;  %115 = vrot.lane.b32.xlu0 %v111_v38, %s3327_s14 }
  0xa4   :  { %v196_v52 = vpop.permute.xlu0 %195  ;;  %v214_v55 = vpop.permute.xlu1 %213 }
  0xa5   :  { %v198_v53 = vmul.f32 %v196_v52, %v3397_v26  ;;  %v199_v54 = vmul.f32 %v196_v52, %v3402_v27  ;;  %v216_v56 = vmul.f32 %v214_v55, %v3397_v26  ;;  %v217_v57 = vmul.f32 %v214_v55, %v3402_v27 }
  0xa7   :  { %132 = vrot.lane.b32.xlu1 %v128_v41, %s3328_s15  ;;  %134 = vrot.lane.b32.xlu0 %v129_v42, %s3328_s15 }
  0xa8   :  { %v231_v58 = vpop.permute.xlu0 %230  ;;  %v249_v61 = vpop.permute.xlu1 %248 }
  0xa9   :  { %v233_v59 = vmul.f32 %v231_v58, %v3397_v26  ;;  %v234_v60 = vmul.f32 %v231_v58, %v3402_v27  ;;  %v251_v62 = vmul.f32 %v249_v61, %v3397_v26  ;;  %v252_v63 = vmul.f32 %v249_v61, %v3402_v27 }
  0xab   :  { %152 = vrot.lane.b32.xlu1 %v147_v45, %s3328_s15  ;;  %150 = vrot.lane.b32.xlu0 %v146_v44, %s3328_s15 }
  0xac   :  { %v266_v0 = vpop.permute.xlu0 %265  ;;  %v284_v1 = vpop.permute.xlu1 %283 }
  0xad   :  { %v268_v2 = vmul.f32 %v266_v0, %v3397_v26  ;;  %v269_v3 = vmul.f32 %v266_v0, %v3402_v27  ;;  %v286_v6 = vmul.f32 %v284_v1, %v3397_v26  ;;  %v287_v7 = vmul.f32 %v284_v1, %v3402_v27 }
  0xaf   :  { %167 = vrot.lane.b32.xlu1 %v163_v47, %s3329_s16  ;;  %169 = vrot.lane.b32.xlu0 %v164_v48, %s3329_s16 }
  0xb0   :  { %v301_v4 = vpop.permute.xlu0 %300  ;;  %v319_v5 = vpop.permute.xlu1 %318 }
  0xb1   :  { %v303_v11 = vmul.f32 %v301_v4, %v3397_v26  ;;  %v304_v12 = vmul.f32 %v301_v4, %v3402_v27  ;;  %v321_v18 = vmul.f32 %v319_v5, %v3397_v26  ;;  %v322_v19 = vmul.f32 %v319_v5, %v3402_v27 }
  0xb3   :  { %187 = vrot.lane.b32.xlu1 %v182_v51, %s3329_s16  ;;  %185 = vrot.lane.b32.xlu0 %v181_v50, %s3329_s16 }
  0xb4   :  { %v366_v8 = vpop.permute.xlu0 %365  ;;  %v394_v13 = vpop.permute.xlu1 %393 }
  0xb5   :  { %v368_v14 = vmul.f32 %v366_v8, %v3397_v26  ;;  %v370_v15 = vmul.f32 %v366_v8, %v3461_v9  ;;  %v369_v16 = vmul.f32 %v366_v8, %v3402_v27  ;;  %v371_v17 = vmul.f32 %v366_v8, %v3466_v10 }
  0xb6   :  { %v397_v20 = vmul.f32 %v394_v13, %v3402_v27  ;;  %v399_v22 = vmul.f32 %v394_v13, %v3466_v10  ;;  %v396_v23 = vmul.f32 %v394_v13, %v3397_v26  ;;  %v398_v24 = vmul.f32 %v394_v13, %v3461_v9 }
  0xb7   :  { %202 = vrot.lane.b32.xlu1 %v198_v53, %s3330_s17  ;;  %204 = vrot.lane.b32.xlu0 %v199_v54, %s3330_s17  ;;  %v376_v25 = vrot.slane %v368_v14, 1  ;;  %v377_v28 = vrot.slane %v370_v15, 1  ;;  %v379_v29 = vrot.slane %v369_v16, 1  ;;  %v380_v30 = vrot.slane %v371_v17, 1 }
  0xb8   :  { %v422_v21 = vpop.permute.xlu0 %421  ;;  %v407_v33 = vrot.slane %v397_v20, 1  ;;  %v408_v34 = vrot.slane %v399_v22, 1  ;;  %v450_v35 = vpop.permute.xlu1 %449  ;;  %v404_v40 = vrot.slane %v396_v23, 1  ;;  %v405_v41 = vrot.slane %v398_v24, 1 }
  0xb9   :  { %v424_v31 = vmul.f32 %v422_v21, %v3397_v26  ;;  %v426_v32 = vmul.f32 %v422_v21, %v3461_v9  ;;  %v425_v36 = vmul.f32 %v422_v21, %v3402_v27  ;;  %v427_v37 = vmul.f32 %v422_v21, %v3466_v10 }
  0xba   :  { %v378_v38 = vsel %vm341_vm0, %v376_v25, %v377_v28  ;;  %v381_v39 = vsel %vm341_vm0, %v379_v29, %v380_v30  ;;  %v453_v44 = vmul.f32 %v450_v35, %v3402_v27  ;;  %v455_v47 = vmul.f32 %v450_v35, %v3466_v10 }
  0xbb   :  { %222 = vrot.lane.b32.xlu1 %v217_v57, %s3330_s17  ;;  %220 = vrot.lane.b32.xlu0 %v216_v56, %s3330_s17  ;;  %v432_v42 = vrot.slane %v424_v31, 1  ;;  %v433_v43 = vrot.slane %v426_v32, 1  ;;  %v435_v45 = vrot.slane %v425_v36, 1  ;;  %v436_v46 = vrot.slane %v427_v37, 1 }
  0xbc   :  { %v452_v48 = vmul.f32 %v450_v35, %v3397_v26  ;;  %v409_v49 = vsel %vm341_vm0, %v407_v33, %v408_v34  ;;  %v406_v50 = vsel %vm341_vm0, %v404_v40, %v405_v41  ;;  %v478_v51 = vpop.permute.xlu0 %477  ;;  %v454_v52 = vmul.f32 %v450_v35, %v3461_v9 }
  0xbd   :  { %v434_v53 = vsel %vm341_vm0, %v432_v42, %v433_v43  ;;  %v463_v54 = vrot.slane %v453_v44, 1  ;;  %v437_v55 = vsel %vm341_vm0, %v435_v45, %v436_v46  ;;  %v464_v56 = vrot.slane %v455_v47, 1  ;;  %v530_v45 = vld [vmem:[#allocation2 + $0xd0] sm:$0xff] }
  0xbe   :  { %v460_v57 = vrot.slane %v452_v48, 1  ;;  %v480_v58 = vmul.f32 %v478_v51, %v3397_v26  ;;  %v481_v61 = vmul.f32 %v478_v51, %v3402_v27  ;;  %v532_v48 = vrot.slane %v530_v45, 7 }
  0xbf   :  { %237 = vrot.lane.b32.xlu1 %v233_v59, %s3331_s18  ;;  %239 = vrot.lane.b32.xlu0 %v234_v60, %s3331_s18  ;;  %v461_v59 = vrot.slane %v454_v52, 1  ;;  %v482_v60 = vmul.f32 %v478_v51, %v3461_v9 }
  0xc0   :  { %v488_v0 = vrot.slane %v480_v58, 1 }
  0xc1   :  { %v462_v1 = vsel %vm341_vm0, %v460_v57, %v461_v59 }
  0xc3   :  { %257 = vrot.lane.b32.xlu1 %v252_v63, %s3331_s18  ;;  %255 = vrot.lane.b32.xlu0 %v251_v62, %s3331_s18  ;;  %v483_v62 = vmul.f32 %v478_v51, %v3466_v10  ;;  %v465_v63 = vsel %vm341_vm0, %v463_v54, %v464_v56 }
  0xc5   :  { %v492_v4 = vrot.slane %v483_v62, 1 }
  0xc7   :  { %272 = vrot.lane.b32.xlu1 %v268_v2, %s3332_s19  ;;  %274 = vrot.lane.b32.xlu0 %v269_v3, %s3332_s19  ;;  %v489_v2 = vrot.slane %v482_v60, 1  ;;  %v491_v3 = vrot.slane %v481_v61, 1 }
  0xc9   :  { %v490_v5 = vsel %vm341_vm0, %v488_v0, %v489_v2 }
  0xcb   :  { %292 = vrot.lane.b32.xlu1 %v287_v7, %s3332_s19  ;;  %290 = vrot.lane.b32.xlu0 %v286_v6, %s3332_s19  ;;  %v493_v6 = vsel %vm341_vm0, %v491_v3, %v492_v4  ;;  %v502_v7 = vld [vmem:[#allocation2 + $0xc8] sm:$0xff] }
  0xcc   :  { %v504_v8 = vrot.slane %v502_v7, 7 }
  0xcf   :  { %307 = vrot.lane.b32.xlu1 %v303_v11, %s3333_s24  ;;  %309 = vrot.lane.b32.xlu0 %v304_v12, %s3333_s24 }
  0xd3   :  { %327 = vrot.lane.b32.xlu1 %v322_v19, %s3333_s24  ;;  %325 = vrot.lane.b32.xlu0 %v321_v18, %s3333_s24 }
  0xd7   :  { %382 = vrot.lane.b32.xlu1 %v378_v38, %s3326_s13  ;;  %384 = vrot.lane.b32.xlu0 %v381_v39, %s3326_s13 }
  0xdb   :  { %412 = vrot.lane.b32.xlu1 %v409_v49, %s3326_s13  ;;  %410 = vrot.lane.b32.xlu0 %v406_v50, %s3326_s13 }
  0xdf   :  { %438 = vrot.lane.b32.xlu1 %v434_v53, %s3327_s14  ;;  %440 = vrot.lane.b32.xlu0 %v437_v55, %s3327_s14 }
  0xe3   :  { %468 = vrot.lane.b32.xlu1 %v465_v63, %s3327_s14  ;;  %466 = vrot.lane.b32.xlu0 %v462_v1, %s3327_s14 }
  0xe7   :  { %494 = vrot.lane.b32.xlu1 %v490_v5, %s3328_s15  ;;  %496 = vrot.lane.b32.xlu0 %v493_v6, %s3328_s15 }
  0xeb   :  { %505 = vrot.lane.b32.xlu1 %v504_v8, %s3321_s4 }
 0x109   :  { %v3519_v11 = vpop.permute.xlu1 %64  ;;  %v3559_v33 = vpop.permute.xlu0 %62 }
 0x10d   :  { %v3521_v12 = vpop.permute.xlu1 %82  ;;  %v3567_v40 = vpop.permute.xlu0 %80 }
 0x111   :  { %v3523_v13 = vpop.permute.xlu1 %97  ;;  %v3573_v49 = vpop.permute.xlu0 %99 }
 0x115   :  { %v3525_v14 = vpop.permute.xlu1 %117  ;;  %v3576_v50 = vpop.permute.xlu0 %115 }
 0x119   :  { %v3527_v15 = vpop.permute.xlu1 %132  ;;  %v3578_v51 = vpop.permute.xlu0 %134 }
 0x11d   :  { %v3529_v16 = vpop.permute.xlu1 %152  ;;  %v3580_v52 = vpop.permute.xlu0 %150 }
 0x121   :  { %v3531_v17 = vpop.permute.xlu1 %167  ;;  %v3582_v53 = vpop.permute.xlu0 %169 }
 0x125   :  { %v3533_v18 = vpop.permute.xlu1 %187  ;;  %v3584_v54 = vpop.permute.xlu0 %185 }
 0x129   :  { %v3535_v19 = vpop.permute.xlu1 %202  ;;  %v3586_v55 = vpop.permute.xlu0 %204 }
 0x12d   :  { %v3537_v20 = vpop.permute.xlu1 %222  ;;  %v3588_v56 = vpop.permute.xlu0 %220 }
 0x131   :  { %v3539_v21 = vpop.permute.xlu1 %237  ;;  %v3590_v57 = vpop.permute.xlu0 %239 }
 0x135   :  { %v3541_v22 = vpop.permute.xlu1 %257  ;;  %v3592_v58 = vpop.permute.xlu0 %255 }
 0x139   :  { %v3543_v23 = vpop.permute.xlu1 %272  ;;  %v3594_v59 = vpop.permute.xlu0 %274 }
 0x13d   :  { %v3545_v24 = vpop.permute.xlu1 %292  ;;  %v3596_v60 = vpop.permute.xlu0 %290 }
 0x141   :  { %v3547_v25 = vpop.permute.xlu1 %307  ;;  %v3598_v61 = vpop.permute.xlu0 %309 }
 0x145   :  { %v3549_v28 = vpop.permute.xlu1 %327  ;;  %v3600_v62 = vpop.permute.xlu0 %325 }
 0x149   :  { %v3551_v29 = vpop.permute.xlu1 %382  ;;  %v3602_v63 = vpop.permute.xlu0 %384 }
 0x14d   :  { %v3553_v30 = vpop.permute.xlu1 %412  ;;  %v3604_v0 = vpop.permute.xlu0 %410 }
 0x151   :  { %v3555_v31 = vpop.permute.xlu1 %438  ;;  %v3606_v1 = vpop.permute.xlu0 %440 }
 0x155   :  { %v3557_v32 = vpop.permute.xlu1 %468  ;;  %v3608_v2 = vpop.permute.xlu0 %466 }
 0x159   :  { %v3561_v34 = vpop.permute.xlu1 %494  ;;  %v3610_v3 = vpop.permute.xlu0 %496 }
 0x15d   :  { %v506_v35 = vpop.permute.xlu1 %505 }
 0x15e   :  { %v509_v36 = vmul.f32 %v506_v35, %v3402_v27  ;;  %v511_v37 = vmul.f32 %v506_v35, %v3466_v10  ;;  %v508_v38 = vmul.f32 %v506_v35, %v3397_v26  ;;  %v510_v39 = vmul.f32 %v506_v35, %v3461_v9 }
 0x160   :  { %v519_v41 = vrot.slane %v509_v36, 1  ;;  %v520_v42 = vrot.slane %v511_v37, 1  ;;  %v516_v43 = vrot.slane %v508_v38, 1  ;;  %v517_v44 = vrot.slane %v510_v39, 1 }
 0x162   :  { %v521_v46 = vsel %vm341_vm0, %v519_v41, %v520_v42  ;;  %v518_v47 = vsel %vm341_vm0, %v516_v43, %v517_v44  ;;  %v558_v41 = vld [vmem:[#allocation2 + $0xd8] sm:$0xff] }
 0x163   :  { %524 = vrot.lane.b32.xlu1 %v521_v46, %s3328_s15  ;;  %522 = vrot.lane.b32.xlu0 %v518_v47, %s3328_s15  ;;  %v560_v44 = vrot.slane %v558_v41, 7 }
 0x167   :  { %533 = vrot.lane.b32.xlu0 %v532_v48, %s3322_s5 }
 0x1d5   :  { %v3612_v4 = vpop.permute.xlu0 %522  ;;  %v3623_v45 = vpop.permute.xlu1 %524 }
 0x1d9   :  { %v534_v5 = vpop.permute.xlu0 %533 }
 0x1da   :  { %v537_v6 = vmul.f32 %v534_v5, %v3402_v27  ;;  %v539_v7 = vmul.f32 %v534_v5, %v3466_v10  ;;  %v536_v8 = vmul.f32 %v534_v5, %v3397_v26  ;;  %v538_v35 = vmul.f32 %v534_v5, %v3461_v9 }
 0x1dc   :  { %v547_v36 = vrot.slane %v537_v6, 1  ;;  %v548_v37 = vrot.slane %v539_v7, 1  ;;  %v544_v38 = vrot.slane %v536_v8, 1  ;;  %v545_v39 = vrot.slane %v538_v35, 1 }
 0x1de   :  { %v549_v42 = vsel %vm341_vm0, %v547_v36, %v548_v37  ;;  %v546_v43 = vsel %vm341_vm0, %v544_v38, %v545_v39  ;;  %v586_v38 = vld [vmem:[#allocation2 + $0xe0] sm:$0xff] }
 0x1df   :  { %552 = vrot.lane.b32.xlu0 %v549_v42, %s3329_s16  ;;  %550 = vrot.lane.b32.xlu1 %v546_v43, %s3329_s16  ;;  %v588_v42 = vrot.slane %v586_v38, 7  ;;  %v614_v38 = vld [vmem:[#allocation2 + $0xe8] sm:$0xff] }
 0x1e3   :  { %561 = vrot.lane.b32.xlu1 %v560_v44, %s3322_s5 }
 0x251   :  { %v3625_v46 = vpop.permute.xlu1 %550  ;;  %v3636_v43 = vpop.permute.xlu0 %552 }
 0x252   :  { %5105 = vst [vmem:[#allocation8_spill] sm:$0xff] %v3625_v46 }
 0x255   :  { %v562_v47 = vpop.permute.xlu1 %561 }
 0x256   :  { %v565_v48 = vmul.f32 %v562_v47, %v3402_v27  ;;  %v567_v5 = vmul.f32 %v562_v47, %v3466_v10  ;;  %v564_v6 = vmul.f32 %v562_v47, %v3397_v26  ;;  %v566_v7 = vmul.f32 %v562_v47, %v3461_v9 }
 0x258   :  { %v575_v8 = vrot.slane %v565_v48, 1  ;;  %v576_v35 = vrot.slane %v567_v5, 1  ;;  %v572_v36 = vrot.slane %v564_v6, 1  ;;  %v573_v37 = vrot.slane %v566_v7, 1 }
 0x25a   :  { %v577_v39 = vsel %vm341_vm0, %v575_v8, %v576_v35  ;;  %v574_v41 = vsel %vm341_vm0, %v572_v36, %v573_v37 }
 0x25b   :  { %580 = vrot.lane.b32.xlu1 %v577_v39, %s3329_s16  ;;  %578 = vrot.lane.b32.xlu0 %v574_v41, %s3329_s16 }
 0x25f   :  { %589 = vrot.lane.b32.xlu0 %v588_v42, %s3323_s6  ;;  %v616_v42 = vrot.slane %v614_v38, 7  ;;  %v642_v38 = vld [vmem:[#allocation2 + $0xf0] sm:$0xff] }
 0x2cd   :  { %v3638_v44 = vpop.permute.xlu0 %578 }
 0x2ce   :  { %5106 = vst [vmem:[#allocation9_spill] sm:$0xff] %v3638_v44  ;;  %v3649_v44 = vpop.permute.xlu1 %580 }
 0x2cf   :  { %5107 = vst [vmem:[#allocation10_spill] sm:$0xff] %v3649_v44 }
 0x2d1   :  { %v590_v47 = vpop.permute.xlu0 %589 }
 0x2d2   :  { %v593_v48 = vmul.f32 %v590_v47, %v3402_v27  ;;  %v595_v5 = vmul.f32 %v590_v47, %v3466_v10  ;;  %v592_v6 = vmul.f32 %v590_v47, %v3397_v26  ;;  %v594_v7 = vmul.f32 %v590_v47, %v3461_v9 }
 0x2d4   :  { %v603_v8 = vrot.slane %v593_v48, 1  ;;  %v604_v35 = vrot.slane %v595_v5, 1  ;;  %v600_v36 = vrot.slane %v592_v6, 1  ;;  %v601_v37 = vrot.slane %v594_v7, 1 }
 0x2d6   :  { %v605_v39 = vsel %vm341_vm0, %v603_v8, %v604_v35  ;;  %v602_v41 = vsel %vm341_vm0, %v600_v36, %v601_v37 }
 0x2d7   :  { %608 = vrot.lane.b32.xlu0 %v605_v39, %s3330_s17  ;;  %606 = vrot.lane.b32.xlu1 %v602_v41, %s3330_s17 }
 0x2db   :  { %617 = vrot.lane.b32.xlu1 %v616_v42, %s3323_s6  ;;  %v644_v42 = vrot.slane %v642_v38, 7  ;;  %v670_v38 = vld [vmem:[#allocation2 + $0xf8] sm:$0xff] }
 0x349   :  { %v3651_v46 = vpop.permute.xlu1 %606 }
 0x34a   :  { %5108 = vst [vmem:[#allocation11_spill] sm:$0xff] %v3651_v46  ;;  %v3662_v46 = vpop.permute.xlu0 %608 }
 0x34b   :  { %5109 = vst [vmem:[#allocation12_spill] sm:$0xff] %v3662_v46 }
 0x34d   :  { %v618_v47 = vpop.permute.xlu1 %617 }
 0x34e   :  { %v621_v48 = vmul.f32 %v618_v47, %v3402_v27  ;;  %v623_v5 = vmul.f32 %v618_v47, %v3466_v10  ;;  %v620_v6 = vmul.f32 %v618_v47, %v3397_v26  ;;  %v622_v7 = vmul.f32 %v618_v47, %v3461_v9 }
 0x350   :  { %v631_v8 = vrot.slane %v621_v48, 1  ;;  %v632_v35 = vrot.slane %v623_v5, 1  ;;  %v628_v36 = vrot.slane %v620_v6, 1  ;;  %v629_v37 = vrot.slane %v622_v7, 1 }
 0x352   :  { %v633_v39 = vsel %vm341_vm0, %v631_v8, %v632_v35  ;;  %v630_v41 = vsel %vm341_vm0, %v628_v36, %v629_v37 }
 0x353   :  { %636 = vrot.lane.b32.xlu1 %v633_v39, %s3330_s17  ;;  %634 = vrot.lane.b32.xlu0 %v630_v41, %s3330_s17 }
 0x357   :  { %645 = vrot.lane.b32.xlu0 %v644_v42, %s3324_s7  ;;  %v672_v42 = vrot.slane %v670_v38, 7  ;;  %v698_v38 = vld [vmem:[#allocation2 + $0x100] sm:$0xff] }
 0x3c5   :  { %v3664_v44 = vpop.permute.xlu0 %634 }
 0x3c6   :  { %5110 = vst [vmem:[#allocation13_spill] sm:$0xff] %v3664_v44  ;;  %v3675_v44 = vpop.permute.xlu1 %636 }
 0x3c7   :  { %5111 = vst [vmem:[#allocation14_spill] sm:$0xff] %v3675_v44 }
 0x3c9   :  { %v646_v47 = vpop.permute.xlu0 %645 }
 0x3ca   :  { %v649_v48 = vmul.f32 %v646_v47, %v3402_v27  ;;  %v651_v5 = vmul.f32 %v646_v47, %v3466_v10  ;;  %v648_v6 = vmul.f32 %v646_v47, %v3397_v26  ;;  %v650_v7 = vmul.f32 %v646_v47, %v3461_v9 }
 0x3cc   :  { %v659_v8 = vrot.slane %v649_v48, 1  ;;  %v660_v35 = vrot.slane %v651_v5, 1  ;;  %v656_v36 = vrot.slane %v648_v6, 1  ;;  %v657_v37 = vrot.slane %v650_v7, 1 }
 0x3ce   :  { %v661_v39 = vsel %vm341_vm0, %v659_v8, %v660_v35  ;;  %v658_v41 = vsel %vm341_vm0, %v656_v36, %v657_v37 }
 0x3cf   :  { %664 = vrot.lane.b32.xlu0 %v661_v39, %s3331_s18  ;;  %662 = vrot.lane.b32.xlu1 %v658_v41, %s3331_s18 }
 0x3d3   :  { %673 = vrot.lane.b32.xlu1 %v672_v42, %s3324_s7  ;;  %v700_v42 = vrot.slane %v698_v38, 7  ;;  %v726_v38 = vld [vmem:[#allocation2 + $0x108] sm:$0xff] }
 0x441   :  { %v3677_v46 = vpop.permute.xlu1 %662 }
 0x442   :  { %5112 = vst [vmem:[#allocation15_spill] sm:$0xff] %v3677_v46  ;;  %v3688_v46 = vpop.permute.xlu0 %664 }
 0x443   :  { %5113 = vst [vmem:[#allocation16_spill] sm:$0xff] %v3688_v46 }
 0x445   :  { %v674_v47 = vpop.permute.xlu1 %673 }
 0x446   :  { %v677_v48 = vmul.f32 %v674_v47, %v3402_v27  ;;  %v679_v5 = vmul.f32 %v674_v47, %v3466_v10  ;;  %v676_v6 = vmul.f32 %v674_v47, %v3397_v26  ;;  %v678_v7 = vmul.f32 %v674_v47, %v3461_v9 }
 0x448   :  { %v687_v8 = vrot.slane %v677_v48, 1  ;;  %v688_v35 = vrot.slane %v679_v5, 1  ;;  %v684_v36 = vrot.slane %v676_v6, 1  ;;  %v685_v37 = vrot.slane %v678_v7, 1 }
 0x44a   :  { %v689_v39 = vsel %vm341_vm0, %v687_v8, %v688_v35  ;;  %v686_v41 = vsel %vm341_vm0, %v684_v36, %v685_v37 }
 0x44b   :  { %692 = vrot.lane.b32.xlu1 %v689_v39, %s3331_s18  ;;  %690 = vrot.lane.b32.xlu0 %v686_v41, %s3331_s18 }
 0x44f   :  { %701 = vrot.lane.b32.xlu0 %v700_v42, %s3325_s8  ;;  %v728_v42 = vrot.slane %v726_v38, 7  ;;  %v754_v38 = vld [vmem:[#allocation2 + $0x110] sm:$0xff] }
 0x4bd   :  { %v3690_v44 = vpop.permute.xlu0 %690 }
 0x4be   :  { %5114 = vst [vmem:[#allocation17_spill] sm:$0xff] %v3690_v44  ;;  %v3701_v44 = vpop.permute.xlu1 %692 }
 0x4bf   :  { %5115 = vst [vmem:[#allocation18_spill] sm:$0xff] %v3701_v44 }
 0x4c1   :  { %v702_v47 = vpop.permute.xlu0 %701 }
 0x4c2   :  { %v705_v48 = vmul.f32 %v702_v47, %v3402_v27  ;;  %v707_v5 = vmul.f32 %v702_v47, %v3466_v10  ;;  %v704_v6 = vmul.f32 %v702_v47, %v3397_v26  ;;  %v706_v7 = vmul.f32 %v702_v47, %v3461_v9 }
 0x4c4   :  { %v715_v8 = vrot.slane %v705_v48, 1  ;;  %v716_v35 = vrot.slane %v707_v5, 1  ;;  %v712_v36 = vrot.slane %v704_v6, 1  ;;  %v713_v37 = vrot.slane %v706_v7, 1 }
 0x4c6   :  { %v717_v39 = vsel %vm341_vm0, %v715_v8, %v716_v35  ;;  %v714_v41 = vsel %vm341_vm0, %v712_v36, %v713_v37 }
 0x4c7   :  { %720 = vrot.lane.b32.xlu0 %v717_v39, %s3332_s19  ;;  %718 = vrot.lane.b32.xlu1 %v714_v41, %s3332_s19 }
 0x4cb   :  { %729 = vrot.lane.b32.xlu1 %v728_v42, %s3325_s8  ;;  %v756_v42 = vrot.slane %v754_v38, 7  ;;  %v782_v38 = vld [vmem:[#allocation2 + $0x118] sm:$0xff] }
 0x539   :  { %v3703_v46 = vpop.permute.xlu1 %718 }
 0x53a   :  { %5116 = vst [vmem:[#allocation19_spill] sm:$0xff] %v3703_v46  ;;  %v3714_v46 = vpop.permute.xlu0 %720 }
 0x53b   :  { %5117 = vst [vmem:[#allocation20_spill] sm:$0xff] %v3714_v46 }
 0x53d   :  { %v730_v47 = vpop.permute.xlu1 %729 }
 0x53e   :  { %v733_v48 = vmul.f32 %v730_v47, %v3402_v27  ;;  %v735_v5 = vmul.f32 %v730_v47, %v3466_v10  ;;  %v732_v6 = vmul.f32 %v730_v47, %v3397_v26  ;;  %v734_v7 = vmul.f32 %v730_v47, %v3461_v9 }
 0x540   :  { %v743_v8 = vrot.slane %v733_v48, 1  ;;  %v744_v35 = vrot.slane %v735_v5, 1  ;;  %v740_v36 = vrot.slane %v732_v6, 1  ;;  %v741_v37 = vrot.slane %v734_v7, 1 }
 0x542   :  { %v745_v39 = vsel %vm341_vm0, %v743_v8, %v744_v35  ;;  %v742_v41 = vsel %vm341_vm0, %v740_v36, %v741_v37 }
 0x543   :  { %748 = vrot.lane.b32.xlu1 %v745_v39, %s3332_s19  ;;  %746 = vrot.lane.b32.xlu0 %v742_v41, %s3332_s19 }
 0x547   :  { %757 = vrot.lane.b32.xlu0 %v756_v42, %s3317_s25  ;;  %v784_v42 = vrot.slane %v782_v38, 7  ;;  %v839_v38 = vld [vmem:[#allocation2 + $0x130] sm:$0xff] }
 0x5b5   :  { %v3716_v44 = vpop.permute.xlu0 %746 }
 0x5b6   :  { %5118 = vst [vmem:[#allocation21_spill] sm:$0xff] %v3716_v44  ;;  %v3727_v44 = vpop.permute.xlu1 %748 }
 0x5b7   :  { %5119 = vst [vmem:[#allocation22_spill] sm:$0xff] %v3727_v44 }
 0x5b9   :  { %v758_v47 = vpop.permute.xlu0 %757 }
 0x5ba   :  { %v761_v48 = vmul.f32 %v758_v47, %v3402_v27  ;;  %v763_v5 = vmul.f32 %v758_v47, %v3466_v10  ;;  %v760_v6 = vmul.f32 %v758_v47, %v3397_v26  ;;  %v762_v7 = vmul.f32 %v758_v47, %v3461_v9 }
 0x5bc   :  { %v771_v8 = vrot.slane %v761_v48, 1  ;;  %v772_v35 = vrot.slane %v763_v5, 1  ;;  %v768_v36 = vrot.slane %v760_v6, 1  ;;  %v769_v37 = vrot.slane %v762_v7, 1 }
 0x5be   :  { %v773_v39 = vsel %vm341_vm0, %v771_v8, %v772_v35  ;;  %v770_v41 = vsel %vm341_vm0, %v768_v36, %v769_v37 }
 0x5bf   :  { %776 = vrot.lane.b32.xlu0 %v773_v39, %s3333_s24  ;;  %774 = vrot.lane.b32.xlu1 %v770_v41, %s3333_s24 }
 0x5c3   :  { %785 = vrot.lane.b32.xlu1 %v784_v42, %s3317_s25  ;;  %v841_v42 = vrot.slane %v839_v38, 6  ;;  %v867_v38 = vld [vmem:[#allocation2 + $0x138] sm:$0xff] }
 0x631   :  { %v3729_v46 = vpop.permute.xlu1 %774 }
 0x632   :  { %5120 = vst [vmem:[#allocation23_spill] sm:$0xff] %v3729_v46  ;;  %v3740_v46 = vpop.permute.xlu0 %776 }
 0x633   :  { %5121 = vst [vmem:[#allocation24_spill] sm:$0xff] %v3740_v46 }
 0x635   :  { %v786_v47 = vpop.permute.xlu1 %785 }
 0x636   :  { %v789_v48 = vmul.f32 %v786_v47, %v3402_v27  ;;  %v791_v5 = vmul.f32 %v786_v47, %v3466_v10  ;;  %v788_v6 = vmul.f32 %v786_v47, %v3397_v26  ;;  %v790_v7 = vmul.f32 %v786_v47, %v3461_v9 }
 0x638   :  { %v799_v8 = vrot.slane %v789_v48, 1  ;;  %v800_v35 = vrot.slane %v791_v5, 1  ;;  %v796_v36 = vrot.slane %v788_v6, 1  ;;  %v797_v37 = vrot.slane %v790_v7, 1 }
 0x63a   :  { %v801_v39 = vsel %vm341_vm0, %v799_v8, %v800_v35  ;;  %v798_v41 = vsel %vm341_vm0, %v796_v36, %v797_v37 }
 0x63b   :  { %804 = vrot.lane.b32.xlu1 %v801_v39, %s3333_s24  ;;  %802 = vrot.lane.b32.xlu0 %v798_v41, %s3333_s24 }
 0x63f   :  { %842 = vrot.lane.b32.xlu0 %v841_v42, %s3319_s30  ;;  %v869_v42 = vrot.slane %v867_v38, 6  ;;  %v895_v38 = vld [vmem:[#allocation2 + $0x140] sm:$0xff] }
 0x6ad   :  { %v3742_v44 = vpop.permute.xlu0 %802 }
 0x6ae   :  { %5122 = vst [vmem:[#allocation25_spill] sm:$0xff] %v3742_v44  ;;  %v3753_v44 = vpop.permute.xlu1 %804 }
 0x6af   :  { %5123 = vst [vmem:[#allocation26_spill] sm:$0xff] %v3753_v44 }
 0x6b1   :  { %v843_v47 = vpop.permute.xlu0 %842 }
 0x6b2   :  { %v846_v48 = vmul.f32 %v843_v47, %v3402_v27  ;;  %v848_v5 = vmul.f32 %v843_v47, %v3466_v10  ;;  %v845_v6 = vmul.f32 %v843_v47, %v3397_v26  ;;  %v847_v7 = vmul.f32 %v843_v47, %v3461_v9 }
 0x6b4   :  { %v856_v8 = vrot.slane %v846_v48, 2  ;;  %v857_v35 = vrot.slane %v848_v5, 2  ;;  %v853_v36 = vrot.slane %v845_v6, 2  ;;  %v854_v37 = vrot.slane %v847_v7, 2 }
 0x6b6   :  { %v858_v39 = vsel %vm818_vm1, %v856_v8, %v857_v35  ;;  %v855_v41 = vsel %vm818_vm1, %v853_v36, %v854_v37 }
 0x6b7   :  { %861 = vrot.lane.b32.xlu0 %v858_v39, %s3326_s13  ;;  %859 = vrot.lane.b32.xlu1 %v855_v41, %s3326_s13 }
 0x6bb   :  { %870 = vrot.lane.b32.xlu1 %v869_v42, %s3319_s30 }
 0x729   :  { %v3755_v47 = vpop.permute.xlu1 %859  ;;  %v3766_v44 = vpop.permute.xlu0 %861 }
 0x72a   :  { %5124 = vst [vmem:[#allocation27_spill] sm:$0xff] %v3755_v47  ;;  %v897_v47 = vrot.slane %v895_v38, 6  ;;  %5125 = vst [vmem:[#allocation28_spill] sm:$0xff] %v3766_v44  ;;  %v923_v38 = vld [vmem:[#allocation2 + $0x148] sm:$0xff] }
 0x72d   :  { %v871_v48 = vpop.permute.xlu1 %870 }
 0x72e   :  { %v874_v5 = vmul.f32 %v871_v48, %v3402_v27  ;;  %v876_v6 = vmul.f32 %v871_v48, %v3466_v10  ;;  %v873_v7 = vmul.f32 %v871_v48, %v3397_v26  ;;  %v875_v8 = vmul.f32 %v871_v48, %v3461_v9 }
 0x730   :  { %v884_v35 = vrot.slane %v874_v5, 2  ;;  %v885_v36 = vrot.slane %v876_v6, 2  ;;  %v881_v37 = vrot.slane %v873_v7, 2  ;;  %v882_v39 = vrot.slane %v875_v8, 2 }
 0x732   :  { %v886_v41 = vsel %vm818_vm1, %v884_v35, %v885_v36  ;;  %v883_v42 = vsel %vm818_vm1, %v881_v37, %v882_v39 }
 0x733   :  { %889 = vrot.lane.b32.xlu1 %v886_v41, %s3326_s13  ;;  %887 = vrot.lane.b32.xlu0 %v883_v42, %s3326_s13  ;;  %v925_v42 = vrot.slane %v923_v38, 6  ;;  %v951_v38 = vld [vmem:[#allocation2 + $0x150] sm:$0xff] }
 0x737   :  { %898 = vrot.lane.b32.xlu0 %v897_v47, %s3320_s1 }
 0x7a5   :  { %v3768_v46 = vpop.permute.xlu0 %887 }
 0x7a6   :  { %5126 = vst [vmem:[#allocation29_spill] sm:$0xff] %v3768_v46  ;;  %v3779_v46 = vpop.permute.xlu1 %889 }
 0x7a7   :  { %5127 = vst [vmem:[#allocation30_spill] sm:$0xff] %v3779_v46 }
 0x7a9   :  { %v899_v48 = vpop.permute.xlu0 %898 }
 0x7aa   :  { %v902_v5 = vmul.f32 %v899_v48, %v3402_v27  ;;  %v904_v6 = vmul.f32 %v899_v48, %v3466_v10  ;;  %v901_v7 = vmul.f32 %v899_v48, %v3397_v26  ;;  %v903_v8 = vmul.f32 %v899_v48, %v3461_v9 }
 0x7ac   :  { %v912_v35 = vrot.slane %v902_v5, 2  ;;  %v913_v36 = vrot.slane %v904_v6, 2  ;;  %v909_v37 = vrot.slane %v901_v7, 2  ;;  %v910_v39 = vrot.slane %v903_v8, 2 }
 0x7ae   :  { %v914_v47 = vsel %vm818_vm1, %v912_v35, %v913_v36  ;;  %v911_v41 = vsel %vm818_vm1, %v909_v37, %v910_v39 }
 0x7af   :  { %917 = vrot.lane.b32.xlu0 %v914_v47, %s3327_s14  ;;  %915 = vrot.lane.b32.xlu1 %v911_v41, %s3327_s14 }
 0x7b3   :  { %926 = vrot.lane.b32.xlu1 %v925_v42, %s3320_s1  ;;  %v953_v42 = vrot.slane %v951_v38, 6  ;;  %v979_v38 = vld [vmem:[#allocation2 + $0x158] sm:$0xff] }
 0x821   :  { %v3781_v44 = vpop.permute.xlu1 %915 }
 0x822   :  { %5128 = vst [vmem:[#allocation31_spill] sm:$0xff] %v3781_v44  ;;  %v3792_v44 = vpop.permute.xlu0 %917 }
 0x823   :  { %5129 = vst [vmem:[#allocation32_spill] sm:$0xff] %v3792_v44 }
 0x825   :  { %v927_v48 = vpop.permute.xlu1 %926 }
 0x826   :  { %v930_v5 = vmul.f32 %v927_v48, %v3402_v27  ;;  %v932_v6 = vmul.f32 %v927_v48, %v3466_v10  ;;  %v929_v7 = vmul.f32 %v927_v48, %v3397_v26  ;;  %v931_v8 = vmul.f32 %v927_v48, %v3461_v9 }
 0x828   :  { %v940_v35 = vrot.slane %v930_v5, 2  ;;  %v941_v36 = vrot.slane %v932_v6, 2  ;;  %v937_v37 = vrot.slane %v929_v7, 2  ;;  %v938_v39 = vrot.slane %v931_v8, 2 }
 0x82a   :  { %v942_v47 = vsel %vm818_vm1, %v940_v35, %v941_v36  ;;  %v939_v41 = vsel %vm818_vm1, %v937_v37, %v938_v39 }
 0x82b   :  { %945 = vrot.lane.b32.xlu1 %v942_v47, %s3327_s14  ;;  %943 = vrot.lane.b32.xlu0 %v939_v41, %s3327_s14 }
 0x82f   :  { %954 = vrot.lane.b32.xlu0 %v953_v42, %s3321_s4  ;;  %v981_v42 = vrot.slane %v979_v38, 6  ;;  %v1007_v38 = vld [vmem:[#allocation2 + $0x160] sm:$0xff] }
 0x89d   :  { %v3794_v46 = vpop.permute.xlu0 %943 }
 0x89e   :  { %5130 = vst [vmem:[#allocation33_spill] sm:$0xff] %v3794_v46  ;;  %v3805_v46 = vpop.permute.xlu1 %945 }
 0x89f   :  { %5131 = vst [vmem:[#allocation34_spill] sm:$0xff] %v3805_v46 }
 0x8a1   :  { %v955_v48 = vpop.permute.xlu0 %954 }
 0x8a2   :  { %v958_v5 = vmul.f32 %v955_v48, %v3402_v27  ;;  %v960_v6 = vmul.f32 %v955_v48, %v3466_v10  ;;  %v957_v7 = vmul.f32 %v955_v48, %v3397_v26  ;;  %v959_v8 = vmul.f32 %v955_v48, %v3461_v9 }
 0x8a4   :  { %v968_v35 = vrot.slane %v958_v5, 2  ;;  %v969_v36 = vrot.slane %v960_v6, 2  ;;  %v965_v37 = vrot.slane %v957_v7, 2  ;;  %v966_v39 = vrot.slane %v959_v8, 2 }
 0x8a6   :  { %v970_v47 = vsel %vm818_vm1, %v968_v35, %v969_v36  ;;  %v967_v41 = vsel %vm818_vm1, %v965_v37, %v966_v39 }
 0x8a7   :  { %973 = vrot.lane.b32.xlu0 %v970_v47, %s3328_s15  ;;  %971 = vrot.lane.b32.xlu1 %v967_v41, %s3328_s15 }
 0x8ab   :  { %982 = vrot.lane.b32.xlu1 %v981_v42, %s3321_s4  ;;  %v1009_v42 = vrot.slane %v1007_v38, 6 }
 0x919   :  { %v3807_v44 = vpop.permute.xlu1 %971 }
 0x91a   :  { %5132 = vst [vmem:[#allocation35_spill] sm:$0xff] %v3807_v44  ;;  %v3818_v44 = vpop.permute.xlu0 %973 }
 0x91b   :  { %5133 = vst [vmem:[#allocation36_spill] sm:$0xff] %v3818_v44 }
 0x91d   :  { %v983_v48 = vpop.permute.xlu1 %982 }
 0x91e   :  { %v986_v5 = vmul.f32 %v983_v48, %v3402_v27  ;;  %v988_v6 = vmul.f32 %v983_v48, %v3466_v10  ;;  %v985_v7 = vmul.f32 %v983_v48, %v3397_v26  ;;  %v987_v8 = vmul.f32 %v983_v48, %v3461_v9 }
 0x920   :  { %v996_v35 = vrot.slane %v986_v5, 2  ;;  %v997_v36 = vrot.slane %v988_v6, 2  ;;  %v993_v37 = vrot.slane %v985_v7, 2  ;;  %v994_v39 = vrot.slane %v987_v8, 2  ;;  %v3827_v7 = vld [vmem:[%s5097_s0] sm:$0xff] }
 0x922   :  { %v998_v47 = vsel %vm818_vm1, %v996_v35, %v997_v36  ;;  %v995_v41 = vsel %vm818_vm1, %v993_v37, %v994_v39 }
 0x923   :  { %1001 = vrot.lane.b32.xlu1 %v998_v47, %s3328_s15  ;;  %999 = vrot.lane.b32.xlu0 %v995_v41, %s3328_s15  ;;  %v1035_v47 = vld [vmem:[#allocation2 + $0x168] sm:$0xff] }
 0x927   :  { %1010 = vrot.lane.b32.xlu0 %v1009_v42, %s3322_s5  ;;  %v1037_v42 = vrot.slane %v1035_v47, 6 }
 0x995   :  { %v3820_v26 = vpop.permute.xlu0 %999 }
 0x996   :  { %5134 = vst [vmem:[#allocation37_spill] sm:$0xff] %v3820_v26  ;;  %v3836_v26 = vpop.permute.xlu1 %1001 }
 0x997   :  { %5135 = vst [vmem:[#allocation38_spill] sm:$0xff] %v3836_v26 }
 0x999   :  { %v1011_v48 = vpop.permute.xlu0 %1010 }
 0x99a   :  { %v1014_v5 = vmul.f32 %v1011_v48, %v3402_v27  ;;  %v1016_v6 = vmul.f32 %v1011_v48, %v3466_v10  ;;  %v1013_v8 = vmul.f32 %v3827_v7, %v1011_v48  ;;  %v1015_v35 = vmul.f32 %v1011_v48, %v3461_v9 }
 0x99c   :  { %v1024_v36 = vrot.slane %v1014_v5, 2  ;;  %v1025_v37 = vrot.slane %v1016_v6, 2  ;;  %v1021_v39 = vrot.slane %v1013_v8, 2  ;;  %v1022_v38 = vrot.slane %v1015_v35, 2  ;;  %v3843_v5 = vld [vmem:[%s5097_s0 + $0x8] sm:$0xff] }
 0x99e   :  { %v1026_v41 = vsel %vm818_vm1, %v1024_v36, %v1025_v37  ;;  %v1023_v27 = vsel %vm818_vm1, %v1021_v39, %v1022_v38 }
 0x99f   :  { %1029 = vrot.lane.b32.xlu0 %v1026_v41, %s3329_s16  ;;  %1027 = vrot.lane.b32.xlu1 %v1023_v27, %s3329_s16  ;;  %v1063_v41 = vld [vmem:[#allocation2 + $0x170] sm:$0xff] }
 0x9a3   :  { %1038 = vrot.lane.b32.xlu1 %v1037_v42, %s3322_s5 }
 0xa11   :  { %v3838_v44 = vpop.permute.xlu1 %1027  ;;  %v3854_v26 = vpop.permute.xlu0 %1029 }
 0xa12   :  { %5136 = vst [vmem:[#allocation39_spill] sm:$0xff] %v3838_v44  ;;  %v1065_v44 = vrot.slane %v1063_v41, 6  ;;  %5137 = vst [vmem:[#allocation40_spill] sm:$0xff] %v3854_v26  ;;  %v1091_v41 = vld [vmem:[#allocation2 + $0x178] sm:$0xff] }
 0xa15   :  { %v1039_v48 = vpop.permute.xlu1 %1038 }
 0xa16   :  { %v1042_v6 = vmul.f32 %v3843_v5, %v1039_v48  ;;  %v1044_v8 = vmul.f32 %v1039_v48, %v3466_v10  ;;  %v1041_v35 = vmul.f32 %v3827_v7, %v1039_v48  ;;  %v1043_v36 = vmul.f32 %v1039_v48, %v3461_v9 }
 0xa18   :  { %v1052_v37 = vrot.slane %v1042_v6, 2  ;;  %v1053_v39 = vrot.slane %v1044_v8, 2  ;;  %v1049_v38 = vrot.slane %v1041_v35, 2  ;;  %v1050_v47 = vrot.slane %v1043_v36, 2 }
 0xa1a   :  { %v1054_v27 = vsel %vm818_vm1, %v1052_v37, %v1053_v39  ;;  %v1051_v42 = vsel %vm818_vm1, %v1049_v38, %v1050_v47 }
 0xa1b   :  { %1057 = vrot.lane.b32.xlu1 %v1054_v27, %s3329_s16  ;;  %1055 = vrot.lane.b32.xlu0 %v1051_v42, %s3329_s16  ;;  %v1093_v42 = vrot.slane %v1091_v41, 6  ;;  %v1119_v41 = vld [vmem:[#allocation2 + $0x180] sm:$0xff] }
 0xa1f   :  { %1066 = vrot.lane.b32.xlu0 %v1065_v44, %s3323_s6 }
 0xa8d   :  { %v3856_v46 = vpop.permute.xlu0 %1055 }
 0xa8e   :  { %5138 = vst [vmem:[#allocation41_spill] sm:$0xff] %v3856_v46  ;;  %v3867_v46 = vpop.permute.xlu1 %1057 }
 0xa8f   :  { %5139 = vst [vmem:[#allocation42_spill] sm:$0xff] %v3867_v46 }
 0xa91   :  { %v1067_v48 = vpop.permute.xlu0 %1066 }
 0xa92   :  { %v1070_v6 = vmul.f32 %v3843_v5, %v1067_v48  ;;  %v1072_v8 = vmul.f32 %v1067_v48, %v3466_v10  ;;  %v1069_v35 = vmul.f32 %v3827_v7, %v1067_v48  ;;  %v1071_v36 = vmul.f32 %v1067_v48, %v3461_v9 }
 0xa94   :  { %v1080_v37 = vrot.slane %v1070_v6, 2  ;;  %v1081_v39 = vrot.slane %v1072_v8, 2  ;;  %v1077_v38 = vrot.slane %v1069_v35, 2  ;;  %v1078_v47 = vrot.slane %v1071_v36, 2 }
 0xa96   :  { %v1082_v44 = vsel %vm818_vm1, %v1080_v37, %v1081_v39  ;;  %v1079_v27 = vsel %vm818_vm1, %v1077_v38, %v1078_v47 }
 0xa97   :  { %1085 = vrot.lane.b32.xlu0 %v1082_v44, %s3330_s17  ;;  %1083 = vrot.lane.b32.xlu1 %v1079_v27, %s3330_s17 }
 0xa9b   :  { %1094 = vrot.lane.b32.xlu1 %v1093_v42, %s3323_s6  ;;  %v1121_v42 = vrot.slane %v1119_v41, 6  ;;  %v1147_v41 = vld [vmem:[#allocation2 + $0x188] sm:$0xff] }
 0xb09   :  { %v3869_v26 = vpop.permute.xlu1 %1083 }
 0xb0a   :  { %5140 = vst [vmem:[#allocation43_spill] sm:$0xff] %v3869_v26  ;;  %v3880_v26 = vpop.permute.xlu0 %1085 }
 0xb0b   :  { %5141 = vst [vmem:[#allocation44_spill] sm:$0xff] %v3880_v26 }
 0xb0d   :  { %v1095_v48 = vpop.permute.xlu1 %1094 }
 0xb0e   :  { %v1098_v6 = vmul.f32 %v3843_v5, %v1095_v48  ;;  %v1100_v8 = vmul.f32 %v1095_v48, %v3466_v10  ;;  %v1097_v35 = vmul.f32 %v3827_v7, %v1095_v48  ;;  %v1099_v36 = vmul.f32 %v1095_v48, %v3461_v9 }
 0xb10   :  { %v1108_v37 = vrot.slane %v1098_v6, 2  ;;  %v1109_v39 = vrot.slane %v1100_v8, 2  ;;  %v1105_v38 = vrot.slane %v1097_v35, 2  ;;  %v1106_v47 = vrot.slane %v1099_v36, 2 }
 0xb12   :  { %v1110_v44 = vsel %vm818_vm1, %v1108_v37, %v1109_v39  ;;  %v1107_v27 = vsel %vm818_vm1, %v1105_v38, %v1106_v47 }
 0xb13   :  { %1113 = vrot.lane.b32.xlu1 %v1110_v44, %s3330_s17  ;;  %1111 = vrot.lane.b32.xlu0 %v1107_v27, %s3330_s17 }
 0xb17   :  { %1122 = vrot.lane.b32.xlu0 %v1121_v42, %s3324_s7  ;;  %v1149_v42 = vrot.slane %v1147_v41, 6 }
 0xb85   :  { %v3882_v46 = vpop.permute.xlu0 %1111 }
 0xb86   :  { %5142 = vst [vmem:[#allocation45_spill] sm:$0xff] %v3882_v46 }
 0xb89   :  { %v1123_v48 = vpop.permute.xlu0 %1122 }
 0xb8a   :  { %v1126_v6 = vmul.f32 %v3843_v5, %v1123_v48  ;;  %v1128_v8 = vmul.f32 %v1123_v48, %v3466_v10  ;;  %v1125_v35 = vmul.f32 %v3827_v7, %v1123_v48  ;;  %v1127_v36 = vmul.f32 %v1123_v48, %v3461_v9  ;;  %v3893_v10 = vpop.permute.xlu1 %1113 }
 0xb8b   :  { %5143 = vst [vmem:[#allocation46_spill] sm:$0xff] %v3893_v10 }
 0xb8c   :  { %v1136_v37 = vrot.slane %v1126_v6, 2  ;;  %v1137_v39 = vrot.slane %v1128_v8, 2  ;;  %v1133_v38 = vrot.slane %v1125_v35, 2  ;;  %v1134_v47 = vrot.slane %v1127_v36, 2  ;;  %v3901_v6 = vld [vmem:[%s5097_s0 + $0x18] sm:$0xff]  ;;  %v3908_v36 = vld [vmem:[%s5097_s0 + $0x10] sm:$0xff] }
 0xb8e   :  { %v1138_v44 = vsel %vm818_vm1, %v1136_v37, %v1137_v39  ;;  %v1135_v27 = vsel %vm818_vm1, %v1133_v38, %v1134_v47 }
 0xb8f   :  { %1141 = vrot.lane.b32.xlu0 %v1138_v44, %s3331_s18  ;;  %1139 = vrot.lane.b32.xlu1 %v1135_v27, %s3331_s18  ;;  %v1175_v44 = vld [vmem:[#allocation2 + $0x190] sm:$0xff] }
 0xb93   :  { %1150 = vrot.lane.b32.xlu1 %v1149_v42, %s3324_s7 }
 0xc01   :  { %v3895_v46 = vpop.permute.xlu1 %1139  ;;  %v3916_v10 = vpop.permute.xlu0 %1141 }
 0xc02   :  { %5144 = vst [vmem:[#allocation47_spill] sm:$0xff] %v3895_v46  ;;  %v1177_v46 = vrot.slane %v1175_v44, 6  ;;  %5145 = vst [vmem:[#allocation48_spill] sm:$0xff] %v3916_v10  ;;  %v1203_v44 = vld [vmem:[#allocation2 + $0x198] sm:$0xff] }
 0xc05   :  { %v1151_v9 = vpop.permute.xlu1 %1150 }
 0xc06   :  { %v1154_v48 = vmul.f32 %v3843_v5, %v1151_v9  ;;  %v1156_v8 = vmul.f32 %v3901_v6, %v1151_v9  ;;  %v1153_v35 = vmul.f32 %v3827_v7, %v1151_v9  ;;  %v1155_v37 = vmul.f32 %v3908_v36, %v1151_v9 }
 0xc08   :  { %v1164_v39 = vrot.slane %v1154_v48, 2  ;;  %v1165_v38 = vrot.slane %v1156_v8, 2  ;;  %v1161_v47 = vrot.slane %v1153_v35, 2  ;;  %v1162_v41 = vrot.slane %v1155_v37, 2 }
 0xc0a   :  { %v1166_v27 = vsel %vm818_vm1, %v1164_v39, %v1165_v38  ;;  %v1163_v42 = vsel %vm818_vm1, %v1161_v47, %v1162_v41 }
 0xc0b   :  { %1169 = vrot.lane.b32.xlu1 %v1166_v27, %s3331_s18  ;;  %1167 = vrot.lane.b32.xlu0 %v1163_v42, %s3331_s18  ;;  %v1205_v42 = vrot.slane %v1203_v44, 6  ;;  %v1231_v44 = vld [vmem:[#allocation2 + $0x1a0] sm:$0xff] }
 0xc0f   :  { %1178 = vrot.lane.b32.xlu0 %v1177_v46, %s3325_s8 }
 0xc7d   :  { %v3918_v26 = vpop.permute.xlu0 %1167 }
 0xc7e   :  { %5146 = vst [vmem:[#allocation49_spill] sm:$0xff] %v3918_v26  ;;  %v3929_v26 = vpop.permute.xlu1 %1169 }
 0xc7f   :  { %5147 = vst [vmem:[#allocation50_spill] sm:$0xff] %v3929_v26 }
 0xc81   :  { %v1179_v9 = vpop.permute.xlu0 %1178 }
 0xc82   :  { %v1182_v48 = vmul.f32 %v3843_v5, %v1179_v9  ;;  %v1184_v8 = vmul.f32 %v3901_v6, %v1179_v9  ;;  %v1181_v35 = vmul.f32 %v3827_v7, %v1179_v9  ;;  %v1183_v37 = vmul.f32 %v3908_v36, %v1179_v9 }
 0xc84   :  { %v1192_v39 = vrot.slane %v1182_v48, 2  ;;  %v1193_v38 = vrot.slane %v1184_v8, 2  ;;  %v1189_v47 = vrot.slane %v1181_v35, 2  ;;  %v1190_v41 = vrot.slane %v1183_v37, 2 }
 0xc86   :  { %v1194_v46 = vsel %vm818_vm1, %v1192_v39, %v1193_v38  ;;  %v1191_v27 = vsel %vm818_vm1, %v1189_v47, %v1190_v41 }
 0xc87   :  { %1197 = vrot.lane.b32.xlu0 %v1194_v46, %s3332_s19  ;;  %1195 = vrot.lane.b32.xlu1 %v1191_v27, %s3332_s19 }
 0xc8b   :  { %1206 = vrot.lane.b32.xlu1 %v1205_v42, %s3325_s8  ;;  %v1233_v42 = vrot.slane %v1231_v44, 6  ;;  %v1259_v44 = vld [vmem:[#allocation2 + $0x1a8] sm:$0xff] }
 0xcf9   :  { %v3931_v10 = vpop.permute.xlu1 %1195 }
 0xcfa   :  { %5148 = vst [vmem:[#allocation51_spill] sm:$0xff] %v3931_v10  ;;  %v3942_v10 = vpop.permute.xlu0 %1197 }
 0xcfb   :  { %5149 = vst [vmem:[#allocation52_spill] sm:$0xff] %v3942_v10 }
 0xcfd   :  { %v1207_v9 = vpop.permute.xlu1 %1206 }
 0xcfe   :  { %v1210_v48 = vmul.f32 %v3843_v5, %v1207_v9  ;;  %v1212_v8 = vmul.f32 %v3901_v6, %v1207_v9  ;;  %v1209_v35 = vmul.f32 %v3827_v7, %v1207_v9  ;;  %v1211_v37 = vmul.f32 %v3908_v36, %v1207_v9 }
 0xd00   :  { %v1220_v39 = vrot.slane %v1210_v48, 2  ;;  %v1221_v38 = vrot.slane %v1212_v8, 2  ;;  %v1217_v47 = vrot.slane %v1209_v35, 2  ;;  %v1218_v41 = vrot.slane %v1211_v37, 2 }
 0xd02   :  { %v1222_v46 = vsel %vm818_vm1, %v1220_v39, %v1221_v38  ;;  %v1219_v27 = vsel %vm818_vm1, %v1217_v47, %v1218_v41 }
 0xd03   :  { %1225 = vrot.lane.b32.xlu1 %v1222_v46, %s3332_s19  ;;  %1223 = vrot.lane.b32.xlu0 %v1219_v27, %s3332_s19 }
 0xd07   :  { %1234 = vrot.lane.b32.xlu0 %v1233_v42, %s3317_s25  ;;  %v1261_v42 = vrot.slane %v1259_v44, 6  ;;  %v1316_v44 = vld [vmem:[#allocation2 + $0x1c0] sm:$0xff] }
 0xd75   :  { %v3944_v26 = vpop.permute.xlu0 %1223 }
 0xd76   :  { %5150 = vst [vmem:[#allocation53_spill] sm:$0xff] %v3944_v26  ;;  %v3955_v26 = vpop.permute.xlu1 %1225 }
 0xd77   :  { %5151 = vst [vmem:[#allocation54_spill] sm:$0xff] %v3955_v26 }
 0xd79   :  { %v1235_v9 = vpop.permute.xlu0 %1234 }
 0xd7a   :  { %v1238_v48 = vmul.f32 %v3843_v5, %v1235_v9  ;;  %v1240_v8 = vmul.f32 %v3901_v6, %v1235_v9  ;;  %v1237_v35 = vmul.f32 %v3827_v7, %v1235_v9  ;;  %v1239_v37 = vmul.f32 %v3908_v36, %v1235_v9 }
 0xd7c   :  { %v1248_v39 = vrot.slane %v1238_v48, 2  ;;  %v1249_v38 = vrot.slane %v1240_v8, 2  ;;  %v1245_v47 = vrot.slane %v1237_v35, 2  ;;  %v1246_v41 = vrot.slane %v1239_v37, 2 }
 0xd7e   :  { %v1250_v46 = vsel %vm818_vm1, %v1248_v39, %v1249_v38  ;;  %v1247_v27 = vsel %vm818_vm1, %v1245_v47, %v1246_v41 }
 0xd7f   :  { %1253 = vrot.lane.b32.xlu0 %v1250_v46, %s3333_s24  ;;  %1251 = vrot.lane.b32.xlu1 %v1247_v27, %s3333_s24 }
 0xd83   :  { %1262 = vrot.lane.b32.xlu1 %v1261_v42, %s3317_s25  ;;  %v1318_v42 = vrot.slane %v1316_v44, 5  ;;  %v1344_v44 = vld [vmem:[#allocation2 + $0x1c8] sm:$0xff] }
 0xdf1   :  { %v3957_v10 = vpop.permute.xlu1 %1251 }
 0xdf2   :  { %5152 = vst [vmem:[#allocation55_spill] sm:$0xff] %v3957_v10  ;;  %v3968_v10 = vpop.permute.xlu0 %1253 }
 0xdf3   :  { %5153 = vst [vmem:[#allocation56_spill] sm:$0xff] %v3968_v10 }
 0xdf5   :  { %v1263_v9 = vpop.permute.xlu1 %1262 }
 0xdf6   :  { %v1266_v48 = vmul.f32 %v3843_v5, %v1263_v9  ;;  %v1268_v8 = vmul.f32 %v3901_v6, %v1263_v9  ;;  %v1265_v35 = vmul.f32 %v3827_v7, %v1263_v9  ;;  %v1267_v37 = vmul.f32 %v3908_v36, %v1263_v9 }
 0xdf8   :  { %v1276_v39 = vrot.slane %v1266_v48, 2  ;;  %v1277_v38 = vrot.slane %v1268_v8, 2  ;;  %v1273_v47 = vrot.slane %v1265_v35, 2  ;;  %v1274_v41 = vrot.slane %v1267_v37, 2 }
 0xdfa   :  { %v1278_v46 = vsel %vm818_vm1, %v1276_v39, %v1277_v38  ;;  %v1275_v27 = vsel %vm818_vm1, %v1273_v47, %v1274_v41 }
 0xdfb   :  { %1281 = vrot.lane.b32.xlu1 %v1278_v46, %s3333_s24  ;;  %1279 = vrot.lane.b32.xlu0 %v1275_v27, %s3333_s24 }
 0xdff   :  { %1319 = vrot.lane.b32.xlu0 %v1318_v42, %s3319_s30  ;;  %v1346_v42 = vrot.slane %v1344_v44, 5  ;;  %v1372_v44 = vld [vmem:[#allocation2 + $0x1d0] sm:$0xff] }
 0xe6d   :  { %v3970_v26 = vpop.permute.xlu0 %1279 }
 0xe6e   :  { %5154 = vst [vmem:[#allocation57_spill] sm:$0xff] %v3970_v26  ;;  %v3981_v26 = vpop.permute.xlu1 %1281 }
 0xe6f   :  { %5155 = vst [vmem:[#allocation58_spill] sm:$0xff] %v3981_v26 }
 0xe71   :  { %v1320_v9 = vpop.permute.xlu0 %1319 }
 0xe72   :  { %v1323_v48 = vmul.f32 %v3843_v5, %v1320_v9  ;;  %v1325_v8 = vmul.f32 %v3901_v6, %v1320_v9  ;;  %v1322_v35 = vmul.f32 %v3827_v7, %v1320_v9  ;;  %v1324_v37 = vmul.f32 %v3908_v36, %v1320_v9 }
 0xe74   :  { %v1333_v39 = vrot.slane %v1323_v48, 3  ;;  %v1334_v38 = vrot.slane %v1325_v8, 3  ;;  %v1330_v47 = vrot.slane %v1322_v35, 3  ;;  %v1331_v41 = vrot.slane %v1324_v37, 3 }
 0xe76   :  { %v1335_v46 = vsel %vm1295_vm2, %v1333_v39, %v1334_v38  ;;  %v1332_v27 = vsel %vm1295_vm2, %v1330_v47, %v1331_v41 }
 0xe77   :  { %1338 = vrot.lane.b32.xlu0 %v1335_v46, %s3326_s13  ;;  %1336 = vrot.lane.b32.xlu1 %v1332_v27, %s3326_s13 }
 0xe7b   :  { %1347 = vrot.lane.b32.xlu1 %v1346_v42, %s3319_s30 }
 0xee9   :  { %v3983_v9 = vpop.permute.xlu1 %1336  ;;  %v3994_v26 = vpop.permute.xlu0 %1338 }
 0xeea   :  { %5156 = vst [vmem:[#allocation59_spill] sm:$0xff] %v3983_v9  ;;  %v1374_v9 = vrot.slane %v1372_v44, 5  ;;  %5157 = vst [vmem:[#allocation60_spill] sm:$0xff] %v3994_v26  ;;  %v1400_v44 = vld [vmem:[#allocation2 + $0x1d8] sm:$0xff] }
 0xeed   :  { %v1348_v48 = vpop.permute.xlu1 %1347 }
 0xeee   :  { %v1351_v8 = vmul.f32 %v3843_v5, %v1348_v48  ;;  %v1353_v35 = vmul.f32 %v3901_v6, %v1348_v48  ;;  %v1350_v37 = vmul.f32 %v3827_v7, %v1348_v48  ;;  %v1352_v39 = vmul.f32 %v3908_v36, %v1348_v48 }
 0xef0   :  { %v1361_v38 = vrot.slane %v1351_v8, 3  ;;  %v1362_v47 = vrot.slane %v1353_v35, 3  ;;  %v1358_v41 = vrot.slane %v1350_v37, 3  ;;  %v1359_v46 = vrot.slane %v1352_v39, 3 }
 0xef2   :  { %v1363_v27 = vsel %vm1295_vm2, %v1361_v38, %v1362_v47  ;;  %v1360_v42 = vsel %vm1295_vm2, %v1358_v41, %v1359_v46 }
 0xef3   :  { %1366 = vrot.lane.b32.xlu1 %v1363_v27, %s3326_s13  ;;  %1364 = vrot.lane.b32.xlu0 %v1360_v42, %s3326_s13  ;;  %v1402_v42 = vrot.slane %v1400_v44, 5  ;;  %v1428_v44 = vld [vmem:[#allocation2 + $0x1e0] sm:$0xff] }
 0xef7   :  { %1375 = vrot.lane.b32.xlu0 %v1374_v9, %s3320_s1 }
 0xf65   :  { %v3996_v10 = vpop.permute.xlu0 %1364 }
 0xf66   :  { %5158 = vst [vmem:[#allocation61_spill] sm:$0xff] %v3996_v10  ;;  %v4007_v10 = vpop.permute.xlu1 %1366 }
 0xf67   :  { %5159 = vst [vmem:[#allocation62_spill] sm:$0xff] %v4007_v10 }
 0xf69   :  { %v1376_v48 = vpop.permute.xlu0 %1375 }
 0xf6a   :  { %v1379_v8 = vmul.f32 %v3843_v5, %v1376_v48  ;;  %v1381_v35 = vmul.f32 %v3901_v6, %v1376_v48  ;;  %v1378_v37 = vmul.f32 %v3827_v7, %v1376_v48  ;;  %v1380_v39 = vmul.f32 %v3908_v36, %v1376_v48 }
 0xf6c   :  { %v1389_v38 = vrot.slane %v1379_v8, 3  ;;  %v1390_v47 = vrot.slane %v1381_v35, 3  ;;  %v1386_v41 = vrot.slane %v1378_v37, 3  ;;  %v1387_v46 = vrot.slane %v1380_v39, 3 }
 0xf6e   :  { %v1391_v9 = vsel %vm1295_vm2, %v1389_v38, %v1390_v47  ;;  %v1388_v27 = vsel %vm1295_vm2, %v1386_v41, %v1387_v46 }
 0xf6f   :  { %1394 = vrot.lane.b32.xlu0 %v1391_v9, %s3327_s14  ;;  %1392 = vrot.lane.b32.xlu1 %v1388_v27, %s3327_s14 }
 0xf73   :  { %1403 = vrot.lane.b32.xlu1 %v1402_v42, %s3320_s1  ;;  %v1430_v42 = vrot.slane %v1428_v44, 5  ;;  %v1456_v44 = vld [vmem:[#allocation2 + $0x1e8] sm:$0xff] }
 0xfe1   :  { %v4009_v26 = vpop.permute.xlu1 %1392 }
 0xfe2   :  { %5160 = vst [vmem:[#allocation63_spill] sm:$0xff] %v4009_v26  ;;  %v4020_v26 = vpop.permute.xlu0 %1394 }
 0xfe3   :  { %5161 = vst [vmem:[#allocation64_spill] sm:$0xff] %v4020_v26 }
 0xfe5   :  { %v1404_v48 = vpop.permute.xlu1 %1403 }
 0xfe6   :  { %v1407_v8 = vmul.f32 %v3843_v5, %v1404_v48  ;;  %v1409_v35 = vmul.f32 %v3901_v6, %v1404_v48  ;;  %v1406_v37 = vmul.f32 %v3827_v7, %v1404_v48  ;;  %v1408_v39 = vmul.f32 %v3908_v36, %v1404_v48 }
 0xfe8   :  { %v1417_v38 = vrot.slane %v1407_v8, 3  ;;  %v1418_v47 = vrot.slane %v1409_v35, 3  ;;  %v1414_v41 = vrot.slane %v1406_v37, 3  ;;  %v1415_v46 = vrot.slane %v1408_v39, 3 }
 0xfea   :  { %v1419_v9 = vsel %vm1295_vm2, %v1417_v38, %v1418_v47  ;;  %v1416_v27 = vsel %vm1295_vm2, %v1414_v41, %v1415_v46 }
 0xfeb   :  { %1422 = vrot.lane.b32.xlu1 %v1419_v9, %s3327_s14  ;;  %1420 = vrot.lane.b32.xlu0 %v1416_v27, %s3327_s14 }
 0xfef   :  { %1431 = vrot.lane.b32.xlu0 %v1430_v42, %s3321_s4  ;;  %v1458_v42 = vrot.slane %v1456_v44, 5  ;;  %v1484_v44 = vld [vmem:[#allocation2 + $0x1f0] sm:$0xff] }
0x105d   :  { %v4022_v10 = vpop.permute.xlu0 %1420 }
0x105e   :  { %5162 = vst [vmem:[#allocation65_spill] sm:$0xff] %v4022_v10  ;;  %v4033_v10 = vpop.permute.xlu1 %1422 }
0x105f   :  { %5163 = vst [vmem:[#allocation66_spill] sm:$0xff] %v4033_v10 }
0x1061   :  { %v1432_v48 = vpop.permute.xlu0 %1431 }
0x1062   :  { %v1435_v8 = vmul.f32 %v3843_v5, %v1432_v48  ;;  %v1437_v35 = vmul.f32 %v3901_v6, %v1432_v48  ;;  %v1434_v37 = vmul.f32 %v3827_v7, %v1432_v48  ;;  %v1436_v39 = vmul.f32 %v3908_v36, %v1432_v48 }
0x1064   :  { %v1445_v38 = vrot.slane %v1435_v8, 3  ;;  %v1446_v47 = vrot.slane %v1437_v35, 3  ;;  %v1442_v41 = vrot.slane %v1434_v37, 3  ;;  %v1443_v46 = vrot.slane %v1436_v39, 3 }
0x1066   :  { %v1447_v9 = vsel %vm1295_vm2, %v1445_v38, %v1446_v47  ;;  %v1444_v27 = vsel %vm1295_vm2, %v1442_v41, %v1443_v46 }
0x1067   :  { %1450 = vrot.lane.b32.xlu0 %v1447_v9, %s3328_s15  ;;  %1448 = vrot.lane.b32.xlu1 %v1444_v27, %s3328_s15 }
0x106b   :  { %1459 = vrot.lane.b32.xlu1 %v1458_v42, %s3321_s4  ;;  %v1486_v42 = vrot.slane %v1484_v44, 5  ;;  %v1512_v44 = vld [vmem:[#allocation2 + $0x1f8] sm:$0xff] }
0x10d9   :  { %v4035_v26 = vpop.permute.xlu1 %1448 }
0x10da   :  { %5164 = vst [vmem:[#allocation67_spill] sm:$0xff] %v4035_v26  ;;  %v4046_v26 = vpop.permute.xlu0 %1450 }
0x10db   :  { %5165 = vst [vmem:[#allocation68_spill] sm:$0xff] %v4046_v26 }
0x10dd   :  { %v1460_v48 = vpop.permute.xlu1 %1459 }
0x10de   :  { %v1463_v8 = vmul.f32 %v3843_v5, %v1460_v48  ;;  %v1465_v35 = vmul.f32 %v3901_v6, %v1460_v48  ;;  %v1462_v37 = vmul.f32 %v3827_v7, %v1460_v48  ;;  %v1464_v39 = vmul.f32 %v3908_v36, %v1460_v48 }
0x10e0   :  { %v1473_v38 = vrot.slane %v1463_v8, 3  ;;  %v1474_v47 = vrot.slane %v1465_v35, 3  ;;  %v1470_v41 = vrot.slane %v1462_v37, 3  ;;  %v1471_v46 = vrot.slane %v1464_v39, 3 }
0x10e2   :  { %v1475_v9 = vsel %vm1295_vm2, %v1473_v38, %v1474_v47  ;;  %v1472_v27 = vsel %vm1295_vm2, %v1470_v41, %v1471_v46 }
0x10e3   :  { %1478 = vrot.lane.b32.xlu1 %v1475_v9, %s3328_s15  ;;  %1476 = vrot.lane.b32.xlu0 %v1472_v27, %s3328_s15 }
0x10e7   :  { %1487 = vrot.lane.b32.xlu0 %v1486_v42, %s3322_s5  ;;  %v1514_v42 = vrot.slane %v1512_v44, 5  ;;  %v1540_v44 = vld [vmem:[#allocation2 + $0x200] sm:$0xff] }
0x1155   :  { %v4048_v10 = vpop.permute.xlu0 %1476 }
0x1156   :  { %5166 = vst [vmem:[#allocation69_spill] sm:$0xff] %v4048_v10  ;;  %v4059_v10 = vpop.permute.xlu1 %1478 }
0x1157   :  { %5167 = vst [vmem:[#allocation70_spill] sm:$0xff] %v4059_v10 }
0x1159   :  { %v1488_v48 = vpop.permute.xlu0 %1487 }
0x115a   :  { %v1491_v8 = vmul.f32 %v3843_v5, %v1488_v48  ;;  %v1493_v35 = vmul.f32 %v3901_v6, %v1488_v48  ;;  %v1490_v37 = vmul.f32 %v3827_v7, %v1488_v48  ;;  %v1492_v39 = vmul.f32 %v3908_v36, %v1488_v48 }
0x115c   :  { %v1501_v38 = vrot.slane %v1491_v8, 3  ;;  %v1502_v47 = vrot.slane %v1493_v35, 3  ;;  %v1498_v41 = vrot.slane %v1490_v37, 3  ;;  %v1499_v46 = vrot.slane %v1492_v39, 3 }
0x115e   :  { %v1503_v9 = vsel %vm1295_vm2, %v1501_v38, %v1502_v47  ;;  %v1500_v27 = vsel %vm1295_vm2, %v1498_v41, %v1499_v46 }
0x115f   :  { %1506 = vrot.lane.b32.xlu0 %v1503_v9, %s3329_s16  ;;  %1504 = vrot.lane.b32.xlu1 %v1500_v27, %s3329_s16 }
0x1163   :  { %1515 = vrot.lane.b32.xlu1 %v1514_v42, %s3322_s5  ;;  %v1542_v42 = vrot.slane %v1540_v44, 5  ;;  %v1568_v44 = vld [vmem:[#allocation2 + $0x208] sm:$0xff] }
0x11d1   :  { %v4061_v26 = vpop.permute.xlu1 %1504 }
0x11d2   :  { %5168 = vst [vmem:[#allocation71_spill] sm:$0xff] %v4061_v26  ;;  %v4072_v26 = vpop.permute.xlu0 %1506 }
0x11d3   :  { %5169 = vst [vmem:[#allocation72_spill] sm:$0xff] %v4072_v26 }
0x11d5   :  { %v1516_v48 = vpop.permute.xlu1 %1515 }
0x11d6   :  { %v1519_v8 = vmul.f32 %v3843_v5, %v1516_v48  ;;  %v1521_v35 = vmul.f32 %v3901_v6, %v1516_v48  ;;  %v1518_v37 = vmul.f32 %v3827_v7, %v1516_v48  ;;  %v1520_v39 = vmul.f32 %v3908_v36, %v1516_v48 }
0x11d8   :  { %v1529_v38 = vrot.slane %v1519_v8, 3  ;;  %v1530_v47 = vrot.slane %v1521_v35, 3  ;;  %v1526_v41 = vrot.slane %v1518_v37, 3  ;;  %v1527_v46 = vrot.slane %v1520_v39, 3 }
0x11da   :  { %v1531_v9 = vsel %vm1295_vm2, %v1529_v38, %v1530_v47  ;;  %v1528_v27 = vsel %vm1295_vm2, %v1526_v41, %v1527_v46 }
0x11db   :  { %1534 = vrot.lane.b32.xlu1 %v1531_v9, %s3329_s16  ;;  %1532 = vrot.lane.b32.xlu0 %v1528_v27, %s3329_s16 }
0x11df   :  { %1543 = vrot.lane.b32.xlu0 %v1542_v42, %s3323_s6  ;;  %v1570_v42 = vrot.slane %v1568_v44, 5  ;;  %v1596_v44 = vld [vmem:[#allocation2 + $0x210] sm:$0xff] }
0x124d   :  { %v4074_v10 = vpop.permute.xlu0 %1532 }
0x124e   :  { %5170 = vst [vmem:[#allocation73_spill] sm:$0xff] %v4074_v10  ;;  %v4085_v10 = vpop.permute.xlu1 %1534 }
0x124f   :  { %5171 = vst [vmem:[#allocation74_spill] sm:$0xff] %v4085_v10 }
0x1251   :  { %v1544_v48 = vpop.permute.xlu0 %1543 }
0x1252   :  { %v1547_v8 = vmul.f32 %v3843_v5, %v1544_v48  ;;  %v1549_v35 = vmul.f32 %v3901_v6, %v1544_v48  ;;  %v1546_v37 = vmul.f32 %v3827_v7, %v1544_v48  ;;  %v1548_v39 = vmul.f32 %v3908_v36, %v1544_v48 }
0x1254   :  { %v1557_v38 = vrot.slane %v1547_v8, 3  ;;  %v1558_v47 = vrot.slane %v1549_v35, 3  ;;  %v1554_v41 = vrot.slane %v1546_v37, 3  ;;  %v1555_v46 = vrot.slane %v1548_v39, 3 }
0x1256   :  { %v1559_v9 = vsel %vm1295_vm2, %v1557_v38, %v1558_v47  ;;  %v1556_v27 = vsel %vm1295_vm2, %v1554_v41, %v1555_v46 }
0x1257   :  { %1562 = vrot.lane.b32.xlu0 %v1559_v9, %s3330_s17  ;;  %1560 = vrot.lane.b32.xlu1 %v1556_v27, %s3330_s17 }
0x125b   :  { %1571 = vrot.lane.b32.xlu1 %v1570_v42, %s3323_s6  ;;  %v1598_v42 = vrot.slane %v1596_v44, 5  ;;  %v1624_v44 = vld [vmem:[#allocation2 + $0x218] sm:$0xff] }
0x12c9   :  { %v4087_v26 = vpop.permute.xlu1 %1560 }
0x12ca   :  { %5172 = vst [vmem:[#allocation75_spill] sm:$0xff] %v4087_v26  ;;  %v4098_v26 = vpop.permute.xlu0 %1562 }
0x12cb   :  { %5173 = vst [vmem:[#allocation76_spill] sm:$0xff] %v4098_v26 }
0x12cd   :  { %v1572_v48 = vpop.permute.xlu1 %1571 }
0x12ce   :  { %v1575_v8 = vmul.f32 %v3843_v5, %v1572_v48  ;;  %v1577_v35 = vmul.f32 %v3901_v6, %v1572_v48  ;;  %v1574_v37 = vmul.f32 %v3827_v7, %v1572_v48  ;;  %v1576_v39 = vmul.f32 %v3908_v36, %v1572_v48 }
0x12d0   :  { %v1585_v38 = vrot.slane %v1575_v8, 3  ;;  %v1586_v47 = vrot.slane %v1577_v35, 3  ;;  %v1582_v41 = vrot.slane %v1574_v37, 3  ;;  %v1583_v46 = vrot.slane %v1576_v39, 3 }
0x12d2   :  { %v1587_v9 = vsel %vm1295_vm2, %v1585_v38, %v1586_v47  ;;  %v1584_v27 = vsel %vm1295_vm2, %v1582_v41, %v1583_v46 }
0x12d3   :  { %1590 = vrot.lane.b32.xlu1 %v1587_v9, %s3330_s17  ;;  %1588 = vrot.lane.b32.xlu0 %v1584_v27, %s3330_s17 }
0x12d7   :  { %1599 = vrot.lane.b32.xlu0 %v1598_v42, %s3324_s7  ;;  %v1626_v42 = vrot.slane %v1624_v44, 5  ;;  %v1652_v44 = vld [vmem:[#allocation2 + $0x220] sm:$0xff] }
0x1345   :  { %v4100_v10 = vpop.permute.xlu0 %1588 }
0x1346   :  { %5174 = vst [vmem:[#allocation77_spill] sm:$0xff] %v4100_v10  ;;  %v4111_v10 = vpop.permute.xlu1 %1590 }
0x1347   :  { %5175 = vst [vmem:[#allocation78_spill] sm:$0xff] %v4111_v10 }
0x1349   :  { %v1600_v48 = vpop.permute.xlu0 %1599 }
0x134a   :  { %v1603_v8 = vmul.f32 %v3843_v5, %v1600_v48  ;;  %v1605_v35 = vmul.f32 %v3901_v6, %v1600_v48  ;;  %v1602_v37 = vmul.f32 %v3827_v7, %v1600_v48  ;;  %v1604_v39 = vmul.f32 %v3908_v36, %v1600_v48 }
0x134c   :  { %v1613_v38 = vrot.slane %v1603_v8, 3  ;;  %v1614_v47 = vrot.slane %v1605_v35, 3  ;;  %v1610_v41 = vrot.slane %v1602_v37, 3  ;;  %v1611_v46 = vrot.slane %v1604_v39, 3 }
0x134e   :  { %v1615_v9 = vsel %vm1295_vm2, %v1613_v38, %v1614_v47  ;;  %v1612_v27 = vsel %vm1295_vm2, %v1610_v41, %v1611_v46 }
0x134f   :  { %1618 = vrot.lane.b32.xlu0 %v1615_v9, %s3331_s18  ;;  %1616 = vrot.lane.b32.xlu1 %v1612_v27, %s3331_s18 }
0x1353   :  { %1627 = vrot.lane.b32.xlu1 %v1626_v42, %s3324_s7  ;;  %v1654_v42 = vrot.slane %v1652_v44, 5  ;;  %v1680_v44 = vld [vmem:[#allocation2 + $0x228] sm:$0xff] }
0x13c1   :  { %v4113_v26 = vpop.permute.xlu1 %1616 }
0x13c2   :  { %5176 = vst [vmem:[#allocation79_spill] sm:$0xff] %v4113_v26  ;;  %v4124_v26 = vpop.permute.xlu0 %1618 }
0x13c3   :  { %5177 = vst [vmem:[#allocation80_spill] sm:$0xff] %v4124_v26 }
0x13c5   :  { %v1628_v48 = vpop.permute.xlu1 %1627 }
0x13c6   :  { %v1631_v8 = vmul.f32 %v3843_v5, %v1628_v48  ;;  %v1633_v35 = vmul.f32 %v3901_v6, %v1628_v48  ;;  %v1630_v37 = vmul.f32 %v3827_v7, %v1628_v48  ;;  %v1632_v39 = vmul.f32 %v3908_v36, %v1628_v48 }
0x13c8   :  { %v1641_v38 = vrot.slane %v1631_v8, 3  ;;  %v1642_v47 = vrot.slane %v1633_v35, 3  ;;  %v1638_v41 = vrot.slane %v1630_v37, 3  ;;  %v1639_v46 = vrot.slane %v1632_v39, 3 }
0x13ca   :  { %v1643_v9 = vsel %vm1295_vm2, %v1641_v38, %v1642_v47  ;;  %v1640_v27 = vsel %vm1295_vm2, %v1638_v41, %v1639_v46 }
0x13cb   :  { %1646 = vrot.lane.b32.xlu1 %v1643_v9, %s3331_s18  ;;  %1644 = vrot.lane.b32.xlu0 %v1640_v27, %s3331_s18 }
0x13cf   :  { %1655 = vrot.lane.b32.xlu0 %v1654_v42, %s3325_s8  ;;  %v1682_v42 = vrot.slane %v1680_v44, 5  ;;  %v1708_v44 = vld [vmem:[#allocation2 + $0x230] sm:$0xff] }
0x143d   :  { %v4126_v10 = vpop.permute.xlu0 %1644 }
0x143e   :  { %5178 = vst [vmem:[#allocation81_spill] sm:$0xff] %v4126_v10  ;;  %v4137_v10 = vpop.permute.xlu1 %1646 }
0x143f   :  { %5179 = vst [vmem:[#allocation82_spill] sm:$0xff] %v4137_v10 }
0x1441   :  { %v1656_v48 = vpop.permute.xlu0 %1655 }
0x1442   :  { %v1659_v8 = vmul.f32 %v3843_v5, %v1656_v48  ;;  %v1661_v35 = vmul.f32 %v3901_v6, %v1656_v48  ;;  %v1658_v37 = vmul.f32 %v3827_v7, %v1656_v48  ;;  %v1660_v39 = vmul.f32 %v3908_v36, %v1656_v48 }
0x1444   :  { %v1669_v38 = vrot.slane %v1659_v8, 3  ;;  %v1670_v47 = vrot.slane %v1661_v35, 3  ;;  %v1666_v41 = vrot.slane %v1658_v37, 3  ;;  %v1667_v46 = vrot.slane %v1660_v39, 3 }
0x1446   :  { %v1671_v9 = vsel %vm1295_vm2, %v1669_v38, %v1670_v47  ;;  %v1668_v27 = vsel %vm1295_vm2, %v1666_v41, %v1667_v46 }
0x1447   :  { %1674 = vrot.lane.b32.xlu0 %v1671_v9, %s3332_s19  ;;  %1672 = vrot.lane.b32.xlu1 %v1668_v27, %s3332_s19 }
0x144b   :  { %1683 = vrot.lane.b32.xlu1 %v1682_v42, %s3325_s8  ;;  %v1710_v42 = vrot.slane %v1708_v44, 5  ;;  %v1736_v44 = vld [vmem:[#allocation2 + $0x238] sm:$0xff] }
0x14b9   :  { %v4139_v26 = vpop.permute.xlu1 %1672 }
0x14ba   :  { %5180 = vst [vmem:[#allocation83_spill] sm:$0xff] %v4139_v26  ;;  %v4150_v26 = vpop.permute.xlu0 %1674 }
0x14bb   :  { %5181 = vst [vmem:[#allocation84_spill] sm:$0xff] %v4150_v26 }
0x14bd   :  { %v1684_v48 = vpop.permute.xlu1 %1683 }
0x14be   :  { %v1687_v8 = vmul.f32 %v3843_v5, %v1684_v48  ;;  %v1689_v35 = vmul.f32 %v3901_v6, %v1684_v48  ;;  %v1686_v37 = vmul.f32 %v3827_v7, %v1684_v48  ;;  %v1688_v39 = vmul.f32 %v3908_v36, %v1684_v48 }
0x14c0   :  { %v1697_v38 = vrot.slane %v1687_v8, 3  ;;  %v1698_v47 = vrot.slane %v1689_v35, 3  ;;  %v1694_v41 = vrot.slane %v1686_v37, 3  ;;  %v1695_v46 = vrot.slane %v1688_v39, 3 }
0x14c2   :  { %v1699_v9 = vsel %vm1295_vm2, %v1697_v38, %v1698_v47  ;;  %v1696_v27 = vsel %vm1295_vm2, %v1694_v41, %v1695_v46 }
0x14c3   :  { %1702 = vrot.lane.b32.xlu1 %v1699_v9, %s3332_s19  ;;  %1700 = vrot.lane.b32.xlu0 %v1696_v27, %s3332_s19 }
0x14c7   :  { %1711 = vrot.lane.b32.xlu0 %v1710_v42, %s3317_s25  ;;  %v1738_v42 = vrot.slane %v1736_v44, 5  ;;  %v1793_v44 = vld [vmem:[#allocation2 + $0x250] sm:$0xff] }
0x1535   :  { %v4152_v10 = vpop.permute.xlu0 %1700 }
0x1536   :  { %5182 = vst [vmem:[#allocation85_spill] sm:$0xff] %v4152_v10  ;;  %v4163_v10 = vpop.permute.xlu1 %1702 }
0x1537   :  { %5183 = vst [vmem:[#allocation86_spill] sm:$0xff] %v4163_v10 }
0x1539   :  { %v1712_v48 = vpop.permute.xlu0 %1711 }
0x153a   :  { %v1715_v8 = vmul.f32 %v3843_v5, %v1712_v48  ;;  %v1717_v35 = vmul.f32 %v3901_v6, %v1712_v48  ;;  %v1714_v37 = vmul.f32 %v3827_v7, %v1712_v48  ;;  %v1716_v39 = vmul.f32 %v3908_v36, %v1712_v48 }
0x153c   :  { %v1725_v38 = vrot.slane %v1715_v8, 3  ;;  %v1726_v47 = vrot.slane %v1717_v35, 3  ;;  %v1722_v41 = vrot.slane %v1714_v37, 3  ;;  %v1723_v46 = vrot.slane %v1716_v39, 3 }
0x153e   :  { %v1727_v9 = vsel %vm1295_vm2, %v1725_v38, %v1726_v47  ;;  %v1724_v27 = vsel %vm1295_vm2, %v1722_v41, %v1723_v46 }
0x153f   :  { %1730 = vrot.lane.b32.xlu0 %v1727_v9, %s3333_s24  ;;  %1728 = vrot.lane.b32.xlu1 %v1724_v27, %s3333_s24 }
0x1543   :  { %1739 = vrot.lane.b32.xlu1 %v1738_v42, %s3317_s25  ;;  %v1795_v42 = vrot.slane %v1793_v44, 4  ;;  %v1821_v44 = vld [vmem:[#allocation2 + $0x258] sm:$0xff] }
0x15b1   :  { %v4165_v26 = vpop.permute.xlu1 %1728 }
0x15b2   :  { %5184 = vst [vmem:[#allocation87_spill] sm:$0xff] %v4165_v26  ;;  %v4176_v26 = vpop.permute.xlu0 %1730 }
0x15b3   :  { %5185 = vst [vmem:[#allocation88_spill] sm:$0xff] %v4176_v26 }
0x15b5   :  { %v1740_v48 = vpop.permute.xlu1 %1739 }
0x15b6   :  { %v1743_v8 = vmul.f32 %v3843_v5, %v1740_v48  ;;  %v1745_v35 = vmul.f32 %v3901_v6, %v1740_v48  ;;  %v1742_v37 = vmul.f32 %v3827_v7, %v1740_v48  ;;  %v1744_v39 = vmul.f32 %v3908_v36, %v1740_v48 }
0x15b8   :  { %v1753_v38 = vrot.slane %v1743_v8, 3  ;;  %v1754_v47 = vrot.slane %v1745_v35, 3  ;;  %v1750_v41 = vrot.slane %v1742_v37, 3  ;;  %v1751_v46 = vrot.slane %v1744_v39, 3 }
0x15ba   :  { %v1755_v9 = vsel %vm1295_vm2, %v1753_v38, %v1754_v47  ;;  %v1752_v27 = vsel %vm1295_vm2, %v1750_v41, %v1751_v46 }
0x15bb   :  { %1758 = vrot.lane.b32.xlu1 %v1755_v9, %s3333_s24  ;;  %1756 = vrot.lane.b32.xlu0 %v1752_v27, %s3333_s24 }
0x15bf   :  { %1796 = vrot.lane.b32.xlu0 %v1795_v42, %s3319_s30  ;;  %v1823_v42 = vrot.slane %v1821_v44, 4  ;;  %v1849_v44 = vld [vmem:[#allocation2 + $0x260] sm:$0xff] }
0x162d   :  { %v4178_v10 = vpop.permute.xlu0 %1756 }
0x162e   :  { %5186 = vst [vmem:[#allocation89_spill] sm:$0xff] %v4178_v10  ;;  %v4189_v10 = vpop.permute.xlu1 %1758 }
0x162f   :  { %5187 = vst [vmem:[#allocation90_spill] sm:$0xff] %v4189_v10 }
0x1631   :  { %v1797_v48 = vpop.permute.xlu0 %1796 }
0x1632   :  { %v1800_v8 = vmul.f32 %v3843_v5, %v1797_v48  ;;  %v1802_v35 = vmul.f32 %v3901_v6, %v1797_v48  ;;  %v1799_v37 = vmul.f32 %v3827_v7, %v1797_v48  ;;  %v1801_v39 = vmul.f32 %v3908_v36, %v1797_v48 }
0x1634   :  { %v1810_v38 = vrot.slane %v1800_v8, 4  ;;  %v1811_v47 = vrot.slane %v1802_v35, 4  ;;  %v1807_v41 = vrot.slane %v1799_v37, 4  ;;  %v1808_v46 = vrot.slane %v1801_v39, 4 }
0x1636   :  { %v1812_v9 = vsel %vm1772_vm3, %v1810_v38, %v1811_v47  ;;  %v1809_v27 = vsel %vm1772_vm3, %v1807_v41, %v1808_v46 }
0x1637   :  { %1815 = vrot.lane.b32.xlu0 %v1812_v9, %s3326_s13  ;;  %1813 = vrot.lane.b32.xlu1 %v1809_v27, %s3326_s13 }
0x163b   :  { %1824 = vrot.lane.b32.xlu1 %v1823_v42, %s3319_s30 }
0x16a9   :  { %v4191_v48 = vpop.permute.xlu1 %1813  ;;  %v4202_v10 = vpop.permute.xlu0 %1815 }
0x16aa   :  { %5188 = vst [vmem:[#allocation91_spill] sm:$0xff] %v4191_v48  ;;  %v1851_v48 = vrot.slane %v1849_v44, 4  ;;  %5189 = vst [vmem:[#allocation92_spill] sm:$0xff] %v4202_v10  ;;  %v1877_v44 = vld [vmem:[#allocation2 + $0x268] sm:$0xff] }
0x16ad   :  { %v1825_v8 = vpop.permute.xlu1 %1824 }
0x16ae   :  { %v1828_v35 = vmul.f32 %v3843_v5, %v1825_v8  ;;  %v1830_v37 = vmul.f32 %v3901_v6, %v1825_v8  ;;  %v1827_v39 = vmul.f32 %v3827_v7, %v1825_v8  ;;  %v1829_v38 = vmul.f32 %v3908_v36, %v1825_v8 }
0x16b0   :  { %v1838_v47 = vrot.slane %v1828_v35, 4  ;;  %v1839_v41 = vrot.slane %v1830_v37, 4  ;;  %v1835_v46 = vrot.slane %v1827_v39, 4  ;;  %v1836_v9 = vrot.slane %v1829_v38, 4 }
0x16b2   :  { %v1840_v27 = vsel %vm1772_vm3, %v1838_v47, %v1839_v41  ;;  %v1837_v42 = vsel %vm1772_vm3, %v1835_v46, %v1836_v9 }
0x16b3   :  { %1843 = vrot.lane.b32.xlu1 %v1840_v27, %s3326_s13  ;;  %1841 = vrot.lane.b32.xlu0 %v1837_v42, %s3326_s13  ;;  %v1879_v42 = vrot.slane %v1877_v44, 4 }
0x16b7   :  { %1852 = vrot.lane.b32.xlu0 %v1851_v48, %s3320_s1 }
0x1725   :  { %v4204_v26 = vpop.permute.xlu0 %1841 }
0x1726   :  { %5190 = vst [vmem:[#allocation93_spill] sm:$0xff] %v4204_v26  ;;  %v4215_v26 = vpop.permute.xlu1 %1843 }
0x1727   :  { %5191 = vst [vmem:[#allocation94_spill] sm:$0xff] %v4215_v26 }
0x1729   :  { %v1853_v8 = vpop.permute.xlu0 %1852 }
0x172a   :  { %v1856_v35 = vmul.f32 %v3843_v5, %v1853_v8  ;;  %v1858_v37 = vmul.f32 %v3901_v6, %v1853_v8  ;;  %v1855_v39 = vmul.f32 %v3827_v7, %v1853_v8  ;;  %v1857_v38 = vmul.f32 %v3908_v36, %v1853_v8 }
0x172c   :  { %v1866_v47 = vrot.slane %v1856_v35, 4  ;;  %v1867_v41 = vrot.slane %v1858_v37, 4  ;;  %v1863_v46 = vrot.slane %v1855_v39, 4  ;;  %v1864_v9 = vrot.slane %v1857_v38, 4  ;;  %v4224_v39 = vld [vmem:[%s5097_s0] sm:$0xff] }
0x172e   :  { %v1868_v48 = vsel %vm1772_vm3, %v1866_v47, %v1867_v41  ;;  %v1865_v27 = vsel %vm1772_vm3, %v1863_v46, %v1864_v9 }
0x172f   :  { %1871 = vrot.lane.b32.xlu0 %v1868_v48, %s3327_s14  ;;  %1869 = vrot.lane.b32.xlu1 %v1865_v27, %s3327_s14  ;;  %v1905_v48 = vld [vmem:[#allocation2 + $0x270] sm:$0xff] }
0x1733   :  { %1880 = vrot.lane.b32.xlu1 %v1879_v42, %s3320_s1  ;;  %v1907_v42 = vrot.slane %v1905_v48, 4 }
0x17a1   :  { %v4217_v7 = vpop.permute.xlu1 %1869 }
0x17a2   :  { %5192 = vst [vmem:[#allocation95_spill] sm:$0xff] %v4217_v7  ;;  %v4233_v7 = vpop.permute.xlu0 %1871 }
0x17a3   :  { %5193 = vst [vmem:[#allocation96_spill] sm:$0xff] %v4233_v7 }
0x17a5   :  { %v1881_v8 = vpop.permute.xlu1 %1880 }
0x17a6   :  { %v1884_v35 = vmul.f32 %v3843_v5, %v1881_v8  ;;  %v1886_v37 = vmul.f32 %v3901_v6, %v1881_v8  ;;  %v1883_v38 = vmul.f32 %v4224_v39, %v1881_v8  ;;  %v1885_v47 = vmul.f32 %v3908_v36, %v1881_v8 }
0x17a8   :  { %v1894_v41 = vrot.slane %v1884_v35, 4  ;;  %v1895_v46 = vrot.slane %v1886_v37, 4  ;;  %v1891_v9 = vrot.slane %v1883_v38, 4  ;;  %v1892_v44 = vrot.slane %v1885_v47, 4  ;;  %v4240_v35 = vld [vmem:[%s5097_s0 + $0x8] sm:$0xff] }
0x17a9   :  { %5195 = vst [vmem:[#allocation98_spill] sm:$0xff] %v4240_v35 }
0x17aa   :  { %v1896_v27 = vsel %vm1772_vm3, %v1894_v41, %v1895_v46  ;;  %v1893_v5 = vsel %vm1772_vm3, %v1891_v9, %v1892_v44 }
0x17ab   :  { %1899 = vrot.lane.b32.xlu1 %v1896_v27, %s3327_s14  ;;  %1897 = vrot.lane.b32.xlu0 %v1893_v5, %s3327_s14  ;;  %v1933_v27 = vld [vmem:[#allocation2 + $0x278] sm:$0xff] }
0x17af   :  { %1908 = vrot.lane.b32.xlu0 %v1907_v42, %s3321_s4 }
0x181d   :  { %v4235_v26 = vpop.permute.xlu0 %1897  ;;  %v4251_v7 = vpop.permute.xlu1 %1899 }
0x181e   :  { %5194 = vst [vmem:[#allocation97_spill] sm:$0xff] %v4235_v26  ;;  %v1935_v26 = vrot.slane %v1933_v27, 4  ;;  %5196 = vst [vmem:[#allocation99_spill] sm:$0xff] %v4251_v7  ;;  %v1961_v27 = vld [vmem:[#allocation2 + $0x280] sm:$0xff] }
0x1821   :  { %v1909_v8 = vpop.permute.xlu0 %1908 }
0x1822   :  { %v1912_v37 = vmul.f32 %v4240_v35, %v1909_v8  ;;  %v1914_v38 = vmul.f32 %v3901_v6, %v1909_v8  ;;  %v1911_v47 = vmul.f32 %v4224_v39, %v1909_v8  ;;  %v1913_v41 = vmul.f32 %v3908_v36, %v1909_v8 }
0x1824   :  { %v1922_v46 = vrot.slane %v1912_v37, 4  ;;  %v1923_v9 = vrot.slane %v1914_v38, 4  ;;  %v1919_v44 = vrot.slane %v1911_v47, 4  ;;  %v1920_v48 = vrot.slane %v1913_v41, 4 }
0x1826   :  { %v1924_v5 = vsel %vm1772_vm3, %v1922_v46, %v1923_v9  ;;  %v1921_v42 = vsel %vm1772_vm3, %v1919_v44, %v1920_v48 }
0x1827   :  { %1927 = vrot.lane.b32.xlu0 %v1924_v5, %s3328_s15  ;;  %1925 = vrot.lane.b32.xlu1 %v1921_v42, %s3328_s15  ;;  %v1963_v42 = vrot.slane %v1961_v27, 4  ;;  %v1989_v27 = vld [vmem:[#allocation2 + $0x288] sm:$0xff] }
0x182b   :  { %1936 = vrot.lane.b32.xlu1 %v1935_v26, %s3321_s4 }
0x1899   :  { %v4253_v10 = vpop.permute.xlu1 %1925 }
0x189a   :  { %5197 = vst [vmem:[#allocation100_spill] sm:$0xff] %v4253_v10  ;;  %v4264_v10 = vpop.permute.xlu0 %1927 }
0x189b   :  { %5198 = vst [vmem:[#allocation101_spill] sm:$0xff] %v4264_v10 }
0x189d   :  { %v1937_v8 = vpop.permute.xlu1 %1936 }
0x189e   :  { %v1940_v37 = vmul.f32 %v4240_v35, %v1937_v8  ;;  %v1942_v38 = vmul.f32 %v3901_v6, %v1937_v8  ;;  %v1939_v47 = vmul.f32 %v4224_v39, %v1937_v8  ;;  %v1941_v41 = vmul.f32 %v3908_v36, %v1937_v8 }
0x18a0   :  { %v1950_v46 = vrot.slane %v1940_v37, 4  ;;  %v1951_v9 = vrot.slane %v1942_v38, 4  ;;  %v1947_v44 = vrot.slane %v1939_v47, 4  ;;  %v1948_v48 = vrot.slane %v1941_v41, 4 }
0x18a2   :  { %v1952_v26 = vsel %vm1772_vm3, %v1950_v46, %v1951_v9  ;;  %v1949_v5 = vsel %vm1772_vm3, %v1947_v44, %v1948_v48 }
0x18a3   :  { %1955 = vrot.lane.b32.xlu1 %v1952_v26, %s3328_s15  ;;  %1953 = vrot.lane.b32.xlu0 %v1949_v5, %s3328_s15 }
0x18a7   :  { %1964 = vrot.lane.b32.xlu0 %v1963_v42, %s3322_s5  ;;  %v1991_v42 = vrot.slane %v1989_v27, 4  ;;  %v2017_v27 = vld [vmem:[#allocation2 + $0x290] sm:$0xff] }
0x1915   :  { %v4266_v7 = vpop.permute.xlu0 %1953 }
0x1916   :  { %5199 = vst [vmem:[#allocation102_spill] sm:$0xff] %v4266_v7  ;;  %v4277_v7 = vpop.permute.xlu1 %1955 }
0x1917   :  { %5200 = vst [vmem:[#allocation103_spill] sm:$0xff] %v4277_v7 }
0x1919   :  { %v1965_v8 = vpop.permute.xlu0 %1964 }
0x191a   :  { %v1968_v37 = vmul.f32 %v4240_v35, %v1965_v8  ;;  %v1970_v38 = vmul.f32 %v3901_v6, %v1965_v8  ;;  %v1967_v47 = vmul.f32 %v4224_v39, %v1965_v8  ;;  %v1969_v41 = vmul.f32 %v3908_v36, %v1965_v8 }
0x191c   :  { %v1978_v46 = vrot.slane %v1968_v37, 4  ;;  %v1979_v9 = vrot.slane %v1970_v38, 4  ;;  %v1975_v44 = vrot.slane %v1967_v47, 4  ;;  %v1976_v48 = vrot.slane %v1969_v41, 4 }
0x191e   :  { %v1980_v26 = vsel %vm1772_vm3, %v1978_v46, %v1979_v9  ;;  %v1977_v5 = vsel %vm1772_vm3, %v1975_v44, %v1976_v48 }
0x191f   :  { %1983 = vrot.lane.b32.xlu0 %v1980_v26, %s3329_s16  ;;  %1981 = vrot.lane.b32.xlu1 %v1977_v5, %s3329_s16 }
0x1923   :  { %1992 = vrot.lane.b32.xlu1 %v1991_v42, %s3322_s5  ;;  %v2019_v42 = vrot.slane %v2017_v27, 4 }
0x1991   :  { %v4279_v10 = vpop.permute.xlu1 %1981 }
0x1992   :  { %5201 = vst [vmem:[#allocation104_spill] sm:$0xff] %v4279_v10 }
0x1995   :  { %v1993_v8 = vpop.permute.xlu1 %1992 }
0x1996   :  { %v1996_v37 = vmul.f32 %v4240_v35, %v1993_v8  ;;  %v1998_v38 = vmul.f32 %v3901_v6, %v1993_v8  ;;  %v1995_v47 = vmul.f32 %v4224_v39, %v1993_v8  ;;  %v1997_v41 = vmul.f32 %v3908_v36, %v1993_v8  ;;  %v4290_v6 = vpop.permute.xlu0 %1983 }
0x1997   :  { %5202 = vst [vmem:[#allocation105_spill] sm:$0xff] %v4290_v6 }
0x1998   :  { %v2006_v46 = vrot.slane %v1996_v37, 4  ;;  %v2007_v9 = vrot.slane %v1998_v38, 4  ;;  %v2003_v44 = vrot.slane %v1995_v47, 4  ;;  %v2004_v48 = vrot.slane %v1997_v41, 4  ;;  %v4298_v37 = vld [vmem:[%s5097_s0 + $0x18] sm:$0xff]  ;;  %v4305_v41 = vld [vmem:[%s5097_s0 + $0x10] sm:$0xff] }
0x1999   :  { %5204 = vst [vmem:[#allocation107_spill] sm:$0xff] %v4298_v37 }
0x199a   :  { %v2008_v26 = vsel %vm1772_vm3, %v2006_v46, %v2007_v9  ;;  %v2005_v5 = vsel %vm1772_vm3, %v2003_v44, %v2004_v48 }
0x199b   :  { %2011 = vrot.lane.b32.xlu1 %v2008_v26, %s3329_s16  ;;  %2009 = vrot.lane.b32.xlu0 %v2005_v5, %s3329_s16  ;;  %v2045_v26 = vld [vmem:[#allocation2 + $0x298] sm:$0xff] }
0x199f   :  { %2020 = vrot.lane.b32.xlu0 %v2019_v42, %s3323_s6 }
0x1a0d   :  { %v4292_v10 = vpop.permute.xlu0 %2009  ;;  %v4313_v6 = vpop.permute.xlu1 %2011 }
0x1a0e   :  { %5203 = vst [vmem:[#allocation106_spill] sm:$0xff] %v4292_v10  ;;  %v2047_v10 = vrot.slane %v2045_v26, 4  ;;  %5205 = vst [vmem:[#allocation108_spill] sm:$0xff] %v4313_v6  ;;  %v2073_v26 = vld [vmem:[#allocation2 + $0x2a0] sm:$0xff] }
0x1a11   :  { %v2021_v36 = vpop.permute.xlu0 %2020 }
0x1a12   :  { %v2024_v8 = vmul.f32 %v4240_v35, %v2021_v36  ;;  %v2026_v38 = vmul.f32 %v4298_v37, %v2021_v36  ;;  %v2023_v47 = vmul.f32 %v4224_v39, %v2021_v36  ;;  %v2025_v46 = vmul.f32 %v4305_v41, %v2021_v36 }
0x1a14   :  { %v2034_v9 = vrot.slane %v2024_v8, 4  ;;  %v2035_v44 = vrot.slane %v2026_v38, 4  ;;  %v2031_v48 = vrot.slane %v2023_v47, 4  ;;  %v2032_v27 = vrot.slane %v2025_v46, 4 }
0x1a16   :  { %v2036_v5 = vsel %vm1772_vm3, %v2034_v9, %v2035_v44  ;;  %v2033_v42 = vsel %vm1772_vm3, %v2031_v48, %v2032_v27 }
0x1a17   :  { %2039 = vrot.lane.b32.xlu0 %v2036_v5, %s3330_s17  ;;  %2037 = vrot.lane.b32.xlu1 %v2033_v42, %s3330_s17  ;;  %v2101_v5 = vld [vmem:[#allocation2 + $0x2a8] sm:$0xff] }
0x1a18   :  { %v2103_v6 = vrot.slane %v2101_v5, 4  ;;  %v2382_v5 = vld [vmem:[#allocation2 + $0x300] sm:$0xff] }
0x1a1b   :  { %2048 = vrot.lane.b32.xlu1 %v2047_v10, %s3323_s6 }
0x1a89   :  { %v4315_v7 = vpop.permute.xlu1 %2037 }
0x1a8a   :  { %5206 = vst [vmem:[#allocation109_spill] sm:$0xff] %v4315_v7  ;;  %v2075_v7 = vrot.slane %v2073_v26, 4  ;;  %v2326_v26 = vld [vmem:[#allocation2 + $0x2f0] sm:$0xff] }
0x1a8d   :  { %v2049_v36 = vpop.permute.xlu1 %2048 }
0x1a8e   :  { %v2052_v8 = vmul.f32 %v4240_v35, %v2049_v36  ;;  %v2054_v38 = vmul.f32 %v4298_v37, %v2049_v36  ;;  %v2051_v47 = vmul.f32 %v4224_v39, %v2049_v36  ;;  %v2053_v46 = vmul.f32 %v4305_v41, %v2049_v36  ;;  %v2129_v37 = vld [vmem:[#allocation2 + $0x2b0] sm:$0xff]  ;;  %v2157_v35 = vld [vmem:[#allocation2 + $0x2b8] sm:$0xff] }
0x1a8f   :  { %v2131_v36 = vrot.slane %v2129_v37, 4 }
0x1a90   :  { %v2062_v9 = vrot.slane %v2052_v8, 4  ;;  %v2063_v44 = vrot.slane %v2054_v38, 4  ;;  %v2059_v48 = vrot.slane %v2051_v47, 4  ;;  %v2060_v27 = vrot.slane %v2053_v46, 4  ;;  %v2185_v38 = vld [vmem:[#allocation2 + $0x2c0] sm:$0xff]  ;;  %v2213_v47 = vld [vmem:[#allocation2 + $0x2c8] sm:$0xff] }
0x1a91   :  { %v2159_v8 = vrot.slane %v2157_v35, 4  ;;  %v2187_v46 = vrot.slane %v2185_v38, 4  ;;  %v2328_v35 = vrot.slane %v2326_v26, 3  ;;  %v2466_v38 = vld [vmem:[#allocation2 + $0x318] sm:$0xff] }
0x1a92   :  { %v2064_v10 = vsel %vm1772_vm3, %v2062_v9, %v2063_v44  ;;  %v2061_v42 = vsel %vm1772_vm3, %v2059_v48, %v2060_v27  ;;  %v2215_v9 = vrot.slane %v2213_v47, 4  ;;  %v2270_v44 = vld [vmem:[#allocation2 + $0x2e0] sm:$0xff]  ;;  %v2298_v48 = vld [vmem:[#allocation2 + $0x2e8] sm:$0xff]  ;;  %v2578_v26 = vld [vmem:[#allocation2 + $0x338] sm:$0xff] }
0x1a93   :  { %2067 = vrot.lane.b32.xlu1 %v2064_v10, %s3330_s17  ;;  %2065 = vrot.lane.b32.xlu0 %v2061_v42, %s3330_s17  ;;  %v2272_v27 = vrot.slane %v2270_v44, 3  ;;  %v2410_v10 = vld [vmem:[#allocation2 + $0x308] sm:$0xff]  ;;  %v2384_v42 = vrot.slane %v2382_v5, 3 }
0x1a94   :  { %v2522_v44 = vld [vmem:[#allocation2 + $0x328] sm:$0xff] }
0x1a95   :  { %v2634_v5 = vld [vmem:[#allocation2 + $0x348] sm:$0xff] }
0x1a97   :  { %2076 = vrot.lane.b32.xlu0 %v2075_v7, %s3324_s7  ;;  %2104 = vrot.lane.b32.xlu1 %v2103_v6, %s3324_s7  ;;  %v2300_v7 = vrot.slane %v2298_v48, 3  ;;  %v2354_v6 = vld [vmem:[#allocation2 + $0x2f8] sm:$0xff] }
0x1a98   :  { %v2356_v37 = vrot.slane %v2354_v6, 3 }
0x1a9b   :  { %2132 = vrot.lane.b32.xlu0 %v2131_v36, %s3325_s8  ;;  %2160 = vrot.lane.b32.xlu1 %v2159_v8, %s3325_s8  ;;  %v2412_v36 = vrot.slane %v2410_v10, 3  ;;  %v2438_v8 = vld [vmem:[#allocation2 + $0x310] sm:$0xff] }
0x1a9c   :  { %v2440_v47 = vrot.slane %v2438_v8, 3  ;;  %v2690_v8 = vld [vmem:[#allocation2 + $0x358] sm:$0xff] }
0x1a9f   :  { %2188 = vrot.lane.b32.xlu0 %v2187_v46, %s3317_s25  ;;  %2216 = vrot.lane.b32.xlu1 %v2215_v9, %s3317_s25  ;;  %v2468_v46 = vrot.slane %v2466_v38, 3  ;;  %v2494_v9 = vld [vmem:[#allocation2 + $0x320] sm:$0xff] }
0x1aa0   :  { %v2496_v48 = vrot.slane %v2494_v9, 3  ;;  %v2747_v9 = vld [vmem:[#allocation2 + $0x370] sm:$0xff] }
0x1aa3   :  { %2273 = vrot.lane.b32.xlu0 %v2272_v27, %s3319_s30  ;;  %2301 = vrot.lane.b32.xlu1 %v2300_v7, %s3319_s30  ;;  %v2524_v27 = vrot.slane %v2522_v44, 3  ;;  %v2550_v7 = vld [vmem:[#allocation2 + $0x330] sm:$0xff] }
0x1aa4   :  { %v2552_v6 = vrot.slane %v2550_v7, 3  ;;  %v2803_v7 = vld [vmem:[#allocation2 + $0x380] sm:$0xff] }
0x1aa7   :  { %2329 = vrot.lane.b32.xlu0 %v2328_v35, %s3320_s1  ;;  %2357 = vrot.lane.b32.xlu1 %v2356_v37, %s3320_s1  ;;  %v2580_v35 = vrot.slane %v2578_v26, 3  ;;  %v2606_v37 = vld [vmem:[#allocation2 + $0x340] sm:$0xff] }
0x1aa8   :  { %v2608_v10 = vrot.slane %v2606_v37, 3  ;;  %v2859_v37 = vld [vmem:[#allocation2 + $0x390] sm:$0xff] }
0x1aab   :  { %2385 = vrot.lane.b32.xlu0 %v2384_v42, %s3321_s4  ;;  %2413 = vrot.lane.b32.xlu1 %v2412_v36, %s3321_s4  ;;  %v2636_v42 = vrot.slane %v2634_v5, 3  ;;  %v2662_v36 = vld [vmem:[#allocation2 + $0x350] sm:$0xff] }
0x1aac   :  { %v2664_v38 = vrot.slane %v2662_v36, 3  ;;  %v2915_v36 = vld [vmem:[#allocation2 + $0x3a0] sm:$0xff] }
0x1aaf   :  { %2441 = vrot.lane.b32.xlu0 %v2440_v47, %s3322_s5  ;;  %2469 = vrot.lane.b32.xlu1 %v2468_v46, %s3322_s5  ;;  %v2692_v47 = vrot.slane %v2690_v8, 3  ;;  %v2775_v46 = vld [vmem:[#allocation2 + $0x378] sm:$0xff] }
0x1ab0   :  { %v2777_v44 = vrot.slane %v2775_v46, 2  ;;  %v2971_v46 = vld [vmem:[#allocation2 + $0x3b0] sm:$0xff] }
0x1ab3   :  { %2497 = vrot.lane.b32.xlu0 %v2496_v48, %s3323_s6  ;;  %2525 = vrot.lane.b32.xlu1 %v2524_v27, %s3323_s6  ;;  %v2749_v48 = vrot.slane %v2747_v9, 2  ;;  %v2831_v27 = vld [vmem:[#allocation2 + $0x388] sm:$0xff] }
0x1ab4   :  { %v2833_v26 = vrot.slane %v2831_v27, 2  ;;  %v3027_v27 = vld [vmem:[#allocation2 + $0x3c0] sm:$0xff] }
0x1ab7   :  { %2553 = vrot.lane.b32.xlu0 %v2552_v6, %s3324_s7  ;;  %2581 = vrot.lane.b32.xlu1 %v2580_v35, %s3324_s7  ;;  %v2805_v6 = vrot.slane %v2803_v7, 2  ;;  %v2887_v35 = vld [vmem:[#allocation2 + $0x398] sm:$0xff] }
0x1ab8   :  { %v2889_v5 = vrot.slane %v2887_v35, 2  ;;  %v3083_v35 = vld [vmem:[#allocation2 + $0x3d0] sm:$0xff] }
0x1abb   :  { %2609 = vrot.lane.b32.xlu0 %v2608_v10, %s3325_s8  ;;  %2637 = vrot.lane.b32.xlu1 %v2636_v42, %s3325_s8  ;;  %v2861_v10 = vrot.slane %v2859_v37, 2  ;;  %v2943_v42 = vld [vmem:[#allocation2 + $0x3a8] sm:$0xff] }
0x1abc   :  { %v2945_v8 = vrot.slane %v2943_v42, 2  ;;  %v3139_v42 = vld [vmem:[#allocation2 + $0x3e0] sm:$0xff] }
0x1abf   :  { %2665 = vrot.lane.b32.xlu0 %v2664_v38, %s3317_s25  ;;  %2693 = vrot.lane.b32.xlu1 %v2692_v47, %s3317_s25  ;;  %v2917_v38 = vrot.slane %v2915_v36, 2  ;;  %v2999_v47 = vld [vmem:[#allocation2 + $0x3b8] sm:$0xff] }
0x1ac0   :  { %v3001_v9 = vrot.slane %v2999_v47, 2  ;;  %v49_v47 = vld [vmem:[#allocation2 + $0x8] sm:$0xff] }
0x1ac3   :  { %2778 = vrot.lane.b32.xlu1 %v2777_v44, %s3319_s30  ;;  %2750 = vrot.lane.b32.xlu0 %v2749_v48, %s3319_s30  ;;  %v2973_v44 = vrot.slane %v2971_v46, 2  ;;  %v3055_v48 = vld [vmem:[#allocation2 + $0x3c8] sm:$0xff] }
0x1ac4   :  { %v3057_v7 = vrot.slane %v3055_v48, 2  ;;  %v84_v48 = vsel %vm66_vm4, %v3567_v40, %v3521_v12  ;;  %v154_v12 = vsel %vm136_vm6, %v3580_v52, %v3529_v16  ;;  %v224_v16 = vsel %vm206_vm8, %v3588_v56, %v3537_v20 }
0x1ac7   :  { %2834 = vrot.lane.b32.xlu1 %v2833_v26, %s3320_s1  ;;  %2806 = vrot.lane.b32.xlu0 %v2805_v6, %s3320_s1  ;;  %v3029_v26 = vrot.slane %v3027_v27, 2  ;;  %v3111_v6 = vld [vmem:[#allocation2 + $0x3d8] sm:$0xff]  ;;  %v102_v27 = vsel %vm101_vm5, %v3523_v13, %v3573_v49  ;;  %v189_v49 = vsel %vm171_vm7, %v3584_v54, %v3533_v18  ;;  %v242_v18 = vsel %vm241_vm9, %v3539_v21, %v3590_v57 }
0x1ac8   :  { %v3113_v37 = vrot.slane %v3111_v6, 2  ;;  %v259_v54 = vsel %vm241_vm9, %v3592_v58, %v3541_v22  ;;  %v312_v22 = vsel %vm311_vm11, %v3547_v25, %v3598_v61  ;;  %v414_v25 = vsel %vm66_vm4, %v3604_v0, %v3553_v30 }
0x1ac9   :  { %v526_v30 = vsel %vm136_vm6, %v3612_v4, %v3623_v45  ;;  %v5210_v4 = vld [vmem:[#allocation12_spill] sm:$0xff]  ;;  %v5211_v45 = vld [vmem:[#allocation11_spill] sm:$0xff] }
0x1acb   :  { %2890 = vrot.lane.b32.xlu1 %v2889_v5, %s3321_s4  ;;  %2862 = vrot.lane.b32.xlu0 %v2861_v10, %s3321_s4  ;;  %v3085_v5 = vrot.slane %v3083_v35, 2  ;;  %v3167_v10 = vld [vmem:[#allocation2 + $0x3e8] sm:$0xff] }
0x1acc   :  { %v3169_v36 = vrot.slane %v3167_v10, 2 }
0x1acf   :  { %2946 = vrot.lane.b32.xlu1 %v2945_v8, %s3322_s5  ;;  %2918 = vrot.lane.b32.xlu0 %v2917_v38, %s3322_s5  ;;  %v3141_v8 = vrot.slane %v3139_v42, 2  ;;  %v45_v38 = vld [vmem:[#allocation2] sm:$0xff]  ;;  %v277_v42 = vsel %vm276_vm10, %v3543_v23, %v3594_v59 }
0x1ad0   :  { %v46_v46 = vmul.f32 %v4224_v39, %v45_v38 }
0x1ad3   :  { %3002 = vrot.lane.b32.xlu1 %v3001_v9, %s3323_s6  ;;  %2974 = vrot.lane.b32.xlu0 %v2973_v44, %s3323_s6  ;;  %v50_v9 = vmul.f32 %v4224_v39, %v49_v47  ;;  %v67_v44 = vsel %vm66_vm4, %v3559_v33, %v3519_v11  ;;  %v137_v11 = vsel %vm136_vm6, %v3527_v15, %v3578_v51 }
0x1ad4   :  { %v69_v6 = vadd.f32 %v67_v44, %v46_v46  ;;  %v207_v15 = vsel %vm206_vm8, %v3535_v19, %v3586_v55  ;;  %v329_v46 = vsel %vm311_vm11, %v3600_v62, %v3549_v28  ;;  %v442_v28 = vsel %vm101_vm5, %v3555_v31, %v3606_v1  ;;  %v5207_v31 = vld [vmem:[#allocation8_spill] sm:$0xff]  ;;  %v5208_v1 = vld [vmem:[#allocation10_spill] sm:$0xff] }
0x1ad5   :  { %v86_v35 = vadd.f32 %v84_v48, %v50_v9  ;;  %v386_v48 = vsel %vm66_vm4, %v3551_v29, %v3602_v63  ;;  %v470_v62 = vsel %vm101_vm5, %v3608_v2, %v3557_v32  ;;  %v498_v29 = vsel %vm136_vm6, %v3561_v34, %v3610_v3  ;;  %v5209_v2 = vld [vmem:[#allocation9_spill] sm:$0xff] }
0x1ad6   :  { %v104_v33 = vadd.f32 %v102_v27, %v69_v6  ;;  %v554_v32 = vsel %vm171_vm7, %v5207_v31, %v3636_v43 }
0x1ad7   :  { %3058 = vrot.lane.b32.xlu1 %v3057_v7, %s3324_s7  ;;  %3030 = vrot.lane.b32.xlu0 %v3029_v26, %s3324_s7  ;;  %v119_v7 = vsel %vm101_vm5, %v3576_v50, %v3525_v14  ;;  %v333_v26 = vld [vmem:[#allocation2 + $0x90] sm:$0xff]  ;;  %v172_v14 = vsel %vm171_vm7, %v3531_v17, %v3582_v53 }
0x1ad8   :  { %v121_v40 = vadd.f32 %v119_v7, %v86_v35  ;;  %v335_v13 = vrot.slane %v333_v26, 7  ;;  %v4425_v7 = vpop.permute.xlu0 %2039 }
0x1ada   :  { %v156_v10 = vadd.f32 %v154_v12, %v121_v40  ;;  %v337_v17 = vmul.f32 %v4224_v39, %v335_v13  ;;  %v338_v53 = vmul.f32 %v4305_v41, %v335_v13  ;;  %v610_v40 = vsel %vm206_vm8, %v5211_v45, %v5210_v4  ;;  %v5216_v45 = vld [vmem:[#allocation16_spill] sm:$0xff] }
0x1adb   :  { %3114 = vrot.lane.b32.xlu1 %v3113_v37, %s3325_s8  ;;  %3086 = vrot.lane.b32.xlu0 %v3085_v5, %s3325_s8  ;;  %v348_v37 = vld [vmem:[#allocation2 + $0x98] sm:$0xff]  ;;  %v139_v5 = vadd.f32 %v137_v11, %v104_v33  ;;  %v582_v11 = vsel %vm171_vm7, %v5209_v2, %v5208_v1 }
0x1adc   :  { %v350_v50 = vrot.slane %v348_v37, 7  ;;  %v191_v52 = vadd.f32 %v189_v49, %v156_v10  ;;  %v343_v38 = vrot.slane %v338_v53, 1  ;;  %v5212_v49 = vld [vmem:[#allocation98_spill] sm:$0xff] }
0x1add   :  { %v174_v51 = vadd.f32 %v172_v14, %v139_v5  ;;  %v5213_v5 = vld [vmem:[#allocation107_spill] sm:$0xff]  ;;  %v810_v53 = vld [vmem:[#allocation2 + $0x120] sm:$0xff] }
0x1ade   :  { %v352_v19 = vmul.f32 %v4224_v39, %v350_v50  ;;  %v353_v55 = vmul.f32 %v4305_v41, %v350_v50  ;;  %v226_v56 = vadd.f32 %v224_v16, %v191_v52 }
0x1adf   :  { %3170 = vrot.lane.b32.xlu1 %v3169_v36, %s3317_s25  ;;  %3142 = vrot.lane.b32.xlu0 %v3141_v8, %s3317_s25  ;;  %v209_v20 = vadd.f32 %v207_v15, %v174_v51  ;;  %v294_v36 = vsel %vm276_vm10, %v3596_v60, %v3545_v24  ;;  %v342_v8 = vrot.slane %v337_v17, 1 }
0x1ae0   :  { %v261_v57 = vadd.f32 %v259_v54, %v226_v56  ;;  %v356_v58 = vrot.slane %v352_v19, 1  ;;  %v357_v47 = vrot.slane %v353_v55, 1 }
0x1ae1   :  { %v244_v21 = vadd.f32 %v242_v18, %v209_v20  ;;  %v344_v24 = vsel %vm341_vm0, %v342_v8, %v343_v38 }
0x1ae2   :  { %v296_v23 = vadd.f32 %v294_v36, %v261_v57  ;;  %v358_v60 = vsel %vm341_vm0, %v356_v58, %v357_v47  ;;  %v812_v47 = vrot.slane %v810_v53, 6 }
0x1ae3   :  { %v279_v9 = vadd.f32 %v277_v42, %v244_v21 }
0x1ae4   :  { %v331_v44 = vadd.f32 %v329_v46, %v296_v23 }
0x1ae5   :  { %v314_v59 = vadd.f32 %v312_v22, %v279_v9 }
0x1ae6   :  { %v360_v27 = vadd.f32 %v358_v60, %v331_v44 }
0x1ae7   :  { %v346_v61 = vadd.f32 %v344_v24, %v314_v59 }
0x1ae8   :  { %v416_v6 = vadd.f32 %v414_v25, %v360_v27 }
0x1ae9   :  { %v388_v26 = vadd.f32 %v386_v48, %v346_v61 }
0x1aea   :  { %v472_v0 = vadd.f32 %v470_v62, %v416_v6 }
0x1aeb   :  { %v444_v63 = vadd.f32 %v442_v28, %v388_v26 }
0x1aec   :  { %v528_v34 = vadd.f32 %v526_v30, %v472_v0 }
0x1aed   :  { %v500_v12 = vadd.f32 %v498_v29, %v444_v63 }
0x1aee   :  { %v4449_v33 = vadd.f32 %v582_v11, %v528_v34  ;;  %v5214_v34 = vld [vmem:[#allocation14_spill] sm:$0xff] }
0x1aef   :  { %v556_v3 = vadd.f32 %v554_v32, %v500_v12 }
0x1af1   :  { %v612_v62 = vadd.f32 %v610_v40, %v556_v3  ;;  %v5215_v3 = vld [vmem:[#allocation13_spill] sm:$0xff]  ;;  %v5217_v40 = vld [vmem:[#allocation15_spill] sm:$0xff] }
0x1af2   :  { %v638_v4 = vsel %vm206_vm8, %v5215_v3, %v5214_v34 }
0x1b05   :  { %v4439_v35 = vpop.permute.xlu1 %2067  ;;  %v4441_v37 = vpop.permute.xlu0 %2065 }
0x1b09   :  { %v2077_v13 = vpop.permute.xlu0 %2076  ;;  %v2105_v14 = vpop.permute.xlu1 %2104 }
0x1b0a   :  { %v2080_v50 = vmul.f32 %v5212_v49, %v2077_v13  ;;  %v2082_v10 = vmul.f32 %v5213_v5, %v2077_v13  ;;  %v2079_v43 = vmul.f32 %v4224_v39, %v2077_v13  ;;  %v2081_v15 = vmul.f32 %v4305_v41, %v2077_v13 }
0x1b0b   :  { %v2108_v16 = vmul.f32 %v5212_v49, %v2105_v14  ;;  %v2110_v51 = vmul.f32 %v5213_v5, %v2105_v14  ;;  %v2107_v52 = vmul.f32 %v4224_v39, %v2105_v14  ;;  %v2109_v17 = vmul.f32 %v4305_v41, %v2105_v14 }
0x1b0c   :  { %v2090_v18 = vrot.slane %v2080_v50, 4  ;;  %v2091_v54 = vrot.slane %v2082_v10, 4  ;;  %v2087_v19 = vrot.slane %v2079_v43, 4  ;;  %v2088_v55 = vrot.slane %v2081_v15, 4  ;;  %v5218_v10 = vld [vmem:[#allocation18_spill] sm:$0xff]  ;;  %v5219_v43 = vld [vmem:[#allocation17_spill] sm:$0xff] }
0x1b0d   :  { %v2133_v20 = vpop.permute.xlu0 %2132  ;;  %v2118_v56 = vrot.slane %v2108_v16, 4  ;;  %v2119_v42 = vrot.slane %v2110_v51, 4  ;;  %v2115_v36 = vrot.slane %v2107_v52, 4  ;;  %v2116_v21 = vrot.slane %v2109_v17, 4  ;;  %v2161_v57 = vpop.permute.xlu1 %2160  ;;  %v825_v16 = vld [vmem:[#allocation2 + $0x128] sm:$0xff] }
0x1b0e   :  { %v2092_v8 = vsel %vm1772_vm3, %v2090_v18, %v2091_v54  ;;  %v2089_v38 = vsel %vm1772_vm3, %v2087_v19, %v2088_v55  ;;  %v2136_v22 = vmul.f32 %v5212_v49, %v2133_v20  ;;  %v2138_v58 = vmul.f32 %v5213_v5, %v2133_v20 }
0x1b0f   :  { %2095 = vrot.lane.b32.xlu1 %v2092_v8, %s3331_s18  ;;  %2093 = vrot.lane.b32.xlu0 %v2089_v38, %s3331_s18  ;;  %v2120_v46 = vsel %vm1772_vm3, %v2118_v56, %v2119_v42  ;;  %v2117_v9 = vsel %vm1772_vm3, %v2115_v36, %v2116_v21  ;;  %v2135_v23 = vmul.f32 %v4224_v39, %v2133_v20  ;;  %v827_v38 = vrot.slane %v825_v16, 6  ;;  %v5227_v16 = vld [vmem:[#allocation25_spill] sm:$0xff] }
0x1b10   :  { %v2146_v59 = vrot.slane %v2136_v22, 4  ;;  %v2147_v44 = vrot.slane %v2138_v58, 4  ;;  %v2137_v24 = vmul.f32 %v4305_v41, %v2133_v20  ;;  %v2164_v60 = vmul.f32 %v5212_v49, %v2161_v57  ;;  %v5220_v58 = vld [vmem:[#allocation20_spill] sm:$0xff] }
0x1b11   :  { %v2143_v48 = vrot.slane %v2135_v23, 4  ;;  %v2189_v25 = vpop.permute.xlu0 %2188  ;;  %v2166_v61 = vmul.f32 %v5213_v5, %v2161_v57  ;;  %v2163_v27 = vmul.f32 %v4224_v39, %v2161_v57  ;;  %v2165_v28 = vmul.f32 %v4305_v41, %v2161_v57  ;;  %v2217_v31 = vpop.permute.xlu1 %2216 }
0x1b12   :  { %v2148_v26 = vsel %vm1772_vm3, %v2146_v59, %v2147_v44  ;;  %v2144_v6 = vrot.slane %v2137_v24, 4  ;;  %v2192_v29 = vmul.f32 %v5212_v49, %v2189_v25  ;;  %v2174_v30 = vrot.slane %v2164_v60, 4 }
0x1b13   :  { %2123 = vrot.lane.b32.xlu1 %v2120_v46, %s3331_s18  ;;  %2121 = vrot.lane.b32.xlu0 %v2117_v9, %s3331_s18  ;;  %v2175_v63 = vrot.slane %v2166_v61, 4  ;;  %v2171_v0 = vrot.slane %v2163_v27, 4  ;;  %v2194_v32 = vmul.f32 %v5213_v5, %v2189_v25  ;;  %v2172_v2 = vrot.slane %v2165_v28, 4 }
0x1b14   :  { %v2145_v1 = vsel %vm1772_vm3, %v2143_v48, %v2144_v6  ;;  %v2191_v11 = vmul.f32 %v4224_v39, %v2189_v25  ;;  %v2193_v12 = vmul.f32 %v4305_v41, %v2189_v25  ;;  %v666_v13 = vsel %vm241_vm9, %v5217_v40, %v5216_v45 }
0x1b15   :  { %v814_v14 = vmul.f32 %v4224_v39, %v812_v47  ;;  %v815_v50 = vmul.f32 %v4305_v41, %v812_v47  ;;  %v694_v15 = vsel %vm241_vm9, %v5219_v43, %v5218_v10  ;;  %v2202_v51 = vrot.slane %v2192_v29, 4  ;;  %v2274_v42 = vpop.permute.xlu0 %2273  ;;  %v5221_v47 = vld [vmem:[#allocation19_spill] sm:$0xff]  ;;  %v2302_v24 = vpop.permute.xlu1 %2301  ;;  %v5222_v29 = vld [vmem:[#allocation22_spill] sm:$0xff] }
0x1b16   :  { %v2203_v52 = vrot.slane %v2194_v32, 4  ;;  %v2220_v17 = vmul.f32 %v5212_v49, %v2217_v31  ;;  %v2199_v53 = vrot.slane %v2191_v11, 4  ;;  %v2200_v18 = vrot.slane %v2193_v12, 4 }
0x1b17   :  { %2151 = vrot.lane.b32.xlu1 %v2148_v26, %s3332_s19  ;;  %2149 = vrot.lane.b32.xlu0 %v2145_v1, %s3332_s19  ;;  %v2222_v54 = vmul.f32 %v5213_v5, %v2217_v31  ;;  %v2219_v19 = vmul.f32 %v4224_v39, %v2217_v31  ;;  %v640_v55 = vadd.f32 %v638_v4, %v4449_v33  ;;  %v819_v57 = vrot.slane %v814_v14, 2 }
0x1b18   :  { %v2176_v20 = vsel %vm1772_vm3, %v2174_v30, %v2175_v63  ;;  %v2173_v56 = vsel %vm1772_vm3, %v2171_v0, %v2172_v2  ;;  %v2221_v36 = vmul.f32 %v4305_v41, %v2217_v31  ;;  %v668_v21 = vadd.f32 %v666_v13, %v612_v62  ;;  %v5223_v30 = vld [vmem:[#allocation21_spill] sm:$0xff]  ;;  %v5224_v0 = vld [vmem:[#allocation24_spill] sm:$0xff]  ;;  %v5225_v31 = vld [vmem:[#allocation23_spill] sm:$0xff] }
0x1b19   :  { %v820_v8 = vrot.slane %v815_v50, 2  ;;  %v696_v22 = vadd.f32 %v694_v15, %v640_v55  ;;  %v722_v46 = vsel %vm276_vm10, %v5221_v47, %v5220_v58  ;;  %v2204_v9 = vsel %vm1772_vm3, %v2202_v51, %v2203_v52  ;;  %v2330_v34 = vpop.permute.xlu0 %2329  ;;  %v5226_v15 = vld [vmem:[#allocation26_spill] sm:$0xff]  ;;  %v5229_v58 = vld [vmem:[#allocation27_spill] sm:$0xff] }
0x1b1a   :  { %v2230_v23 = vrot.slane %v2220_v17, 4  ;;  %v2201_v33 = vsel %vm1772_vm3, %v2199_v53, %v2200_v18  ;;  %v2231_v59 = vrot.slane %v2222_v54, 4  ;;  %v2227_v44 = vrot.slane %v2219_v19, 4 }
0x1b1b   :  { %2179 = vrot.lane.b32.xlu1 %v2176_v20, %s3332_s19  ;;  %2177 = vrot.lane.b32.xlu0 %v2173_v56, %s3332_s19  ;;  %v2277_v60 = vmul.f32 %v5212_v49, %v2274_v42  ;;  %v2228_v48 = vrot.slane %v2221_v36, 4  ;;  %v2279_v25 = vmul.f32 %v5213_v5, %v2274_v42  ;;  %v2276_v61 = vmul.f32 %v4224_v39, %v2274_v42 }
0x1b1c   :  { %v2278_v27 = vmul.f32 %v4305_v41, %v2274_v42  ;;  %v724_v28 = vadd.f32 %v722_v46, %v668_v21  ;;  %v821_v62 = vsel %vm818_vm1, %v819_v57, %v820_v8  ;;  %v829_v26 = vmul.f32 %v4224_v39, %v827_v38  ;;  %v2358_v42 = vpop.permute.xlu1 %2357 }
0x1b1d   :  { %v830_v6 = vmul.f32 %v4305_v41, %v827_v38  ;;  %v750_v63 = vsel %vm276_vm10, %v5223_v30, %v5222_v29  ;;  %v778_v32 = vsel %vm311_vm11, %v5225_v31, %v5224_v0  ;;  %v2305_v1 = vmul.f32 %v5212_v49, %v2302_v24  ;;  %v5232_v29 = vld [vmem:[#allocation32_spill] sm:$0xff]  ;;  %v5233_v30 = vld [vmem:[#allocation31_spill] sm:$0xff] }
0x1b1e   :  { %v2307_v2 = vmul.f32 %v5213_v5, %v2302_v24  ;;  %v2232_v11 = vsel %vm1772_vm3, %v2230_v23, %v2231_v59  ;;  %v2287_v12 = vrot.slane %v2277_v60, 5  ;;  %v2304_v3 = vmul.f32 %v4224_v39, %v2302_v24  ;;  %v2386_v59 = vpop.permute.xlu0 %2385 }
0x1b1f   :  { %2207 = vrot.lane.b32.xlu1 %v2204_v9, %s3333_s24  ;;  %2205 = vrot.lane.b32.xlu0 %v2201_v33, %s3333_s24  ;;  %v2306_v4 = vmul.f32 %v4305_v41, %v2302_v24  ;;  %v2229_v45 = vsel %vm1772_vm3, %v2227_v44, %v2228_v48  ;;  %v2288_v40 = vrot.slane %v2279_v25, 5  ;;  %v2284_v13 = vrot.slane %v2276_v61, 5 }
0x1b20   :  { %v2285_v14 = vrot.slane %v2278_v27, 5  ;;  %v780_v50 = vadd.f32 %v778_v32, %v724_v28  ;;  %v833_v10 = vrot.slane %v829_v26, 2  ;;  %v834_v43 = vrot.slane %v830_v6, 2  ;;  %v5231_v26 = vld [vmem:[#allocation29_spill] sm:$0xff] }
0x1b21   :  { %v806_v51 = vsel %vm311_vm11, %v5227_v16, %v5226_v15  ;;  %v2315_v52 = vrot.slane %v2305_v1, 5  ;;  %v2316_v17 = vrot.slane %v2307_v2, 5  ;;  %v2333_v53 = vmul.f32 %v5212_v49, %v2330_v34  ;;  %v2414_v2 = vpop.permute.xlu1 %2413  ;;  %v5237_v15 = vld [vmem:[#allocation35_spill] sm:$0xff] }
0x1b22   :  { %v752_v18 = vadd.f32 %v750_v63, %v696_v22  ;;  %v2312_v54 = vrot.slane %v2304_v3, 5  ;;  %v2313_v19 = vrot.slane %v2306_v4, 5  ;;  %v2335_v55 = vmul.f32 %v5213_v5, %v2330_v34  ;;  %v5228_v22 = vld [vmem:[#allocation28_spill] sm:$0xff] }
0x1b23   :  { %2235 = vrot.lane.b32.xlu1 %v2232_v11, %s3333_s24  ;;  %2233 = vrot.lane.b32.xlu0 %v2229_v45, %s3333_s24  ;;  %v2289_v20 = vsel %vm2249_vm12, %v2287_v12, %v2288_v40  ;;  %v2286_v56 = vsel %vm2249_vm12, %v2284_v13, %v2285_v14  ;;  %v2332_v36 = vmul.f32 %v4224_v39, %v2330_v34  ;;  %v2343_v9 = vrot.slane %v2333_v53, 5  ;;  %v5234_v14 = vld [vmem:[#allocation34_spill] sm:$0xff] }
0x1b24   :  { %v2334_v21 = vmul.f32 %v4305_v41, %v2330_v34  ;;  %v835_v57 = vsel %vm818_vm1, %v833_v10, %v834_v43  ;;  %v808_v8 = vadd.f32 %v806_v51, %v752_v18  ;;  %v823_v38 = vadd.f32 %v821_v62, %v780_v50  ;;  %v5230_v62 = vld [vmem:[#allocation30_spill] sm:$0xff]  ;;  %v5235_v50 = vld [vmem:[#allocation33_spill] sm:$0xff]  ;;  %v5236_v43 = vld [vmem:[#allocation36_spill] sm:$0xff] }
0x1b25   :  { %v863_v47 = vsel %vm66_vm4, %v5229_v58, %v5228_v22  ;;  %v2317_v46 = vsel %vm2249_vm12, %v2315_v52, %v2316_v17  ;;  %v2314_v23 = vsel %vm2249_vm12, %v2312_v54, %v2313_v19  ;;  %v2344_v33 = vrot.slane %v2335_v55, 5  ;;  %v5240_v22 = vld [vmem:[#allocation40_spill] sm:$0xff]  ;;  %v5241_v58 = vld [vmem:[#allocation39_spill] sm:$0xff] }
0x1b26   :  { %v2361_v44 = vmul.f32 %v5212_v49, %v2358_v42  ;;  %v2363_v24 = vmul.f32 %v5213_v5, %v2358_v42  ;;  %v2340_v60 = vrot.slane %v2332_v36, 5  ;;  %v2341_v48 = vrot.slane %v2334_v21, 5 }
0x1b27   :  { %2292 = vrot.lane.b32.xlu1 %v2289_v20, %s3326_s13  ;;  %2290 = vrot.lane.b32.xlu0 %v2286_v56, %s3326_s13  ;;  %v2360_v25 = vmul.f32 %v4224_v39, %v2358_v42  ;;  %v2362_v61 = vmul.f32 %v4305_v41, %v2358_v42  ;;  %v837_v27 = vadd.f32 %v835_v57, %v808_v8  ;;  %v2442_v56 = vpop.permute.xlu0 %2441  ;;  %v5238_v57 = vld [vmem:[#allocation38_spill] sm:$0xff]  ;;  %v5239_v8 = vld [vmem:[#allocation37_spill] sm:$0xff] }
0x1b28   :  { %v865_v28 = vadd.f32 %v863_v47, %v823_v38  ;;  %v891_v6 = vsel %vm66_vm4, %v5231_v26, %v5230_v62  ;;  %v919_v63 = vsel %vm101_vm5, %v5233_v30, %v5232_v29  ;;  %v2389_v0 = vmul.f32 %v5212_v49, %v2386_v59  ;;  %v5242_v62 = vld [vmem:[#allocation42_spill] sm:$0xff]  ;;  %v5243_v26 = vld [vmem:[#allocation41_spill] sm:$0xff]  ;;  %v5244_v29 = vld [vmem:[#allocation44_spill] sm:$0xff] }
0x1b29   :  { %v2391_v31 = vmul.f32 %v5213_v5, %v2386_v59  ;;  %v2345_v32 = vsel %vm2249_vm12, %v2343_v9, %v2344_v33  ;;  %v2371_v1 = vrot.slane %v2361_v44, 5  ;;  %v2388_v11 = vmul.f32 %v4224_v39, %v2386_v59  ;;  %v2470_v44 = vpop.permute.xlu1 %2469  ;;  %v5245_v30 = vld [vmem:[#allocation43_spill] sm:$0xff] }
0x1b2a   :  { %v2390_v12 = vmul.f32 %v4305_v41, %v2386_v59  ;;  %v2342_v34 = vsel %vm2249_vm12, %v2340_v60, %v2341_v48  ;;  %v2372_v3 = vrot.slane %v2363_v24, 5  ;;  %v2368_v4 = vrot.slane %v2360_v25, 5 }
0x1b2b   :  { %2320 = vrot.lane.b32.xlu1 %v2317_v46, %s3326_s13  ;;  %2318 = vrot.lane.b32.xlu0 %v2314_v23, %s3326_s13  ;;  %v2369_v45 = vrot.slane %v2362_v61, 5  ;;  %v893_v40 = vadd.f32 %v891_v6, %v837_v27  ;;  %v921_v13 = vadd.f32 %v919_v63, %v865_v28  ;;  %v947_v10 = vsel %vm101_vm5, %v5235_v50, %v5234_v14 }
0x1b2c   :  { %v975_v16 = vsel %vm136_vm6, %v5237_v15, %v5236_v43  ;;  %v2399_v51 = vrot.slane %v2389_v0, 5  ;;  %v2400_v52 = vrot.slane %v2391_v31, 5  ;;  %v2417_v17 = vmul.f32 %v5212_v49, %v2414_v2  ;;  %v5246_v0 = vld [vmem:[#allocation46_spill] sm:$0xff]  ;;  %v5247_v31 = vld [vmem:[#allocation45_spill] sm:$0xff] }
0x1b2d   :  { %v2396_v53 = vrot.slane %v2388_v11, 5  ;;  %v2397_v18 = vrot.slane %v2390_v12, 5  ;;  %v2419_v54 = vmul.f32 %v5213_v5, %v2414_v2  ;;  %v2416_v19 = vmul.f32 %v4224_v39, %v2414_v2  ;;  %v1287_v11 = vld [vmem:[#allocation2 + $0x1b0] sm:$0xff] }
0x1b2e   :  { %v2373_v55 = vsel %vm2249_vm12, %v2371_v1, %v2372_v3  ;;  %v2370_v20 = vsel %vm2249_vm12, %v2368_v4, %v2369_v45  ;;  %v2418_v42 = vmul.f32 %v4305_v41, %v2414_v2  ;;  %v949_v36 = vadd.f32 %v947_v10, %v893_v40  ;;  %v5248_v1 = vld [vmem:[#allocation48_spill] sm:$0xff]  ;;  %v5249_v2 = vld [vmem:[#allocation47_spill] sm:$0xff]  ;;  %v2498_v45 = vpop.permute.xlu0 %2497  ;;  %v4617_v40 = vld [vmem:[%s5097_s0] sm:$0xff] }
0x1b2f   :  { %2348 = vrot.lane.b32.xlu1 %v2345_v32, %s3327_s14  ;;  %2346 = vrot.lane.b32.xlu0 %v2342_v34, %s3327_s14  ;;  %v977_v21 = vadd.f32 %v975_v16, %v921_v13  ;;  %v1003_v38 = vsel %vm136_vm6, %v5239_v8, %v5238_v57  ;;  %v1031_v47 = vsel %vm171_vm7, %v5241_v58, %v5240_v22  ;;  %v2427_v9 = vrot.slane %v2417_v17, 5  ;;  %v2526_v22 = vpop.permute.xlu1 %2525 }
0x1b30   :  { %v2401_v46 = vsel %vm2249_vm12, %v2399_v51, %v2400_v52  ;;  %v2398_v23 = vsel %vm2249_vm12, %v2396_v53, %v2397_v18  ;;  %v2428_v33 = vrot.slane %v2419_v54, 5  ;;  %v2424_v59 = vrot.slane %v2416_v19, 5  ;;  %v5250_v51 = vld [vmem:[#allocation50_spill] sm:$0xff]  ;;  %v5251_v52 = vld [vmem:[#allocation49_spill] sm:$0xff] }
0x1b31   :  { %v2445_v24 = vmul.f32 %v5212_v49, %v2442_v56  ;;  %v2425_v60 = vrot.slane %v2418_v42, 5  ;;  %v2447_v48 = vmul.f32 %v5213_v5, %v2442_v56  ;;  %v2444_v25 = vmul.f32 %v4224_v39, %v2442_v56  ;;  %v1302_v18 = vld [vmem:[#allocation2 + $0x1b8] sm:$0xff] }
0x1b32   :  { %v2446_v61 = vmul.f32 %v4305_v41, %v2442_v56  ;;  %v1005_v27 = vadd.f32 %v1003_v38, %v949_v36  ;;  %v1033_v28 = vadd.f32 %v1031_v47, %v977_v21  ;;  %v1059_v6 = vsel %vm171_vm7, %v5243_v26, %v5242_v62 }
0x1b33   :  { %2376 = vrot.lane.b32.xlu1 %v2373_v55, %s3327_s14  ;;  %2374 = vrot.lane.b32.xlu0 %v2370_v20, %s3327_s14  ;;  %v1087_v63 = vsel %vm206_vm8, %v5245_v30, %v5244_v29  ;;  %v1115_v32 = vsel %vm206_vm8, %v5247_v31, %v5246_v0  ;;  %v1143_v39 = vsel %vm241_vm9, %v5249_v2, %v5248_v1  ;;  %v2455_v4 = vrot.slane %v2445_v24, 5  ;;  %v4628_v55 = vld [vmem:[%s5097_s0 + $0x8] sm:$0xff]  ;;  %v5254_v1 = vld [vmem:[#allocation54_spill] sm:$0xff]  ;;  %v5255_v2 = vld [vmem:[#allocation53_spill] sm:$0xff] }
0x1b34   :  { %v2473_v12 = vmul.f32 %v5212_v49, %v2470_v44  ;;  %v2475_v34 = vmul.f32 %v5213_v5, %v2470_v44  ;;  %v2429_v3 = vsel %vm2249_vm12, %v2427_v9, %v2428_v33  ;;  %v2472_v13 = vmul.f32 %v4617_v40, %v2470_v44  ;;  %v5252_v9 = vld [vmem:[#allocation52_spill] sm:$0xff] }
0x1b35   :  { %v2474_v14 = vmul.f32 %v4305_v41, %v2470_v44  ;;  %v2426_v49 = vsel %vm2249_vm12, %v2424_v59, %v2425_v60  ;;  %v2456_v50 = vrot.slane %v2447_v48, 5  ;;  %v2452_v10 = vrot.slane %v2444_v25, 5 }
0x1b36   :  { %v2453_v43 = vrot.slane %v2446_v61, 5  ;;  %v1061_v15 = vadd.f32 %v1059_v6, %v1005_v27  ;;  %v1089_v16 = vadd.f32 %v1087_v63, %v1033_v28  ;;  %v1171_v17 = vsel %vm241_vm9, %v5251_v52, %v5250_v51  ;;  %v2554_v27 = vpop.permute.xlu0 %2553  ;;  %v5257_v51 = vld [vmem:[#allocation55_spill] sm:$0xff] }
0x1b37   :  { %2404 = vrot.lane.b32.xlu1 %v2401_v46, %s3328_s15  ;;  %2402 = vrot.lane.b32.xlu0 %v2398_v23, %s3328_s15  ;;  %v1289_v53 = vrot.slane %v1287_v11, 5  ;;  %v2483_v54 = vrot.slane %v2473_v12, 5  ;;  %v2484_v19 = vrot.slane %v2475_v34, 5  ;;  %v2501_v20 = vmul.f32 %v4628_v55, %v2498_v45  ;;  %v5253_v23 = vld [vmem:[#allocation51_spill] sm:$0xff] }
0x1b38   :  { %v2503_v56 = vmul.f32 %v5213_v5, %v2498_v45  ;;  %v1117_v42 = vadd.f32 %v1115_v32, %v1061_v15  ;;  %v1145_v36 = vadd.f32 %v1143_v39, %v1089_v16  ;;  %v2480_v21 = vrot.slane %v2472_v13, 5  ;;  %v5256_v16 = vld [vmem:[#allocation56_spill] sm:$0xff] }
0x1b39   :  { %v2481_v57 = vrot.slane %v2474_v14, 5  ;;  %v2457_v8 = vsel %vm2249_vm12, %v2455_v4, %v2456_v50  ;;  %v2454_v38 = vsel %vm2249_vm12, %v2452_v10, %v2453_v43  ;;  %v2500_v58 = vmul.f32 %v4617_v40, %v2498_v45  ;;  %v2582_v4 = vpop.permute.xlu1 %2581 }
0x1b3a   :  { %v2502_v47 = vmul.f32 %v4305_v41, %v2498_v45  ;;  %v1173_v46 = vadd.f32 %v1171_v17, %v1117_v42  ;;  %v1199_v33 = vsel %vm276_vm10, %v5253_v23, %v5252_v9  ;;  %v1291_v59 = vmul.f32 %v4617_v40, %v1289_v53 }
0x1b3b   :  { %2432 = vrot.lane.b32.xlu1 %v2429_v3, %s3328_s15  ;;  %2430 = vrot.lane.b32.xlu0 %v2426_v49, %s3328_s15  ;;  %v1304_v44 = vrot.slane %v1302_v18, 5  ;;  %v1292_v24 = vmul.f32 %v4305_v41, %v1289_v53  ;;  %v2485_v60 = vsel %vm2249_vm12, %v2483_v54, %v2484_v19  ;;  %v2511_v48 = vrot.slane %v2501_v20, 5  ;;  %v5258_v18 = vld [vmem:[#allocation58_spill] sm:$0xff]  ;;  %v5259_v54 = vld [vmem:[#allocation57_spill] sm:$0xff] }
0x1b3c   :  { %v2512_v25 = vrot.slane %v2503_v56, 5  ;;  %v2482_v61 = vsel %vm2249_vm12, %v2480_v21, %v2481_v57  ;;  %v2529_v28 = vmul.f32 %v4628_v55, %v2526_v22  ;;  %v2531_v62 = vmul.f32 %v5213_v5, %v2526_v22 }
0x1b3d   :  { %v2508_v26 = vrot.slane %v2500_v58, 5  ;;  %v2509_v6 = vrot.slane %v2502_v47, 5  ;;  %v2528_v29 = vmul.f32 %v4617_v40, %v2526_v22  ;;  %v2530_v30 = vmul.f32 %v4305_v41, %v2526_v22  ;;  %v2610_v58 = vpop.permute.xlu0 %2609  ;;  %v4680_v47 = vld [vmem:[%s5097_s0 + $0x10] sm:$0xff] }
0x1b3e   :  { %v1201_v63 = vadd.f32 %v1199_v33, %v1145_v36  ;;  %v1296_v0 = vrot.slane %v1291_v59, 3  ;;  %v1306_v31 = vmul.f32 %v4617_v40, %v1304_v44  ;;  %v1307_v32 = vmul.f32 %v4305_v41, %v1304_v44 }
0x1b3f   :  { %2460 = vrot.lane.b32.xlu1 %v2457_v8, %s3329_s16  ;;  %2458 = vrot.lane.b32.xlu0 %v2454_v38, %s3329_s16  ;;  %v1227_v39 = vsel %vm276_vm10, %v5255_v2, %v5254_v1  ;;  %v1297_v11 = vrot.slane %v1292_v24, 3  ;;  %v2513_v12 = vsel %vm2249_vm12, %v2511_v48, %v2512_v25  ;;  %v2557_v34 = vmul.f32 %v4628_v55, %v2554_v27  ;;  %v2638_v8 = vpop.permute.xlu1 %2637  ;;  %v5262_v1 = vld [vmem:[#allocation62_spill] sm:$0xff]  ;;  %v5263_v2 = vld [vmem:[#allocation61_spill] sm:$0xff] }
0x1b40   :  { %v2539_v3 = vrot.slane %v2529_v28, 5  ;;  %v2559_v45 = vmul.f32 %v5213_v5, %v2554_v27  ;;  %v2556_v13 = vmul.f32 %v4617_v40, %v2554_v27  ;;  %v2558_v14 = vmul.f32 %v4305_v41, %v2554_v27  ;;  %v4693_v28 = vld [vmem:[%s5097_s0 + $0x18] sm:$0xff] }
0x1b41   :  { %v2510_v49 = vsel %vm2249_vm12, %v2508_v26, %v2509_v6  ;;  %v2540_v50 = vrot.slane %v2531_v62, 5  ;;  %v2536_v10 = vrot.slane %v2528_v29, 5  ;;  %v2537_v43 = vrot.slane %v2530_v30, 5 }
0x1b42   :  { %v1229_v15 = vadd.f32 %v1227_v39, %v1173_v46  ;;  %v1255_v52 = vsel %vm311_vm11, %v5257_v51, %v5256_v16  ;;  %v1310_v17 = vrot.slane %v1306_v31, 3  ;;  %v1311_v53 = vrot.slane %v1307_v32, 3  ;;  %v5261_v31 = vld [vmem:[#allocation59_spill] sm:$0xff] }
0x1b43   :  { %2488 = vrot.lane.b32.xlu1 %v2485_v60, %s3329_s16  ;;  %2486 = vrot.lane.b32.xlu0 %v2482_v61, %s3329_s16  ;;  %v1283_v19 = vsel %vm311_vm11, %v5259_v54, %v5258_v18  ;;  %v2567_v20 = vrot.slane %v2557_v34, 5  ;;  %v2585_v56 = vmul.f32 %v4628_v55, %v2582_v4  ;;  %v2587_v41 = vmul.f32 %v5213_v5, %v2582_v4  ;;  %v2694_v61 = vpop.permute.xlu1 %2693  ;;  %v5265_v16 = vld [vmem:[#allocation63_spill] sm:$0xff] }
0x1b44   :  { %v2568_v42 = vrot.slane %v2559_v45, 5  ;;  %v2564_v36 = vrot.slane %v2556_v13, 5  ;;  %v2565_v21 = vrot.slane %v2558_v14, 5  ;;  %v2584_v57 = vmul.f32 %v4617_v40, %v2582_v4 }
0x1b45   :  { %v2541_v38 = vsel %vm2249_vm12, %v2539_v3, %v2540_v50  ;;  %v2538_v22 = vsel %vm2249_vm12, %v2536_v10, %v2537_v43  ;;  %v2586_v5 = vmul.f32 %v4680_v47, %v2582_v4  ;;  %v1257_v46 = vadd.f32 %v1255_v52, %v1201_v63  ;;  %v2666_v63 = vpop.permute.xlu0 %2665  ;;  %v5266_v52 = vld [vmem:[#allocation66_spill] sm:$0xff] }
0x1b46   :  { %v1285_v9 = vadd.f32 %v1283_v19, %v1229_v15  ;;  %v1298_v23 = vsel %vm1295_vm2, %v1296_v0, %v1297_v11  ;;  %v1312_v33 = vsel %vm1295_vm2, %v1310_v17, %v1311_v53  ;;  %v2595_v59 = vrot.slane %v2585_v56, 5  ;;  %v5260_v0 = vld [vmem:[#allocation60_spill] sm:$0xff]  ;;  %v5267_v17 = vld [vmem:[#allocation65_spill] sm:$0xff] }
0x1b47   :  { %2516 = vrot.lane.b32.xlu1 %v2513_v12, %s3330_s17  ;;  %2514 = vrot.lane.b32.xlu0 %v2510_v49, %s3330_s17  ;;  %v2596_v44 = vrot.slane %v2587_v41, 5  ;;  %v2569_v24 = vsel %vm2249_vm12, %v2567_v20, %v2568_v42  ;;  %v2566_v60 = vsel %vm2249_vm12, %v2564_v36, %v2565_v21  ;;  %v2592_v48 = vrot.slane %v2584_v57, 5  ;;  %v5264_v15 = vld [vmem:[#allocation64_spill] sm:$0xff]  ;;  %v4718_v18 = vpop.permute.xlu1 %2778 }
0x1b48   :  { %v2613_v25 = vmul.f32 %v4628_v55, %v2610_v58  ;;  %v2593_v27 = vrot.slane %v2586_v5, 5  ;;  %v2615_v62 = vmul.f32 %v4693_v28, %v2610_v58  ;;  %v2612_v26 = vmul.f32 %v4617_v40, %v2610_v58 }
0x1b49   :  { %v2614_v6 = vmul.f32 %v4680_v47, %v2610_v58  ;;  %v1300_v29 = vadd.f32 %v1298_v23, %v1257_v46  ;;  %v1314_v30 = vadd.f32 %v1312_v33, %v1285_v9  ;;  %v1340_v32 = vsel %vm66_vm4, %v5261_v31, %v5260_v0  ;;  %v2751_v54 = vpop.permute.xlu0 %2750  ;;  %v5270_v23 = vld [vmem:[#allocation70_spill] sm:$0xff]  ;;  %v5271_v33 = vld [vmem:[#allocation69_spill] sm:$0xff] }
0x1b4a   :  { %v1368_v39 = vsel %vm66_vm4, %v5263_v2, %v5262_v1  ;;  %v2597_v11 = vsel %vm2249_vm12, %v2595_v59, %v2596_v44  ;;  %v2641_v12 = vmul.f32 %v4628_v55, %v2638_v8  ;;  %v2623_v34 = vrot.slane %v2613_v25, 5  ;;  %v5272_v44 = vld [vmem:[#allocation72_spill] sm:$0xff] }
0x1b4b   :  { %2544 = vrot.lane.b32.xlu1 %v2541_v38, %s3330_s17  ;;  %2542 = vrot.lane.b32.xlu0 %v2538_v22, %s3330_s17  ;;  %v2643_v3 = vmul.f32 %v4693_v28, %v2638_v8  ;;  %v2640_v4 = vmul.f32 %v4617_v40, %v2638_v8  ;;  %v2642_v45 = vmul.f32 %v4680_v47, %v2638_v8  ;;  %v2624_v14 = vrot.slane %v2615_v62, 5  ;;  %v5268_v8 = vld [vmem:[#allocation68_spill] sm:$0xff]  ;;  %v5269_v38 = vld [vmem:[#allocation67_spill] sm:$0xff] }
0x1b4c   :  { %v2594_v13 = vsel %vm2249_vm12, %v2592_v48, %v2593_v27  ;;  %v2620_v49 = vrot.slane %v2612_v26, 5  ;;  %v2621_v50 = vrot.slane %v2614_v6, 5  ;;  %v1342_v10 = vadd.f32 %v1340_v32, %v1300_v29 }
0x1b4d   :  { %v1370_v43 = vadd.f32 %v1368_v39, %v1314_v30  ;;  %v1396_v51 = vsel %vm101_vm5, %v5265_v16, %v5264_v15  ;;  %v1424_v53 = vsel %vm101_vm5, %v5267_v17, %v5266_v52  ;;  %v2669_v19 = vmul.f32 %v4628_v55, %v2666_v63  ;;  %v4741_v30 = vpop.permute.xlu1 %2834 }
0x1b4e   :  { %v2671_v20 = vmul.f32 %v4693_v28, %v2666_v63  ;;  %v2668_v56 = vmul.f32 %v4617_v40, %v2666_v63  ;;  %v2670_v41 = vmul.f32 %v4680_v47, %v2666_v63  ;;  %v2651_v42 = vrot.slane %v2641_v12, 5  ;;  %v4743_v63 = vpop.permute.xlu0 %2806  ;;  %v5275_v12 = vld [vmem:[#allocation73_spill] sm:$0xff] }
0x1b4f   :  { %2572 = vrot.lane.b32.xlu1 %v2569_v24, %s3331_s18  ;;  %2570 = vrot.lane.b32.xlu0 %v2566_v60, %s3331_s18  ;;  %v2652_v36 = vrot.slane %v2643_v3, 5  ;;  %v2648_v21 = vrot.slane %v2640_v4, 5  ;;  %v2649_v57 = vrot.slane %v2642_v45, 5  ;;  %v1452_v22 = vsel %vm136_vm6, %v5269_v38, %v5268_v8  ;;  %v5273_v24 = vld [vmem:[#allocation71_spill] sm:$0xff]  ;;  %v5276_v3 = vld [vmem:[#allocation76_spill] sm:$0xff]  ;;  %v5283_v8 = vld [vmem:[#allocation81_spill] sm:$0xff] }
0x1b50   :  { %v2625_v58 = vsel %vm2249_vm12, %v2623_v34, %v2624_v14  ;;  %v2622_v5 = vsel %vm2249_vm12, %v2620_v49, %v2621_v50  ;;  %v1398_v46 = vadd.f32 %v1396_v51, %v1342_v10  ;;  %v1426_v9 = vadd.f32 %v1424_v53, %v1370_v43  ;;  %v5277_v4 = vld [vmem:[#allocation75_spill] sm:$0xff]  ;;  %v1764_v43 = vld [vmem:[#allocation2 + $0x240] sm:$0xff] }
0x1b51   :  { %v1480_v59 = vsel %vm136_vm6, %v5271_v33, %v5270_v23  ;;  %v1508_v60 = vsel %vm171_vm7, %v5273_v24, %v5272_v44  ;;  %v2679_v48 = vrot.slane %v2669_v19, 5  ;;  %v2680_v25 = vrot.slane %v2671_v20, 5  ;;  %v4763_v17 = vpop.permute.xlu1 %2890  ;;  %v5284_v44 = vld [vmem:[#allocation84_spill] sm:$0xff]  ;;  %v5285_v24 = vld [vmem:[#allocation83_spill] sm:$0xff] }
0x1b52   :  { %v2676_v27 = vrot.slane %v2668_v56, 5  ;;  %v2677_v62 = vrot.slane %v2670_v41, 5  ;;  %v1454_v26 = vadd.f32 %v1452_v22, %v1398_v46  ;;  %v2653_v6 = vsel %vm2249_vm12, %v2651_v42, %v2652_v36  ;;  %v4765_v53 = vpop.permute.xlu0 %2862  ;;  %v5278_v56 = vld [vmem:[#allocation78_spill] sm:$0xff]  ;;  %v5279_v41 = vld [vmem:[#allocation77_spill] sm:$0xff]  ;;  %v5280_v36 = vld [vmem:[#allocation80_spill] sm:$0xff] }
0x1b53   :  { %2600 = vrot.lane.b32.xlu1 %v2597_v11, %s3331_s18  ;;  %2598 = vrot.lane.b32.xlu0 %v2594_v13, %s3331_s18  ;;  %v2650_v29 = vsel %vm2249_vm12, %v2648_v21, %v2649_v57  ;;  %v2697_v0 = vmul.f32 %v4628_v55, %v2694_v61  ;;  %v2699_v31 = vmul.f32 %v4693_v28, %v2694_v61  ;;  %v5274_v11 = vld [vmem:[#allocation74_spill] sm:$0xff]  ;;  %v5281_v21 = vld [vmem:[#allocation79_spill] sm:$0xff]  ;;  %v1766_v22 = vrot.slane %v1764_v43, 4 }
0x1b54   :  { %v2696_v32 = vmul.f32 %v4617_v40, %v2694_v61  ;;  %v2698_v1 = vmul.f32 %v4680_v47, %v2694_v61  ;;  %v1482_v2 = vadd.f32 %v1480_v59, %v1426_v9  ;;  %v1510_v39 = vadd.f32 %v1508_v60, %v1454_v26  ;;  %v1779_v46 = vld [vmem:[#allocation2 + $0x248] sm:$0xff] }
0x1b55   :  { %v1536_v34 = vsel %vm171_vm7, %v5275_v12, %v5274_v11  ;;  %v1564_v45 = vsel %vm206_vm8, %v5277_v4, %v5276_v3  ;;  %v2681_v13 = vsel %vm2249_vm12, %v2679_v48, %v2680_v25  ;;  %v2678_v14 = vsel %vm2249_vm12, %v2676_v27, %v2677_v62 }
0x1b56   :  { %v2753_v49 = vmul.f32 %v4617_v40, %v2751_v54  ;;  %v2754_v61 = vmul.f32 %v4628_v55, %v2751_v54  ;;  %v2755_v50 = vmul.f32 %v4680_v47, %v2751_v54  ;;  %v2756_v10 = vmul.f32 %v4693_v28, %v2751_v54  ;;  %v5282_v54 = vld [vmem:[#allocation82_spill] sm:$0xff] }
0x1b57   :  { %2628 = vrot.lane.b32.xlu1 %v2625_v58, %s3332_s19  ;;  %2626 = vrot.lane.b32.xlu0 %v2622_v5, %s3332_s19  ;;  %v2707_v15 = vrot.slane %v2697_v0, 5  ;;  %v2708_v16 = vrot.slane %v2699_v31, 5  ;;  %v2704_v51 = vrot.slane %v2696_v32, 5  ;;  %v2705_v52 = vrot.slane %v2698_v1, 5  ;;  %v4795_v32 = vpop.permute.xlu1 %2946  ;;  %v4797_v1 = vpop.permute.xlu0 %2918 }
0x1b58   :  { %v1538_v19 = vadd.f32 %v1536_v34, %v1482_v2  ;;  %v1566_v20 = vadd.f32 %v1564_v45, %v1510_v39  ;;  %v1592_v42 = vsel %vm206_vm8, %v5279_v41, %v5278_v56  ;;  %v1620_v57 = vsel %vm241_vm9, %v5281_v21, %v5280_v36 }
0x1b59   :  { %v1648_v38 = vsel %vm241_vm9, %v5283_v8, %v5282_v54  ;;  %v2761_v58 = vrot.slane %v2753_v49, 6  ;;  %v2764_v5 = vrot.slane %v2754_v61, 6  ;;  %v2762_v9 = vrot.slane %v2755_v50, 6 }
0x1b5a   :  { %v2765_v23 = vrot.slane %v2756_v10, 6  ;;  %v2709_v33 = vsel %vm2249_vm12, %v2707_v15, %v2708_v16  ;;  %v2706_v59 = vsel %vm2249_vm12, %v2704_v51, %v2705_v52  ;;  %v1676_v60 = vsel %vm276_vm10, %v5285_v24, %v5284_v44  ;;  %v5286_v15 = vld [vmem:[#allocation86_spill] sm:$0xff]  ;;  %v5287_v16 = vld [vmem:[#allocation85_spill] sm:$0xff]  ;;  %v5288_v52 = vld [vmem:[#allocation88_spill] sm:$0xff] }
0x1b5b   :  { %2656 = vrot.lane.b32.xlu1 %v2653_v6, %s3332_s19  ;;  %2654 = vrot.lane.b32.xlu0 %v2650_v29, %s3332_s19  ;;  %v2781_v48 = vmul.f32 %v4617_v40, %v4718_v18  ;;  %v2782_v25 = vmul.f32 %v4628_v55, %v4718_v18  ;;  %v1594_v27 = vadd.f32 %v1592_v42, %v1538_v19  ;;  %v1781_v31 = vrot.slane %v1779_v46, 4  ;;  %v5289_v19 = vld [vmem:[#allocation87_spill] sm:$0xff]  ;;  %v4829_v54 = vpop.permute.xlu0 %2974 }
0x1b5c   :  { %v1622_v62 = vadd.f32 %v1620_v57, %v1566_v20  ;;  %v2783_v26 = vmul.f32 %v4680_v47, %v4718_v18  ;;  %v2784_v6 = vmul.f32 %v4693_v28, %v4718_v18  ;;  %v1768_v29 = vmul.f32 %v4617_v40, %v1766_v22  ;;  %v4827_v57 = vpop.permute.xlu1 %3002 }
0x1b5d   :  { %v1769_v0 = vmul.f32 %v4680_v47, %v1766_v22  ;;  %v1650_v2 = vadd.f32 %v1648_v38, %v1594_v27  ;;  %v2766_v11 = vsel %vm2726_vm13, %v2764_v5, %v2765_v23  ;;  %v2763_v12 = vsel %vm2726_vm13, %v2761_v58, %v2762_v9 }
0x1b5e   :  { %v1678_v39 = vadd.f32 %v1676_v60, %v1622_v62  ;;  %v2789_v18 = vrot.slane %v2781_v48, 6  ;;  %v2792_v34 = vrot.slane %v2782_v25, 6  ;;  %v2809_v3 = vmul.f32 %v4617_v40, %v4743_v63 }
0x1b5f   :  { %2684 = vrot.lane.b32.xlu1 %v2681_v13, %s3333_s24  ;;  %2682 = vrot.lane.b32.xlu0 %v2678_v14, %s3333_s24  ;;  %v2810_v4 = vmul.f32 %v4628_v55, %v4743_v63  ;;  %v2790_v45 = vrot.slane %v2783_v26, 6  ;;  %v2793_v13 = vrot.slane %v2784_v6, 6  ;;  %v2811_v14 = vmul.f32 %v4680_v47, %v4743_v63 }
0x1b60   :  { %v2812_v49 = vmul.f32 %v4693_v28, %v4743_v63  ;;  %v1773_v61 = vrot.slane %v1768_v29, 4  ;;  %v1774_v50 = vrot.slane %v1769_v0, 4  ;;  %v1783_v10 = vmul.f32 %v4617_v40, %v1781_v31 }
0x1b61   :  { %v1784_v43 = vmul.f32 %v4680_v47, %v1781_v31  ;;  %v1704_v51 = vsel %vm276_vm10, %v5287_v16, %v5286_v15  ;;  %v1732_v20 = vsel %vm311_vm11, %v5289_v19, %v5288_v52  ;;  %v2837_v63 = vmul.f32 %v4617_v40, %v4741_v30  ;;  %v5295_v52 = vld [vmem:[#allocation93_spill] sm:$0xff] }
0x1b62   :  { %v2838_v56 = vmul.f32 %v4628_v55, %v4741_v30  ;;  %v2839_v41 = vmul.f32 %v4680_v47, %v4741_v30  ;;  %v2840_v42 = vmul.f32 %v4693_v28, %v4741_v30  ;;  %v2817_v36 = vrot.slane %v2809_v3, 6 }
0x1b63   :  { %2712 = vrot.lane.b32.xlu1 %v2709_v33, %s3333_s24  ;;  %2710 = vrot.lane.b32.xlu0 %v2706_v59, %s3333_s24  ;;  %v2820_v21 = vrot.slane %v2810_v4, 6  ;;  %v2818_v8 = vrot.slane %v2811_v14, 6  ;;  %v2821_v38 = vrot.slane %v2812_v49, 6  ;;  %v2794_v22 = vsel %vm2726_vm13, %v2792_v34, %v2793_v13  ;;  %v5290_v33 = vld [vmem:[#allocation90_spill] sm:$0xff]  ;;  %v5291_v59 = vld [vmem:[#allocation89_spill] sm:$0xff]  ;;  %v5293_v34 = vld [vmem:[#allocation91_spill] sm:$0xff] }
0x1b64   :  { %v2791_v58 = vsel %vm2726_vm13, %v2789_v18, %v2790_v45  ;;  %v1706_v5 = vadd.f32 %v1704_v51, %v1650_v2  ;;  %v1775_v46 = vsel %vm1772_vm3, %v1773_v61, %v1774_v50  ;;  %v1787_v9 = vrot.slane %v1783_v10, 4  ;;  %v5292_v18 = vld [vmem:[#allocation92_spill] sm:$0xff]  ;;  %v5294_v51 = vld [vmem:[#allocation94_spill] sm:$0xff] }
0x1b65   :  { %v1788_v23 = vrot.slane %v1784_v43, 4  ;;  %v1734_v30 = vadd.f32 %v1732_v20, %v1678_v39  ;;  %v1760_v44 = vsel %vm311_vm11, %v5291_v59, %v5290_v33  ;;  %v2845_v24 = vrot.slane %v2837_v63, 6  ;;  %v4852_v39 = vpop.permute.xlu1 %3058  ;;  %v5296_v20 = vld [vmem:[#allocation96_spill] sm:$0xff]  ;;  %v5298_v33 = vld [vmem:[#allocation99_spill] sm:$0xff]  ;;  %v5299_v59 = vld [vmem:[#allocation97_spill] sm:$0xff] }
0x1b66   :  { %v2848_v60 = vrot.slane %v2838_v56, 6  ;;  %v2846_v48 = vrot.slane %v2839_v41, 6  ;;  %v2849_v25 = vrot.slane %v2840_v42, 6  ;;  %v2865_v27 = vmul.f32 %v4617_v40, %v4765_v53 }
0x1b67   :  { %2769 = vrot.lane.b32.xlu1 %v2766_v11, %s3326_s13  ;;  %2767 = vrot.lane.b32.xlu0 %v2763_v12, %s3326_s13  ;;  %v2867_v62 = vmul.f32 %v4680_v47, %v4765_v53  ;;  %v2866_v26 = vmul.f32 %v4628_v55, %v4765_v53  ;;  %v2868_v6 = vmul.f32 %v4693_v28, %v4765_v53  ;;  %v4854_v11 = vpop.permute.xlu0 %3030 }
0x1b68   :  { %v2822_v29 = vsel %vm2726_vm13, %v2820_v21, %v2821_v38  ;;  %v2819_v0 = vsel %vm2726_vm13, %v2817_v36, %v2818_v8  ;;  %v1762_v31 = vadd.f32 %v1760_v44, %v1706_v5  ;;  %v1789_v2 = vsel %vm1772_vm3, %v1787_v9, %v1788_v23 }
0x1b69   :  { %v1777_v12 = vadd.f32 %v1775_v46, %v1734_v30  ;;  %v1817_v53 = vsel %vm66_vm4, %v5293_v34, %v5292_v18  ;;  %v2893_v3 = vmul.f32 %v4617_v40, %v4763_v17  ;;  %v2894_v4 = vmul.f32 %v4628_v55, %v4763_v17  ;;  %v4881_v38 = vpop.permute.xlu1 %3114 }
0x1b6a   :  { %v2895_v45 = vmul.f32 %v4680_v47, %v4763_v17  ;;  %v2896_v13 = vmul.f32 %v4693_v28, %v4763_v17  ;;  %v2873_v14 = vrot.slane %v2865_v27, 6  ;;  %v2874_v49 = vrot.slane %v2867_v62, 6  ;;  %v5297_v17 = vld [vmem:[#allocation95_spill] sm:$0xff] }
0x1b6b   :  { %2797 = vrot.lane.b32.xlu1 %v2794_v22, %s3326_s13  ;;  %2795 = vrot.lane.b32.xlu0 %v2791_v58, %s3326_s13  ;;  %v2876_v61 = vrot.slane %v2866_v26, 6  ;;  %v2877_v50 = vrot.slane %v2868_v6, 6  ;;  %v2850_v10 = vsel %vm2726_vm13, %v2848_v60, %v2849_v25  ;;  %v2847_v43 = vsel %vm2726_vm13, %v2845_v24, %v2846_v48  ;;  %v4883_v22 = vpop.permute.xlu0 %3086  ;;  %v5300_v24 = vld [vmem:[#allocation101_spill] sm:$0xff]  ;;  %v5301_v60 = vld [vmem:[#allocation100_spill] sm:$0xff] }
0x1b6c   :  { %v1819_v15 = vadd.f32 %v1817_v53, %v1777_v12  ;;  %v1791_v16 = vadd.f32 %v1789_v2, %v1762_v31  ;;  %v1845_v19 = vsel %vm66_vm4, %v5295_v52, %v5294_v51  ;;  %v1873_v63 = vsel %vm101_vm5, %v5297_v17, %v5296_v20 }
0x1b6d   :  { %v2901_v56 = vrot.slane %v2893_v3, 6  ;;  %v2904_v41 = vrot.slane %v2894_v4, 6  ;;  %v2902_v42 = vrot.slane %v2895_v45, 6  ;;  %v2905_v36 = vrot.slane %v2896_v13, 6  ;;  %v4911_v34 = vpop.permute.xlu1 %3170  ;;  %v5302_v3 = vld [vmem:[#allocation103_spill] sm:$0xff]  ;;  %v5304_v45 = vld [vmem:[#allocation105_spill] sm:$0xff] }
0x1b6e   :  { %v2921_v21 = vmul.f32 %v4617_v40, %v4797_v1  ;;  %v2922_v8 = vmul.f32 %v4628_v55, %v4797_v1  ;;  %v2923_v58 = vmul.f32 %v4680_v47, %v4797_v1  ;;  %v2924_v5 = vmul.f32 %v4693_v28, %v4797_v1  ;;  %v5305_v13 = vld [vmem:[#allocation104_spill] sm:$0xff] }
0x1b6f   :  { %2825 = vrot.lane.b32.xlu1 %v2822_v29, %s3327_s14  ;;  %2823 = vrot.lane.b32.xlu0 %v2819_v0, %s3327_s14  ;;  %v2878_v46 = vsel %vm2726_vm13, %v2876_v61, %v2877_v50  ;;  %v2875_v9 = vsel %vm2726_vm13, %v2873_v14, %v2874_v49  ;;  %v1847_v23 = vadd.f32 %v1845_v19, %v1791_v16  ;;  %v4913_v53 = vpop.permute.xlu0 %3142 }
0x1b70   :  { %v1875_v30 = vadd.f32 %v1873_v63, %v1819_v15  ;;  %v1901_v44 = vsel %vm101_vm5, %v5299_v59, %v5298_v33  ;;  %v1929_v48 = vsel %vm136_vm6, %v5301_v60, %v5300_v24  ;;  %v2949_v1 = vmul.f32 %v4617_v40, %v4795_v32  ;;  %v5306_v63 = vld [vmem:[#allocation108_spill] sm:$0xff] }
0x1b71   :  { %v2951_v25 = vmul.f32 %v4680_v47, %v4795_v32  ;;  %v2950_v27 = vmul.f32 %v4628_v55, %v4795_v32  ;;  %v2952_v62 = vmul.f32 %v4693_v28, %v4795_v32  ;;  %v2929_v26 = vrot.slane %v2921_v21, 6  ;;  %v5303_v32 = vld [vmem:[#allocation102_spill] sm:$0xff] }
0x1b72   :  { %v2932_v6 = vrot.slane %v2922_v8, 6  ;;  %v2930_v29 = vrot.slane %v2923_v58, 6  ;;  %v2933_v0 = vrot.slane %v2924_v5, 6  ;;  %v2906_v31 = vsel %vm2726_vm13, %v2904_v41, %v2905_v36 }
0x1b73   :  { %2853 = vrot.lane.b32.xlu1 %v2850_v10, %s3327_s14  ;;  %2851 = vrot.lane.b32.xlu0 %v2847_v43, %s3327_s14  ;;  %v2903_v2 = vsel %vm2726_vm13, %v2901_v56, %v2902_v42  ;;  %v1903_v12 = vadd.f32 %v1901_v44, %v1847_v23  ;;  %v1931_v18 = vadd.f32 %v1929_v48, %v1875_v30  ;;  %v2957_v49 = vrot.slane %v2949_v1, 6  ;;  %v5307_v56 = vld [vmem:[#allocation106_spill] sm:$0xff]  ;;  %v5308_v42 = vld [vmem:[#allocation109_spill] sm:$0xff] }
0x1b74   :  { %v1957_v4 = vsel %vm136_vm6, %v5303_v32, %v5302_v3  ;;  %v1985_v14 = vsel %vm171_vm7, %v5305_v13, %v5304_v45  ;;  %v2958_v61 = vrot.slane %v2951_v25, 6  ;;  %v2960_v50 = vrot.slane %v2950_v27, 6 }
0x1b75   :  { %v2977_v10 = vmul.f32 %v4617_v40, %v4829_v54  ;;  %v2978_v43 = vmul.f32 %v4628_v55, %v4829_v54  ;;  %v2979_v15 = vmul.f32 %v4680_v47, %v4829_v54  ;;  %v2961_v16 = vrot.slane %v2952_v62, 6 }
0x1b76   :  { %v2980_v51 = vmul.f32 %v4693_v28, %v4829_v54  ;;  %v2934_v52 = vsel %vm2726_vm13, %v2932_v6, %v2933_v0  ;;  %v2931_v19 = vsel %vm2726_vm13, %v2929_v26, %v2930_v29  ;;  %v1959_v20 = vadd.f32 %v1957_v4, %v1903_v12 }
0x1b77   :  { %2881 = vrot.lane.b32.xlu1 %v2878_v46, %s3328_s15  ;;  %2879 = vrot.lane.b32.xlu0 %v2875_v9, %s3328_s15  ;;  %v1987_v17 = vadd.f32 %v1985_v14, %v1931_v18  ;;  %v2013_v41 = vsel %vm171_vm7, %v5307_v56, %v5306_v63  ;;  %v2041_v36 = vsel %vm206_vm8, %v5308_v42, %v4425_v7  ;;  %v2985_v5 = vrot.slane %v2977_v10, 6 }
0x1b78   :  { %v3005_v54 = vmul.f32 %v4617_v40, %v4827_v57  ;;  %v3006_v21 = vmul.f32 %v4628_v55, %v4827_v57  ;;  %v3007_v8 = vmul.f32 %v4680_v47, %v4827_v57  ;;  %v3008_v58 = vmul.f32 %v4693_v28, %v4827_v57 }
0x1b79   :  { %v2986_v46 = vrot.slane %v2979_v15, 6  ;;  %v2988_v9 = vrot.slane %v2978_v43, 6  ;;  %v2989_v33 = vrot.slane %v2980_v51, 6  ;;  %v2962_v59 = vsel %vm2726_vm13, %v2960_v50, %v2961_v16 }
0x1b7a   :  { %v2959_v44 = vsel %vm2726_vm13, %v2957_v49, %v2958_v61  ;;  %v2015_v24 = vadd.f32 %v2013_v41, %v1959_v20  ;;  %v2043_v60 = vadd.f32 %v2041_v36, %v1987_v17  ;;  %v2069_v57 = vsel %vm206_vm8, %v4441_v37, %v4439_v35 }
0x1b7b   :  { %2909 = vrot.lane.b32.xlu1 %v2906_v31, %s3328_s15  ;;  %2907 = vrot.lane.b32.xlu0 %v2903_v2, %s3328_s15  ;;  %v3013_v48 = vrot.slane %v3005_v54, 6  ;;  %v3014_v1 = vrot.slane %v3007_v8, 6  ;;  %v3016_v25 = vrot.slane %v3006_v21, 6  ;;  %v3017_v27 = vrot.slane %v3008_v58, 6  ;;  %v2241_v31 = vld [vmem:[#allocation2 + $0x2d0] sm:$0xff]  ;;  %v4961_v2 = vld [vmem:[#allocation2 + $0x2d8] sm:$0xff] }
0x1b7c   :  { %v3033_v62 = vmul.f32 %v4617_v40, %v4854_v11  ;;  %v3034_v26 = vmul.f32 %v4628_v55, %v4854_v11  ;;  %v3036_v6 = vmul.f32 %v4693_v28, %v4854_v11  ;;  %v3035_v35 = vmul.f32 %v4680_v47, %v4854_v11  ;;  %s3335_s15 = smov 64  }
0x1b7d   :  { %v2990_v12 = vsel %vm2726_vm13, %v2988_v9, %v2989_v33  ;;  %v2987_v18 = vsel %vm2726_vm13, %v2985_v5, %v2986_v46  ;;  %v3061_v3 = vmul.f32 %v4617_v40, %v4852_v39  ;;  %v3062_v32 = vmul.f32 %v4628_v55, %v4852_v39 }
0x1b7e   :  { %v3063_v4 = vmul.f32 %v4680_v47, %v4852_v39  ;;  %v2071_v11 = vadd.f32 %v2069_v57, %v2015_v24  ;;  %v3064_v45 = vmul.f32 %v4693_v28, %v4852_v39  ;;  %v2243_v13 = vrot.slane %v2241_v31, 3 }
0x1b7f   :  { %2937 = vrot.lane.b32.xlu1 %v2934_v52, %s3329_s16  ;;  %2935 = vrot.lane.b32.xlu0 %v2931_v19, %s3329_s16  ;;  %v2258_v14 = vrot.slane %v4961_v2, 3  ;;  %v3041_v49 = vrot.slane %v3033_v62, 6  ;;  %v3044_v61 = vrot.slane %v3034_v26, 6  ;;  %v3045_v50 = vrot.slane %v3036_v6, 6 }
0x1b80   :  { %v3042_v16 = vrot.slane %v3035_v35, 6  ;;  %v3018_v52 = vsel %vm2726_vm13, %v3016_v25, %v3017_v27  ;;  %v3015_v19 = vsel %vm2726_vm13, %v3013_v48, %v3014_v1  ;;  %v3069_v20 = vrot.slane %v3061_v3, 6 }
0x1b81   :  { %v2096_v23 = vpop.permute.xlu1 %2095  ;;  %v2094_v30 = vpop.permute.xlu0 %2093  ;;  %v3070_v17 = vrot.slane %v3063_v4, 6  ;;  %v3072_v63 = vrot.slane %v3062_v32, 6  ;;  %v3073_v56 = vrot.slane %v3064_v45, 6  ;;  %v3089_v41 = vmul.f32 %v4617_v40, %v4883_v22 }
0x1b82   :  { %v2097_v7 = vsel %vm241_vm9, %v2094_v30, %v2096_v23  ;;  %v3090_v42 = vmul.f32 %v4628_v55, %v4883_v22  ;;  %v3091_v36 = vmul.f32 %v4680_v47, %v4883_v22  ;;  %v4992_v54 = vmul.f32 %v4617_v40, %v4881_v38 }
0x1b83   :  { %2965 = vrot.lane.b32.xlu1 %v2962_v59, %s3329_s16  ;;  %2963 = vrot.lane.b32.xlu0 %v2959_v44, %s3329_s16  ;;  %v2099_v10 = vadd.f32 %v2097_v7, %v2043_v60  ;;  %v3092_v21 = vmul.f32 %v4693_v28, %v4883_v22  ;;  %v3046_v46 = vsel %vm2726_vm13, %v3044_v61, %v3045_v50  ;;  %v3097_v24 = vrot.slane %v3089_v41, 6  ;;  %s3336_s16 = smov 32  }
0x1b84   :  { %v3043_v23 = vsel %vm2726_vm13, %v3041_v49, %v3042_v16  ;;  %v2245_v30 = vmul.f32 %v4617_v40, %v2243_v13  ;;  %v2246_v33 = vmul.f32 %v4680_v47, %v2243_v13  ;;  %v3118_v7 = vmul.f32 %v4628_v55, %v4881_v38 }
0x1b85   :  { %v2124_v29 = vpop.permute.xlu1 %2123  ;;  %v2122_v0 = vpop.permute.xlu0 %2121  ;;  %v3119_v59 = vmul.f32 %v4680_v47, %v4881_v38  ;;  %v3120_v44 = vmul.f32 %v4693_v28, %v4881_v38  ;;  %v3098_v60 = vrot.slane %v3091_v36, 6  ;;  %v3100_v57 = vrot.slane %v3090_v42, 6 }
0x1b86   :  { %v2125_v37 = vsel %vm241_vm9, %v2122_v0, %v2124_v29  ;;  %v3101_v48 = vrot.slane %v3092_v21, 6  ;;  %v3074_v27 = vsel %vm2726_vm13, %v3072_v63, %v3073_v56  ;;  %v3071_v62 = vsel %vm2726_vm13, %v3069_v20, %v3070_v17 }
0x1b87   :  { %2993 = vrot.lane.b32.xlu1 %v2990_v12, %s3330_s17  ;;  %2991 = vrot.lane.b32.xlu0 %v2987_v18, %s3330_s17  ;;  %v2127_v8 = vadd.f32 %v2125_v37, %v2071_v11  ;;  %v2260_v26 = vmul.f32 %v4617_v40, %v2258_v14  ;;  %v2250_v29 = vrot.slane %v2245_v30, 5  ;;  %v2251_v0 = vrot.slane %v2246_v33, 5 }
0x1b88   :  { %v2261_v31 = vmul.f32 %v4680_v47, %v2258_v14  ;;  %v3125_v38 = vrot.slane %v4992_v54, 6  ;;  %v3126_v2 = vrot.slane %v3119_v59, 6  ;;  %v3128_v37 = vrot.slane %v3118_v7, 6 }
0x1b89   :  { %v2152_v43 = vpop.permute.xlu1 %2151  ;;  %v2150_v15 = vpop.permute.xlu0 %2149  ;;  %v3129_v12 = vrot.slane %v3120_v44, 6  ;;  %v3145_v18 = vmul.f32 %v4617_v40, %v4913_v53  ;;  %v3146_v3 = vmul.f32 %v4628_v55, %v4913_v53  ;;  %v3147_v32 = vmul.f32 %v4680_v47, %v4913_v53 }
0x1b8a   :  { %v2153_v51 = vsel %vm276_vm10, %v2150_v15, %v2152_v43  ;;  %v3148_v4 = vmul.f32 %v4693_v28, %v4913_v53  ;;  %v3102_v13 = vsel %vm2726_vm13, %v3100_v57, %v3101_v48  ;;  %v3099_v14 = vsel %vm2726_vm13, %v3097_v24, %v3098_v60 }
0x1b8b   :  { %v2155_v39 = vadd.f32 %v2153_v51, %v2099_v10  ;;  %3021 = vrot.lane.b32.xlu1 %v3018_v52, %s3330_s17  ;;  %3019 = vrot.lane.b32.xlu0 %v3015_v19, %s3330_s17  ;;  %v2252_v61 = vsel %vm2249_vm12, %v2250_v29, %v2251_v0  ;;  %v2264_v50 = vrot.slane %v2260_v26, 5  ;;  %v2265_v10 = vrot.slane %v2261_v31, 5  ;;  %s3194_s17 = sld [smem:[#allocation5]] }
0x1b8c   :  { %v3173_v43 = vmul.f32 %v4617_v40, %v4911_v34  ;;  %v3174_v53 = vmul.f32 %v4628_v55, %v4911_v34  ;;  %v3175_v16 = vmul.f32 %v4680_v47, %v4911_v34  ;;  %v3176_v51 = vmul.f32 %v4693_v28, %v4911_v34 }
0x1b8d   :  { %v2180_v58 = vpop.permute.xlu1 %2179  ;;  %v2178_v5 = vpop.permute.xlu0 %2177  ;;  %v3153_v52 = vrot.slane %v3145_v18, 6  ;;  %v3154_v19 = vrot.slane %v3147_v32, 6  ;;  %v3156_v20 = vrot.slane %v3146_v3, 6  ;;  %v3157_v17 = vrot.slane %v3148_v4, 6 }
0x1b8e   :  { %v2181_v9 = vsel %vm276_vm10, %v2178_v5, %v2180_v58  ;;  %v3130_v41 = vsel %vm2726_vm13, %v3128_v37, %v3129_v12  ;;  %v3127_v42 = vsel %vm2726_vm13, %v3125_v38, %v3126_v2  ;;  %v2266_v55 = vsel %vm2249_vm12, %v2264_v50, %v2265_v10 }
0x1b8f   :  { %v2183_v22 = vadd.f32 %v2181_v9, %v2127_v8  ;;  %3049 = vrot.lane.b32.xlu1 %v3046_v46, %s3331_s18  ;;  %3047 = vrot.lane.b32.xlu0 %v3043_v23, %s3331_s18  ;;  %v3181_v28 = vrot.slane %v3173_v43, 6  ;;  %v3182_v34 = vrot.slane %v3175_v16, 6  ;;  %v3184_v54 = vrot.slane %v3174_v53, 6 }
0x1b90   :  { %v3185_v5 = vrot.slane %v3176_v51, 6  ;;  %v3158_v9 = vsel %vm2726_vm13, %v3156_v20, %v3157_v17  ;;  %v3155_v23 = vsel %vm2726_vm13, %v3153_v52, %v3154_v19  ;;  %v2733_v52 = vld [vmem:[#allocation2 + $0x368] sm:$0xff]  ;;  %v3276_v17 = vld [vmem:[%s5097_s0] sm:$0xff]  ;;  %s3334_s0 = smov 96  }
0x1b91   :  { %v2208_v1 = vpop.permute.xlu1 %2207  ;;  %v2206_v25 = vpop.permute.xlu0 %2205  ;;  %v3183_v44 = vsel %vm2726_vm13, %v3181_v28, %v3182_v34 }
0x1b92   :  { %v2209_v6 = vsel %vm311_vm11, %v2206_v25, %v2208_v1 }
0x1b93   :  { %v2211_v35 = vadd.f32 %v2209_v6, %v2155_v39  ;;  %3077 = vrot.lane.b32.xlu1 %v3074_v27, %s3331_s18  ;;  %3075 = vrot.lane.b32.xlu0 %v3071_v62, %s3331_s18  ;;  %s3237_s18 = sld [smem:[#allocation5 + $0x1]] }
0x1b95   :  { %v2236_v11 = vpop.permute.xlu1 %2235  ;;  %v2234_v45 = vpop.permute.xlu0 %2233  ;;  %v2254_v39 = vadd.f32 %v2252_v61, %v2211_v35 }
0x1b96   :  { %v2237_v49 = vsel %vm311_vm11, %v2234_v45, %v2236_v11 }
0x1b97   :  { %v2239_v15 = vadd.f32 %v2237_v49, %v2183_v22  ;;  %3105 = vrot.lane.b32.xlu1 %v3102_v13, %s3332_s19  ;;  %3103 = vrot.lane.b32.xlu0 %v3099_v14, %s3332_s19  ;;  %v3186_v22 = vsel %vm2726_vm13, %v3184_v54, %v3185_v5 }
0x1b99   :  { %v2293_v63 = vpop.permute.xlu1 %2292  ;;  %v2291_v40 = vpop.permute.xlu0 %2290  ;;  %v2268_v58 = vadd.f32 %v2266_v55, %v2239_v15  ;;  %v2718_v15 = vld [vmem:[#allocation2 + $0x360] sm:$0xff] }
0x1b9a   :  { %v2294_v56 = vsel %vm66_vm4, %v2291_v40, %v2293_v63  ;;  %v2720_v51 = vrot.slane %v2718_v15, 2 }
0x1b9b   :  { %v2296_v36 = vadd.f32 %v2294_v56, %v2254_v39  ;;  %3133 = vrot.lane.b32.xlu1 %v3130_v41, %s3332_s19  ;;  %3131 = vrot.lane.b32.xlu0 %v3127_v42, %s3332_s19  ;;  %v2735_v39 = vrot.slane %v2733_v52, 2 }
0x1b9c   :  { %v2722_v63 = vmul.f32 %v3276_v17, %v2720_v51  ;;  %v2723_v40 = vmul.f32 %v4680_v47, %v2720_v51 }
0x1b9d   :  { %v2321_v21 = vpop.permute.xlu1 %2320  ;;  %v2319_v8 = vpop.permute.xlu0 %2318  ;;  %v2737_v34 = vmul.f32 %v3276_v17, %v2735_v39  ;;  %v2738_v54 = vmul.f32 %v4680_v47, %v2735_v39 }
0x1b9e   :  { %v2322_v46 = vsel %vm66_vm4, %v2319_v8, %v2321_v21  ;;  %v2727_v55 = vrot.slane %v2722_v63, 6 }
0x1b9f   :  { %v2324_v30 = vadd.f32 %v2322_v46, %v2268_v58  ;;  %3161 = vrot.lane.b32.xlu1 %v3158_v9, %s3333_s24  ;;  %3159 = vrot.lane.b32.xlu0 %v3155_v23, %s3333_s24 }
0x1ba1   :  { %v2349_v33 = vpop.permute.xlu1 %2348  ;;  %v2347_v7 = vpop.permute.xlu0 %2346 }
0x1ba2   :  { %v2350_v59 = vsel %vm101_vm5, %v2347_v7, %v2349_v33  ;;  %v2741_v33 = vrot.slane %v2737_v34, 6  ;;  %v2742_v7 = vrot.slane %v2738_v54, 6 }
0x1ba3   :  { %v2352_v24 = vadd.f32 %v2350_v59, %v2296_v36  ;;  %3189 = vrot.lane.b32.xlu1 %v3186_v22, %s3333_s24  ;;  %3187 = vrot.lane.b32.xlu0 %v3183_v44, %s3333_s24  ;;  %v2728_v36 = vrot.slane %v2723_v40, 6 }
0x1ba5   :  { %v2377_v60 = vpop.permute.xlu1 %2376  ;;  %v2375_v57 = vpop.permute.xlu0 %2374  ;;  %v2729_v9 = vsel %vm2726_vm13, %v2727_v55, %v2728_v36 }
0x1ba6   :  { %v2378_v48 = vsel %vm101_vm5, %v2375_v57, %v2377_v60 }
0x1ba7   :  { %v2380_v1 = vadd.f32 %v2378_v48, %v2324_v30  ;;  %v2743_v48 = vsel %vm2726_vm13, %v2741_v33, %v2742_v7 }
0x1ba9   :  { %v2405_v25 = vpop.permute.xlu1 %2404  ;;  %v2403_v27 = vpop.permute.xlu0 %2402 }
0x1baa   :  { %v2406_v62 = vsel %vm136_vm6, %v2403_v27, %v2405_v25 }
0x1bab   :  { %v2408_v26 = vadd.f32 %v2406_v62, %v2352_v24 }
0x1bad   :  { %v2433_v6 = vpop.permute.xlu1 %2432  ;;  %v2431_v29 = vpop.permute.xlu0 %2430 }
0x1bae   :  { %v2434_v0 = vsel %vm136_vm6, %v2431_v29, %v2433_v6 }
0x1baf   :  { %v2436_v31 = vadd.f32 %v2434_v0, %v2380_v1 }
0x1bb1   :  { %v2461_v38 = vpop.permute.xlu1 %2460  ;;  %v2459_v2 = vpop.permute.xlu0 %2458 }
0x1bb2   :  { %v2462_v35 = vsel %vm171_vm7, %v2459_v2, %v2461_v38 }
0x1bb3   :  { %v2464_v37 = vadd.f32 %v2462_v35, %v2408_v26 }
0x1bb5   :  { %v2489_v12 = vpop.permute.xlu1 %2488  ;;  %v2487_v18 = vpop.permute.xlu0 %2486 }
0x1bb6   :  { %v2490_v3 = vsel %vm171_vm7, %v2487_v18, %v2489_v12 }
0x1bb7   :  { %v2492_v32 = vadd.f32 %v2490_v3, %v2436_v31 }
0x1bb9   :  { %v2517_v4 = vpop.permute.xlu1 %2516  ;;  %v2515_v11 = vpop.permute.xlu0 %2514 }
0x1bba   :  { %v2518_v45 = vsel %vm206_vm8, %v2515_v11, %v2517_v4 }
0x1bbb   :  { %v2520_v13 = vadd.f32 %v2518_v45, %v2464_v37 }
0x1bbd   :  { %v2545_v14 = vpop.permute.xlu1 %2544  ;;  %v2543_v49 = vpop.permute.xlu0 %2542 }
0x1bbe   :  { %v2546_v61 = vsel %vm206_vm8, %v2543_v49, %v2545_v14 }
0x1bbf   :  { %v2548_v50 = vadd.f32 %v2546_v61, %v2492_v32 }
0x1bc1   :  { %v2573_v10 = vpop.permute.xlu1 %2572  ;;  %v2571_v43 = vpop.permute.xlu0 %2570 }
0x1bc2   :  { %v2574_v56 = vsel %vm241_vm9, %v2571_v43, %v2573_v10 }
0x1bc3   :  { %v2576_v21 = vadd.f32 %v2574_v56, %v2520_v13 }
0x1bc5   :  { %v2601_v53 = vpop.permute.xlu1 %2600  ;;  %v2599_v16 = vpop.permute.xlu0 %2598 }
0x1bc6   :  { %v2602_v8 = vsel %vm241_vm9, %v2599_v16, %v2601_v53 }
0x1bc7   :  { %v2604_v59 = vadd.f32 %v2602_v8, %v2548_v50 }
0x1bc9   :  { %v2629_v19 = vpop.permute.xlu1 %2628  ;;  %v2627_v20 = vpop.permute.xlu0 %2626 }
0x1bca   :  { %v2630_v28 = vsel %vm276_vm10, %v2627_v20, %v2629_v19 }
0x1bcb   :  { %v2632_v58 = vadd.f32 %v2630_v28, %v2576_v21 }
0x1bcd   :  { %v2657_v41 = vpop.permute.xlu1 %2656  ;;  %v2655_v42 = vpop.permute.xlu0 %2654 }
0x1bce   :  { %v2658_v23 = vsel %vm276_vm10, %v2655_v42, %v2657_v41 }
0x1bcf   :  { %v2660_v44 = vadd.f32 %v2658_v23, %v2604_v59 }
0x1bd1   :  { %v2685_v5 = vpop.permute.xlu1 %2684  ;;  %v2683_v46 = vpop.permute.xlu0 %2682 }
0x1bd2   :  { %v2686_v30 = vsel %vm311_vm11, %v2683_v46, %v2685_v5 }
0x1bd3   :  { %v2688_v22 = vadd.f32 %v2686_v30, %v2632_v58 }
0x1bd5   :  { %v2713_v24 = vpop.permute.xlu1 %2712  ;;  %v2711_v60 = vpop.permute.xlu0 %2710  ;;  %v2731_v47 = vadd.f32 %v2729_v9, %v2688_v22 }
0x1bd6   :  { %v2714_v57 = vsel %vm311_vm11, %v2711_v60, %v2713_v24 }
0x1bd7   :  { %v2716_v1 = vadd.f32 %v2714_v57, %v2660_v44 }
0x1bd9   :  { %v2770_v25 = vpop.permute.xlu1 %2769  ;;  %v2768_v27 = vpop.permute.xlu0 %2767  ;;  %v2745_v62 = vadd.f32 %v2743_v48, %v2716_v1 }
0x1bda   :  { %v2771_v50 = vsel %vm66_vm4, %v2768_v27, %v2770_v25 }
0x1bdb   :  { %v2773_v43 = vadd.f32 %v2771_v50, %v2731_v47 }
0x1bdd   :  { %v2798_v26 = vpop.permute.xlu1 %2797  ;;  %v2796_v6 = vpop.permute.xlu0 %2795 }
0x1bde   :  { %v2799_v16 = vsel %vm66_vm4, %v2796_v6, %v2798_v26 }
0x1bdf   :  { %v2801_v17 = vadd.f32 %v2799_v16, %v2745_v62 }
0x1be1   :  { %v2826_v29 = vpop.permute.xlu1 %2825  ;;  %v2824_v0 = vpop.permute.xlu0 %2823 }
0x1be2   :  { %v2827_v10 = vsel %vm101_vm5, %v2824_v0, %v2826_v29 }
0x1be3   :  { %v2829_v52 = vadd.f32 %v2827_v10, %v2773_v43 }
0x1be5   :  { %v2854_v31 = vpop.permute.xlu1 %2853  ;;  %v2852_v38 = vpop.permute.xlu0 %2851 }
0x1be6   :  { %v2855_v19 = vsel %vm101_vm5, %v2852_v38, %v2854_v31  ;;  %v3208_v31 = vstv %s3194_s17 }
0x1be7   :  { %v2857_v42 = vadd.f32 %v2855_v19, %v2801_v17 }
0x1be9   :  { %v2882_v2 = vpop.permute.xlu1 %2881  ;;  %v2880_v35 = vpop.permute.xlu0 %2879 }
0x1bea   :  { %v2883_v51 = vsel %vm136_vm6, %v2880_v35, %v2882_v2 }
0x1beb   :  { %v2885_v63 = vadd.f32 %v2883_v51, %v2829_v52 }
0x1bed   :  { %v2910_v37 = vpop.permute.xlu1 %2909  ;;  %v2908_v12 = vpop.permute.xlu0 %2907 }
0x1bee   :  { %v2911_v56 = vsel %vm136_vm6, %v2908_v12, %v2910_v37 }
0x1bef   :  { %v2913_v34 = vadd.f32 %v2911_v56, %v2857_v42 }
0x1bf1   :  { %v2938_v18 = vpop.permute.xlu1 %2937  ;;  %v2936_v3 = vpop.permute.xlu0 %2935 }
0x1bf2   :  { %v2939_v20 = vsel %vm171_vm7, %v2936_v3, %v2938_v18  ;;  %v3224_v18 = vstv %s3237_s18 }
0x1bf3   :  { %v2941_v55 = vadd.f32 %v2939_v20, %v2885_v63 }
0x1bf5   :  { %v2966_v32 = vpop.permute.xlu1 %2965  ;;  %v2964_v4 = vpop.permute.xlu0 %2963 }
0x1bf6   :  { %v2967_v36 = vsel %vm171_vm7, %v2964_v4, %v2966_v32 }
0x1bf7   :  { %v2969_v46 = vadd.f32 %v2967_v36, %v2913_v34 }
0x1bf9   :  { %v2994_v11 = vpop.permute.xlu1 %2993  ;;  %v2992_v45 = vpop.permute.xlu0 %2991 }
0x1bfa   :  { %v2995_v41 = vsel %vm206_vm8, %v2992_v45, %v2994_v11 }
0x1bfb   :  { %v2997_v54 = vadd.f32 %v2995_v41, %v2941_v55 }
0x1bfd   :  { %v3022_v13 = vpop.permute.xlu1 %3021  ;;  %v3020_v14 = vpop.permute.xlu0 %3019 }
0x1bfe   :  { %v3023_v58 = vsel %vm206_vm8, %v3020_v14, %v3022_v13 }
0x1bff   :  { %v3025_v30 = vadd.f32 %v3023_v58, %v2969_v46 }
0x1c01   :  { %v3050_v49 = vpop.permute.xlu1 %3049  ;;  %v3048_v61 = vpop.permute.xlu0 %3047 }
0x1c02   :  { %v3051_v28 = vsel %vm241_vm9, %v3048_v61, %v3050_v49 }
0x1c03   :  { %v3053_v9 = vadd.f32 %v3051_v28, %v2997_v54 }
0x1c05   :  { %v3078_v15 = vpop.permute.xlu1 %3077  ;;  %v3076_v53 = vpop.permute.xlu0 %3075 }
0x1c06   :  { %v3079_v23 = vsel %vm241_vm9, %v3076_v53, %v3078_v15 }
0x1c07   :  { %v3081_v24 = vadd.f32 %v3079_v23, %v3025_v30 }
0x1c09   :  { %v3106_v40 = vpop.permute.xlu1 %3105  ;;  %v3104_v39 = vpop.permute.xlu0 %3103 }
0x1c0a   :  { %v3107_v5 = vsel %vm276_vm10, %v3104_v39, %v3106_v40 }
0x1c0b   :  { %v3109_v33 = vadd.f32 %v3107_v5, %v3053_v9 }
0x1c0d   :  { %v3134_v21 = vpop.permute.xlu1 %3133  ;;  %v3132_v8 = vpop.permute.xlu0 %3131 }
0x1c0e   :  { %v3135_v22 = vsel %vm276_vm10, %v3132_v8, %v3134_v21 }
0x1c0f   :  { %v3137_v47 = vadd.f32 %v3135_v22, %v3081_v24 }
0x1c11   :  { %v3162_v7 = vpop.permute.xlu1 %3161  ;;  %v3160_v59 = vpop.permute.xlu0 %3159 }
0x1c12   :  { %v3163_v44 = vsel %vm311_vm11, %v3160_v59, %v3162_v7 }
0x1c13   :  { %v3165_v60 = vadd.f32 %v3163_v44, %v3109_v33 }
0x1c15   :  { %v3190_v57 = vpop.permute.xlu1 %3189  ;;  %v3188_v48 = vpop.permute.xlu0 %3187  ;;  %3196 = vrot.lane.b32.xlu0 %v3165_v60, %s3334_s0 }
0x1c16   :  { %v3191_v1 = vsel %vm311_vm11, %v3188_v48, %v3190_v57 }
0x1c17   :  { %v3193_v25 = vadd.f32 %v3191_v1, %v3137_v47 }
0x1c19   :  { %3212 = vrot.lane.b32.xlu1 %v3193_v25, %s3334_s0  ;;  %3200 = vrot.lane.b32.xlu0 %v3165_v60, %s3335_s15 }
0x1c1d   :  { %3216 = vrot.lane.b32.xlu1 %v3193_v25, %s3335_s15  ;;  %3204 = vrot.lane.b32.xlu0 %v3165_v60, %s3336_s16 }
0x1c21   :  { %3220 = vrot.lane.b32.xlu1 %v3193_v25, %s3336_s16 }
0x1c87   :  { %v3197_v27 = vpop.permute.xlu0 %3196 }
0x1c88   :  { %v3199_v6 = vadd.f32 %v3197_v27, %v3165_v60 }
0x1c8b   :  { %v3213_v62 = vpop.permute.xlu1 %3212  ;;  %v3201_v26 = vpop.permute.xlu0 %3200 }
0x1c8c   :  { %v3203_v29 = vadd.f32 %v3201_v26, %v3199_v6  ;;  %v3215_v2 = vadd.f32 %v3213_v62, %v3193_v25 }
0x1c8f   :  { %v3217_v0 = vpop.permute.xlu1 %3216  ;;  %v3205_v38 = vpop.permute.xlu0 %3204 }
0x1c90   :  { %v3207_v35 = vadd.f32 %v3205_v38, %v3203_v29  ;;  %v3219_v37 = vadd.f32 %v3217_v0, %v3215_v2 }
0x1c92   :  { %v3209_v12 = vadd.f32 %v3208_v31, %v3207_v35 }
0x1c93   :  { %v3221_v3 = vpop.permute.xlu1 %3220 }
0x1c94   :  { %3260 = vtanh.f32 %v3209_v12  ;;  %v3223_v32 = vadd.f32 %v3221_v3, %v3219_v37 }
0x1c96   :  { %v3225_v4 = vadd.f32 %v3224_v18, %v3223_v32 }
0x1c98   :  { %3262 = vtanh.f32 %v3225_v4 }
0x1c9e   :  { %v3261_v11 = vpop.eup %3260 }
0x1c9f   :  { %3229 = vst.msk [vmem:[%s5100_s3] sm:$0x7f] %vm3228_vm14, %v3261_v11 }
0x1ca2   :  { %v3263_v45 = vpop.eup %3262 }
0x1ca3   :  { %3230 = vst.msk [vmem:[%s5100_s3 + $0x8] sm:$0x7f] %vm3228_vm14, %v3263_v45 }
0x1ca4   :  { %3235 = vsyncpa [#allocation3], 1 }
0x1ca5   :  { %3236 = vsyncpa [#allocation4], 1 }

</bundles_post_ra>
